<compile_context>
chip_gen: v7x
topology: tpu7x:2x2x1
jax: 0.10.0
libtpu: 0.0.40
codegen_flags: <defaults>
</compile_context>

<pallas_src>
import math

import jax
import jax.numpy as jnp
from jax import lax
from jax.experimental import pallas as pl
from jax.experimental.pallas import tpu as pltpu  # noqa: F401 (TPU backend assumed)

# ---- module hyper-parameters (constructor args + PyTorch defaults) ----
D_MODEL = 32
OUTPUT_DIM = 16          # vocab size
NUM_HEADS = 4
NUM_LAYERS = 2
MAX_TIME_STEPS = 16
DIM_FF = 2048            # nn.TransformerEncoderLayer default dim_feedforward
HEAD_DIM = D_MODEL // NUM_HEADS
LN_EPS = 1e-5
NEG_INF = -1e30          # stands in for -inf in the causal mask
V_PAD = 128              # lane-dense padded logits width (sliced to OUTPUT_DIM)


def _layer_norm(x, gamma, beta):
    mu = jnp.mean(x, axis=-1, keepdims=True)
    var = jnp.mean((x - mu) ** 2, axis=-1, keepdims=True)
    return (x - mu) * lax.rsqrt(var + LN_EPS) * gamma + beta


# ------------------------- fused Pallas kernel ---------------------------

def fused_decoder_kernel(x_ref, mask_ref,
                         wqkv_ref, bqkv_ref, wo_ref, bo_ref,
                         w1_ref, b1_ref, w2_ref, b2_ref,
                         g1_ref, be1_ref, g2_ref, be2_ref,
                         ow_ref, ob_ref, o_ref):
    """Whole forward for the whole (batch-folded) problem in one launch.

    x_ref:    [N, D]   f32 residual stream, N = B * S (batch folded into rows)
    mask_ref: [N, N]   f32 block-diagonal causal additive mask
    o_ref:    [N, 128] f32 lane-dense padded logits
    MXU operands are bf16 with f32 accumulation; LayerNorm/softmax stay f32.
    """
    D = D_MODEL
    Dh = HEAD_DIM

    x = x_ref[...]                      # [N, D] f32
    mask = mask_ref[...]                # [N, N] f32

    for l in range(NUM_LAYERS):         # static unroll (NUM_LAYERS == 2)
        xb = x.astype(jnp.bfloat16)

        # ---- fused QKV projection: ONE [N,D]x[D,3D] MXU matmul ----------
        # (1/sqrt(Dh) scale already folded into the Q columns host-side)
        qkv = jnp.dot(xb, wqkv_ref[l],
                      preferred_element_type=jnp.float32) + bqkv_ref[l]

        # ---- per-head attention via cheap static lane slices ------------
        ctxs = []
        for h in range(NUM_HEADS):      # static unroll (NUM_HEADS == 4)
            q = qkv[:, h * Dh:(h + 1) * Dh].astype(jnp.bfloat16)
            k = qkv[:, D + h * Dh:D + (h + 1) * Dh].astype(jnp.bfloat16)
            v = qkv[:, 2 * D + h * Dh:2 * D + (h + 1) * Dh].astype(jnp.bfloat16)
            s = jnp.einsum('qd,kd->qk', q, k,
                           preferred_element_type=jnp.float32) + mask
            s = s - jnp.max(s, axis=-1, keepdims=True)
            p = jnp.exp(s)
            p = p * pl.reciprocal(jnp.sum(p, axis=-1, keepdims=True),
                                  approx=True)
            ctxs.append(jnp.dot(p.astype(jnp.bfloat16), v,
                                preferred_element_type=jnp.float32))

        # ---- head merge: lane-concat + ONE [N,D]x[D,D] matmul vs full Wo
        ctx = jnp.concatenate(ctxs, axis=-1).astype(jnp.bfloat16)   # [N, D]
        attn = jnp.dot(ctx, wo_ref[l],
                       preferred_element_type=jnp.float32) + bo_ref[l]
        # dropout (p=0.1) is eval-mode identity here
        x = _layer_norm(x + attn, g1_ref[l], be1_ref[l])

        # ---- feed-forward: linear1 -> ReLU -> linear2 --------------------
        hid = jnp.dot(x.astype(jnp.bfloat16), w1_ref[l],
                      preferred_element_type=jnp.float32) + b1_ref[l]
        hid = jnp.maximum(hid, 0.0)
        ff = jnp.dot(hid.astype(jnp.bfloat16), w2_ref[l],
                     preferred_element_type=jnp.float32) + b2_ref[l]
        x = _layer_norm(x + ff, g2_ref[l], be2_ref[l])

    # ---- final output projection (lane-dense, 128-wide padded) ----------
    o_ref[...] = jnp.dot(x.astype(jnp.bfloat16), ow_ref[...],
                         preferred_element_type=jnp.float32) + ob_ref[...]


# ------------------------- pallas_call wrapper ----------------------------

def fused_forward(x_nd, mask, kp):
    """x_nd: [N, D] f32 (batch folded into rows) -> [N, V_PAD] f32 logits."""
    N, _ = x_nd.shape
    weight_args = (kp['wqkv'], kp['bqkv'], kp['wo'], kp['bo'],
                   kp['w1'], kp['b1'], kp['w2'], kp['b2'],
                   kp['ln1_g'], kp['ln1_b'], kp['ln2_g'], kp['ln2_b'],
                   kp['out_w'], kp['out_b'])
    # No grid: everything (activations + ~1.3 MiB of weights) is a
    # whole-array VMEM-resident operand; one launch does the whole forward.
    return pl.pallas_call(
        fused_decoder_kernel,
        out_shape=jax.ShapeDtypeStruct((N, V_PAD), jnp.float32),
    )(x_nd, mask, *weight_args)


# ------------------------- parameters & forward ---------------------------

def _build_pe():
    position = jnp.arange(MAX_TIME_STEPS, dtype=jnp.float32)[:, None]
    div_term = jnp.exp(jnp.arange(0, D_MODEL, 2, dtype=jnp.float32)
                       * (-math.log(10000.0) / D_MODEL))
    pe = jnp.zeros((MAX_TIME_STEPS, 1, D_MODEL), dtype=jnp.float32)
    pe = pe.at[:, 0, 0::2].set(jnp.sin(position * div_term))
    pe = pe.at[:, 0, 1::2].set(jnp.cos(position * div_term))
    return pe


def make_params(key):
    """Random parameters in native PyTorch layouts ([out, in] weights)."""
    def init(k, shape, scale):
        return (scale * jax.random.normal(k, shape)).astype(jnp.float32)

    keys = jax.random.split(key, 3 + NUM_LAYERS)
    params = {
        'embedding': init(keys[0], (OUTPUT_DIM, D_MODEL), 1.0),
        'pe': _build_pe(),
        'out_w': init(keys[1], (OUTPUT_DIM, D_MODEL), 1.0 / math.sqrt(D_MODEL)),
        'out_b': init(keys[2], (OUTPUT_DIM,), 0.01),
    }
    layers = []
    for i in range(NUM_LAYERS):
        lk = jax.random.split(keys[3 + i], 8)
        layers.append(dict(
            wqkv=init(lk[0], (3 * D_MODEL, D_MODEL), 1.0 / math.sqrt(D_MODEL)),
            bqkv=init(lk[1], (3 * D_MODEL,), 0.01),
            wo=init(lk[2], (D_MODEL, D_MODEL), 1.0 / math.sqrt(D_MODEL)),
            bo=init(lk[3], (D_MODEL,), 0.01),
            w1=init(lk[4], (DIM_FF, D_MODEL), 1.0 / math.sqrt(D_MODEL)),
            b1=init(lk[5], (DIM_FF,), 0.01),
            w2=init(lk[6], (D_MODEL, DIM_FF), 1.0 / math.sqrt(DIM_FF)),
            b2=init(lk[7], (D_MODEL,), 0.01),
            ln1_g=jnp.ones((D_MODEL,), jnp.float32),
            ln1_b=jnp.zeros((D_MODEL,), jnp.float32),
            ln2_g=jnp.ones((D_MODEL,), jnp.float32),
            ln2_b=jnp.zeros((D_MODEL,), jnp.float32),
        ))
    params['layers'] = layers
    return params


def prepare_params(params):
    """One-time host-side re-layout for the fused kernel:
      * stack layers, transpose every matmul weight to [in, out],
      * keep the in_proj FUSED as one [D, 3D] page per layer,
      * fold the 1/sqrt(head_dim) scale into the Q columns of Wqkv / bqkv,
      * cast matmul weights to bf16 (f32 accumulation on the MXU),
      * pad the output projection to a lane-dense 128-wide slab."""
    L, D = NUM_LAYERS, D_MODEL
    F, V = DIM_FF, OUTPUT_DIM

    def stack(name):
        return jnp.stack([lp[name] for lp in params['layers']])

    scale = 1.0 / math.sqrt(HEAD_DIM)
    scale_vec = jnp.concatenate([jnp.full((D,), scale, jnp.float32),
                                 jnp.ones((2 * D,), jnp.float32)])     # [3D]

    wqkv = jnp.transpose(stack('wqkv'), (0, 2, 1)) * scale_vec         # [L,D,3D]
    bqkv = (stack('bqkv') * scale_vec).reshape(L, 1, 3 * D)            # [L,1,3D]

    out_w = jnp.zeros((D, V_PAD), jnp.float32).at[:, :V].set(params['out_w'].T)
    out_b = jnp.zeros((1, V_PAD), jnp.float32).at[0, :V].set(params['out_b'])

    return dict(
        embedding=params['embedding'],
        pe=params['pe'],
        wqkv=wqkv.astype(jnp.bfloat16),
        bqkv=bqkv,
        wo=jnp.transpose(stack('wo'), (0, 2, 1)).astype(jnp.bfloat16),  # [L,D,D]
        bo=stack('bo').reshape(L, 1, D),
        w1=jnp.transpose(stack('w1'), (0, 2, 1)).astype(jnp.bfloat16),  # [L,D,F]
        b1=stack('b1').reshape(L, 1, F),
        w2=jnp.transpose(stack('w2'), (0, 2, 1)).astype(jnp.bfloat16),  # [L,F,D]
        b2=stack('b2').reshape(L, 1, D),
        ln1_g=stack('ln1_g').reshape(L, 1, D),
        ln1_b=stack('ln1_b').reshape(L, 1, D),
        ln2_g=stack('ln2_g').reshape(L, 1, D),
        ln2_b=stack('ln2_b').reshape(L, 1, D),
        out_w=out_w.astype(jnp.bfloat16),
        out_b=out_b,
    )


def vae_transformer_decoder(kp, z, x_tokens):
    """
    kp:       prepared (kernel-layout) parameters
    z:        [B, D_MODEL]  float32
    x_tokens: [L, B]        int32   (L = output_seq_len - 1)
    returns   [L+1, B, OUTPUT_DIM]  (same seq-first layout as PyTorch)
    """
    # glue: embedding gather + prepend z + positional encoding (cheap XLA ops)
    emb = jnp.take(kp['embedding'], x_tokens, axis=0)          # [L, B, D]
    x_ext = jnp.concatenate([z[None, :, :], emb], axis=0)      # [S, B, D]
    S, B, D = x_ext.shape
    x_ext = x_ext + kp['pe'][:S]                               # broadcast over batch
    h = jnp.transpose(x_ext, (1, 0, 2)).reshape(B * S, D)      # fold batch -> rows

    # block-diagonal causal mask (one block per batch element); built from
    # constants so jit constant-folds it — it enters the kernel as one tiny
    # VMEM operand.
    N = B * S
    row = lax.broadcasted_iota(jnp.int32, (N, N), 0)
    col = lax.broadcasted_iota(jnp.int32, (N, N), 1)
    same_batch = (row // S) == (col // S)
    mask = jnp.where(same_batch & (col <= row), 0.0, NEG_INF).astype(jnp.float32)

    logits_p = fused_forward(h, mask, kp)                      # [B*S, V_PAD]
    logits = logits_p[:, :OUTPUT_DIM].reshape(B, S, OUTPUT_DIM)
    return jnp.transpose(logits, (1, 0, 2))                    # -> [S, B, V]


if __name__ == "__main__":
    key = jax.random.PRNGKey(0)
    pkey, zkey, xkey = jax.random.split(key, 3)

    params = make_params(pkey)
    kp = prepare_params(params)      # one-time weight re-layout / bf16 cast

    B = 2
    L = 7                            # S = L + 1 = 8 <= MAX_TIME_STEPS
    z = jax.random.normal(zkey, (B, D_MODEL), dtype=jnp.float32)
    x_tokens = jax.random.randint(xkey, (L, B), 0, OUTPUT_DIM, dtype=jnp.int32)

    out = jax.jit(vae_transformer_decoder)(kp, z, x_tokens)
    out = jax.block_until_ready(out)

    assert out.shape == (L + 1, B, OUTPUT_DIM), out.shape
    assert bool(jnp.all(jnp.isfinite(out)))
    print("KERNEL_OK")
</pallas_src>

<mosaic_0001>
module attributes {stable_mosaic.version = 11 : i64} {
  func.func @fused_decoder_kernel(%arg0: memref<16x32xf32, #tpu.memory_space<vmem>>, %arg1: memref<16x16xf32, #tpu.memory_space<vmem>>, %arg2: memref<2x32x96xbf16, #tpu.memory_space<vmem>>, %arg3: memref<2x1x96xf32, #tpu.memory_space<vmem>>, %arg4: memref<2x32x32xbf16, #tpu.memory_space<vmem>>, %arg5: memref<2x1x32xf32, #tpu.memory_space<vmem>>, %arg6: memref<2x32x2048xbf16, #tpu.memory_space<vmem>>, %arg7: memref<2x1x2048xf32, #tpu.memory_space<vmem>>, %arg8: memref<2x2048x32xbf16, #tpu.memory_space<vmem>>, %arg9: memref<2x1x32xf32, #tpu.memory_space<vmem>>, %arg10: memref<2x1x32xf32, #tpu.memory_space<vmem>>, %arg11: memref<2x1x32xf32, #tpu.memory_space<vmem>>, %arg12: memref<2x1x32xf32, #tpu.memory_space<vmem>>, %arg13: memref<2x1x32xf32, #tpu.memory_space<vmem>>, %arg14: memref<32x128xbf16, #tpu.memory_space<vmem>>, %arg15: memref<1x128xf32, #tpu.memory_space<vmem>>, %arg16: memref<16x128xf32, #tpu.memory_space<vmem>>) attributes {dimension_semantics = [], scalar_prefetch = 0 : i64, scratch_operands = 0 : i64, tpu.core_type = #tpu.core_type<tc>} {
    %c0 = arith.constant 0 : index
    %c0_0 = arith.constant 0 : index
    %0 = vector.load %arg0[%c0, %c0_0] : memref<16x32xf32, #tpu.memory_space<vmem>>, vector<16x32xf32>
    %c0_1 = arith.constant 0 : index
    %c0_2 = arith.constant 0 : index
    %1 = vector.load %arg1[%c0_1, %c0_2] : memref<16x16xf32, #tpu.memory_space<vmem>>, vector<16x16xf32>
    %2 = arith.truncf %0 : vector<16x32xf32> to vector<16x32xbf16>
    %c0_3 = arith.constant 0 : index
    %c0_4 = arith.constant 0 : index
    %c0_5 = arith.constant 0 : index
    %3 = vector.load %arg2[%c0_3, %c0_4, %c0_5] : memref<2x32x96xbf16, #tpu.memory_space<vmem>>, vector<1x32x96xbf16>
    %4 = vector.shape_cast %3 : vector<1x32x96xbf16> to vector<32x96xbf16>
    %cst = arith.constant dense<0.000000e+00> : vector<16x96xf32>
    %5 = tpu.matmul %2, %4, %cst {dimension_numbers = #tpu.dot_dimension_numbers<[1], [0], [0], [1], [0, 0, 1, 1], [], []>} : vector<16x32xbf16>, vector<32x96xbf16>, vector<16x96xf32> -> vector<16x96xf32>
    %c0_6 = arith.constant 0 : index
    %c0_7 = arith.constant 0 : index
    %c0_8 = arith.constant 0 : index
    %6 = vector.load %arg3[%c0_6, %c0_7, %c0_8] : memref<2x1x96xf32, #tpu.memory_space<vmem>>, vector<1x1x96xf32>
    %7 = vector.shape_cast %6 : vector<1x1x96xf32> to vector<1x96xf32>
    %8 = vector.broadcast %7 : vector<1x96xf32> to vector<16x96xf32>
    %9 = arith.addf %5, %8 : vector<16x96xf32>
    %10 = vector.extract_strided_slice %9 {offsets = [0, 0], sizes = [16, 8], strides = [1, 1]} : vector<16x96xf32> to vector<16x8xf32>
    %11 = arith.truncf %10 : vector<16x8xf32> to vector<16x8xbf16>
    %12 = vector.extract_strided_slice %9 {offsets = [0, 32], sizes = [16, 8], strides = [1, 1]} : vector<16x96xf32> to vector<16x8xf32>
    %13 = arith.truncf %12 : vector<16x8xf32> to vector<16x8xbf16>
    %14 = vector.extract_strided_slice %9 {offsets = [0, 64], sizes = [16, 8], strides = [1, 1]} : vector<16x96xf32> to vector<16x8xf32>
    %15 = arith.truncf %14 : vector<16x8xf32> to vector<16x8xbf16>
    "tpu.trace_start"() <{level = 10 : i32, message = "qd,kd->qk"}> : () -> ()
    %cst_9 = arith.constant dense<0.000000e+00> : vector<16x16xf32>
    %16 = tpu.matmul %11, %13, %cst_9 {dimension_numbers = #tpu.dot_dimension_numbers<[1], [1], [0], [0], [0, 0, 1, 0], [], []>} : vector<16x8xbf16>, vector<16x8xbf16>, vector<16x16xf32> -> vector<16x16xf32>
    "tpu.trace_stop"() : () -> ()
    %17 = arith.addf %16, %1 : vector<16x16xf32>
    %cst_10 = arith.constant dense<0xFF800000> : vector<16xf32>
    %18 = vector.multi_reduction <maximumf>, %17, %cst_10 [1] : vector<16x16xf32> to vector<16xf32>
    %19 = vector.shape_cast %18 : vector<16xf32> to vector<16x1xf32>
    %20 = vector.broadcast %19 : vector<16x1xf32> to vector<16x16xf32>
    %21 = arith.subf %17, %20 : vector<16x16xf32>
    %22 = math.exp %21 : vector<16x16xf32>
    %cst_11 = arith.constant dense<0.000000e+00> : vector<16xf32>
    %23 = vector.multi_reduction <add>, %22, %cst_11 [1] : vector<16x16xf32> to vector<16xf32>
    %24 = vector.shape_cast %23 : vector<16xf32> to vector<16x1xf32>
    %25 = tpu.reciprocal %24 {approx = true} : vector<16x1xf32> -> vector<16x1xf32>
    %26 = vector.broadcast %25 : vector<16x1xf32> to vector<16x16xf32>
    %27 = arith.mulf %22, %26 : vector<16x16xf32>
    %28 = arith.truncf %27 : vector<16x16xf32> to vector<16x16xbf16>
    %cst_12 = arith.constant dense<0.000000e+00> : vector<16x8xf32>
    %29 = tpu.matmul %28, %15, %cst_12 {dimension_numbers = #tpu.dot_dimension_numbers<[1], [0], [0], [1], [0, 0, 1, 1], [], []>} : vector<16x16xbf16>, vector<16x8xbf16>, vector<16x8xf32> -> vector<16x8xf32>
    %30 = vector.extract_strided_slice %9 {offsets = [0, 8], sizes = [16, 8], strides = [1, 1]} : vector<16x96xf32> to vector<16x8xf32>
    %31 = arith.truncf %30 : vector<16x8xf32> to vector<16x8xbf16>
    %32 = vector.extract_strided_slice %9 {offsets = [0, 40], sizes = [16, 8], strides = [1, 1]} : vector<16x96xf32> to vector<16x8xf32>
    %33 = arith.truncf %32 : vector<16x8xf32> to vector<16x8xbf16>
    %34 = vector.extract_strided_slice %9 {offsets = [0, 72], sizes = [16, 8], strides = [1, 1]} : vector<16x96xf32> to vector<16x8xf32>
    %35 = arith.truncf %34 : vector<16x8xf32> to vector<16x8xbf16>
    "tpu.trace_start"() <{level = 10 : i32, message = "qd,kd->qk"}> : () -> ()
    %cst_13 = arith.constant dense<0.000000e+00> : vector<16x16xf32>
    %36 = tpu.matmul %31, %33, %cst_13 {dimension_numbers = #tpu.dot_dimension_numbers<[1], [1], [0], [0], [0, 0, 1, 0], [], []>} : vector<16x8xbf16>, vector<16x8xbf16>, vector<16x16xf32> -> vector<16x16xf32>
    "tpu.trace_stop"() : () -> ()
    %37 = arith.addf %36, %1 : vector<16x16xf32>
    %cst_14 = arith.constant dense<0xFF800000> : vector<16xf32>
    %38 = vector.multi_reduction <maximumf>, %37, %cst_14 [1] : vector<16x16xf32> to vector<16xf32>
    %39 = vector.shape_cast %38 : vector<16xf32> to vector<16x1xf32>
    %40 = vector.broadcast %39 : vector<16x1xf32> to vector<16x16xf32>
    %41 = arith.subf %37, %40 : vector<16x16xf32>
    %42 = math.exp %41 : vector<16x16xf32>
    %cst_15 = arith.constant dense<0.000000e+00> : vector<16xf32>
    %43 = vector.multi_reduction <add>, %42, %cst_15 [1] : vector<16x16xf32> to vector<16xf32>
    %44 = vector.shape_cast %43 : vector<16xf32> to vector<16x1xf32>
    %45 = tpu.reciprocal %44 {approx = true} : vector<16x1xf32> -> vector<16x1xf32>
    %46 = vector.broadcast %45 : vector<16x1xf32> to vector<16x16xf32>
    %47 = arith.mulf %42, %46 : vector<16x16xf32>
    %48 = arith.truncf %47 : vector<16x16xf32> to vector<16x16xbf16>
    %cst_16 = arith.constant dense<0.000000e+00> : vector<16x8xf32>
    %49 = tpu.matmul %48, %35, %cst_16 {dimension_numbers = #tpu.dot_dimension_numbers<[1], [0], [0], [1], [0, 0, 1, 1], [], []>} : vector<16x16xbf16>, vector<16x8xbf16>, vector<16x8xf32> -> vector<16x8xf32>
    %50 = vector.extract_strided_slice %9 {offsets = [0, 16], sizes = [16, 8], strides = [1, 1]} : vector<16x96xf32> to vector<16x8xf32>
    %51 = arith.truncf %50 : vector<16x8xf32> to vector<16x8xbf16>
    %52 = vector.extract_strided_slice %9 {offsets = [0, 48], sizes = [16, 8], strides = [1, 1]} : vector<16x96xf32> to vector<16x8xf32>
    %53 = arith.truncf %52 : vector<16x8xf32> to vector<16x8xbf16>
    %54 = vector.extract_strided_slice %9 {offsets = [0, 80], sizes = [16, 8], strides = [1, 1]} : vector<16x96xf32> to vector<16x8xf32>
    %55 = arith.truncf %54 : vector<16x8xf32> to vector<16x8xbf16>
    "tpu.trace_start"() <{level = 10 : i32, message = "qd,kd->qk"}> : () -> ()
    %cst_17 = arith.constant dense<0.000000e+00> : vector<16x16xf32>
    %56 = tpu.matmul %51, %53, %cst_17 {dimension_numbers = #tpu.dot_dimension_numbers<[1], [1], [0], [0], [0, 0, 1, 0], [], []>} : vector<16x8xbf16>, vector<16x8xbf16>, vector<16x16xf32> -> vector<16x16xf32>
    "tpu.trace_stop"() : () -> ()
    %57 = arith.addf %56, %1 : vector<16x16xf32>
    %cst_18 = arith.constant dense<0xFF800000> : vector<16xf32>
    %58 = vector.multi_reduction <maximumf>, %57, %cst_18 [1] : vector<16x16xf32> to vector<16xf32>
    %59 = vector.shape_cast %58 : vector<16xf32> to vector<16x1xf32>
    %60 = vector.broadcast %59 : vector<16x1xf32> to vector<16x16xf32>
    %61 = arith.subf %57, %60 : vector<16x16xf32>
    %62 = math.exp %61 : vector<16x16xf32>
    %cst_19 = arith.constant dense<0.000000e+00> : vector<16xf32>
    %63 = vector.multi_reduction <add>, %62, %cst_19 [1] : vector<16x16xf32> to vector<16xf32>
    %64 = vector.shape_cast %63 : vector<16xf32> to vector<16x1xf32>
    %65 = tpu.reciprocal %64 {approx = true} : vector<16x1xf32> -> vector<16x1xf32>
    %66 = vector.broadcast %65 : vector<16x1xf32> to vector<16x16xf32>
    %67 = arith.mulf %62, %66 : vector<16x16xf32>
    %68 = arith.truncf %67 : vector<16x16xf32> to vector<16x16xbf16>
    %cst_20 = arith.constant dense<0.000000e+00> : vector<16x8xf32>
    %69 = tpu.matmul %68, %55, %cst_20 {dimension_numbers = #tpu.dot_dimension_numbers<[1], [0], [0], [1], [0, 0, 1, 1], [], []>} : vector<16x16xbf16>, vector<16x8xbf16>, vector<16x8xf32> -> vector<16x8xf32>
    %70 = vector.extract_strided_slice %9 {offsets = [0, 24], sizes = [16, 8], strides = [1, 1]} : vector<16x96xf32> to vector<16x8xf32>
    %71 = arith.truncf %70 : vector<16x8xf32> to vector<16x8xbf16>
    %72 = vector.extract_strided_slice %9 {offsets = [0, 56], sizes = [16, 8], strides = [1, 1]} : vector<16x96xf32> to vector<16x8xf32>
    %73 = arith.truncf %72 : vector<16x8xf32> to vector<16x8xbf16>
    %74 = vector.extract_strided_slice %9 {offsets = [0, 88], sizes = [16, 8], strides = [1, 1]} : vector<16x96xf32> to vector<16x8xf32>
    %75 = arith.truncf %74 : vector<16x8xf32> to vector<16x8xbf16>
    "tpu.trace_start"() <{level = 10 : i32, message = "qd,kd->qk"}> : () -> ()
    %cst_21 = arith.constant dense<0.000000e+00> : vector<16x16xf32>
    %76 = tpu.matmul %71, %73, %cst_21 {dimension_numbers = #tpu.dot_dimension_numbers<[1], [1], [0], [0], [0, 0, 1, 0], [], []>} : vector<16x8xbf16>, vector<16x8xbf16>, vector<16x16xf32> -> vector<16x16xf32>
    "tpu.trace_stop"() : () -> ()
    %77 = arith.addf %76, %1 : vector<16x16xf32>
    %cst_22 = arith.constant dense<0xFF800000> : vector<16xf32>
    %78 = vector.multi_reduction <maximumf>, %77, %cst_22 [1] : vector<16x16xf32> to vector<16xf32>
    %79 = vector.shape_cast %78 : vector<16xf32> to vector<16x1xf32>
    %80 = vector.broadcast %79 : vector<16x1xf32> to vector<16x16xf32>
    %81 = arith.subf %77, %80 : vector<16x16xf32>
    %82 = math.exp %81 : vector<16x16xf32>
    %cst_23 = arith.constant dense<0.000000e+00> : vector<16xf32>
    %83 = vector.multi_reduction <add>, %82, %cst_23 [1] : vector<16x16xf32> to vector<16xf32>
    %84 = vector.shape_cast %83 : vector<16xf32> to vector<16x1xf32>
    %85 = tpu.reciprocal %84 {approx = true} : vector<16x1xf32> -> vector<16x1xf32>
    %86 = vector.broadcast %85 : vector<16x1xf32> to vector<16x16xf32>
    %87 = arith.mulf %82, %86 : vector<16x16xf32>
    %88 = arith.truncf %87 : vector<16x16xf32> to vector<16x16xbf16>
    %cst_24 = arith.constant dense<0.000000e+00> : vector<16x8xf32>
    %89 = tpu.matmul %88, %75, %cst_24 {dimension_numbers = #tpu.dot_dimension_numbers<[1], [0], [0], [1], [0, 0, 1, 1], [], []>} : vector<16x16xbf16>, vector<16x8xbf16>, vector<16x8xf32> -> vector<16x8xf32>
    %90 = tpu.concatenate %29, %49, %69, %89 in 1 : vector<16x8xf32>, vector<16x8xf32>, vector<16x8xf32>, vector<16x8xf32> -> vector<16x32xf32>
    %91 = arith.truncf %90 : vector<16x32xf32> to vector<16x32xbf16>
    %c0_25 = arith.constant 0 : index
    %c0_26 = arith.constant 0 : index
    %c0_27 = arith.constant 0 : index
    %92 = vector.load %arg4[%c0_25, %c0_26, %c0_27] : memref<2x32x32xbf16, #tpu.memory_space<vmem>>, vector<1x32x32xbf16>
    %93 = vector.shape_cast %92 : vector<1x32x32xbf16> to vector<32x32xbf16>
    %cst_28 = arith.constant dense<0.000000e+00> : vector<16x32xf32>
    %94 = tpu.matmul %91, %93, %cst_28 {dimension_numbers = #tpu.dot_dimension_numbers<[1], [0], [0], [1], [0, 0, 1, 1], [], []>} : vector<16x32xbf16>, vector<32x32xbf16>, vector<16x32xf32> -> vector<16x32xf32>
    %c0_29 = arith.constant 0 : index
    %c0_30 = arith.constant 0 : index
    %c0_31 = arith.constant 0 : index
    %95 = vector.load %arg5[%c0_29, %c0_30, %c0_31] : memref<2x1x32xf32, #tpu.memory_space<vmem>>, vector<1x1x32xf32>
    %96 = vector.shape_cast %95 : vector<1x1x32xf32> to vector<1x32xf32>
    %97 = vector.broadcast %96 : vector<1x32xf32> to vector<16x32xf32>
    %98 = arith.addf %94, %97 : vector<16x32xf32>
    %99 = arith.addf %0, %98 : vector<16x32xf32>
    %c0_32 = arith.constant 0 : index
    %c0_33 = arith.constant 0 : index
    %c0_34 = arith.constant 0 : index
    %100 = vector.load %arg10[%c0_32, %c0_33, %c0_34] : memref<2x1x32xf32, #tpu.memory_space<vmem>>, vector<1x1x32xf32>
    %101 = vector.shape_cast %100 : vector<1x1x32xf32> to vector<1x32xf32>
    %c0_35 = arith.constant 0 : index
    %c0_36 = arith.constant 0 : index
    %c0_37 = arith.constant 0 : index
    %102 = vector.load %arg11[%c0_35, %c0_36, %c0_37] : memref<2x1x32xf32, #tpu.memory_space<vmem>>, vector<1x1x32xf32>
    %103 = vector.shape_cast %102 : vector<1x1x32xf32> to vector<1x32xf32>
    %cst_38 = arith.constant dense<0.000000e+00> : vector<16xf32>
    %104 = vector.multi_reduction <add>, %99, %cst_38 [1] : vector<16x32xf32> to vector<16xf32>
    %105 = vector.shape_cast %104 : vector<16xf32> to vector<16x1xf32>
    %cst_39 = arith.constant 3.200000e+01 : f32
    %106 = vector.broadcast %cst_39 : f32 to vector<16x1xf32>
    %107 = arith.divf %105, %106 : vector<16x1xf32>
    %108 = vector.broadcast %107 : vector<16x1xf32> to vector<16x32xf32>
    %109 = arith.subf %99, %108 : vector<16x32xf32>
    %110 = arith.mulf %109, %109 : vector<16x32xf32>
    %cst_40 = arith.constant dense<0.000000e+00> : vector<16xf32>
    %111 = vector.multi_reduction <add>, %110, %cst_40 [1] : vector<16x32xf32> to vector<16xf32>
    %112 = vector.shape_cast %111 : vector<16xf32> to vector<16x1xf32>
    %cst_41 = arith.constant 3.200000e+01 : f32
    %113 = vector.broadcast %cst_41 : f32 to vector<16x1xf32>
    %114 = arith.divf %112, %113 : vector<16x1xf32>
    %115 = vector.broadcast %107 : vector<16x1xf32> to vector<16x32xf32>
    %116 = arith.subf %99, %115 : vector<16x32xf32>
    %cst_42 = arith.constant 9.99999974E-6 : f32
    %117 = vector.broadcast %cst_42 : f32 to vector<16x1xf32>
    %118 = arith.addf %114, %117 : vector<16x1xf32>
    %119 = math.rsqrt %118 : vector<16x1xf32>
    %120 = vector.broadcast %119 : vector<16x1xf32> to vector<16x32xf32>
    %121 = arith.mulf %116, %120 : vector<16x32xf32>
    %122 = vector.broadcast %101 : vector<1x32xf32> to vector<16x32xf32>
    %123 = arith.mulf %121, %122 : vector<16x32xf32>
    %124 = vector.broadcast %103 : vector<1x32xf32> to vector<16x32xf32>
    %125 = arith.addf %123, %124 : vector<16x32xf32>
    %126 = arith.truncf %125 : vector<16x32xf32> to vector<16x32xbf16>
    %c0_43 = arith.constant 0 : index
    %c0_44 = arith.constant 0 : index
    %c0_45 = arith.constant 0 : index
    %127 = vector.load %arg6[%c0_43, %c0_44, %c0_45] : memref<2x32x2048xbf16, #tpu.memory_space<vmem>>, vector<1x32x2048xbf16>
    %128 = vector.shape_cast %127 : vector<1x32x2048xbf16> to vector<32x2048xbf16>
    %cst_46 = arith.constant dense<0.000000e+00> : vector<16x2048xf32>
    %129 = tpu.matmul %126, %128, %cst_46 {dimension_numbers = #tpu.dot_dimension_numbers<[1], [0], [0], [1], [0, 0, 1, 1], [], []>} : vector<16x32xbf16>, vector<32x2048xbf16>, vector<16x2048xf32> -> vector<16x2048xf32>
    %c0_47 = arith.constant 0 : index
    %c0_48 = arith.constant 0 : index
    %c0_49 = arith.constant 0 : index
    %130 = vector.load %arg7[%c0_47, %c0_48, %c0_49] : memref<2x1x2048xf32, #tpu.memory_space<vmem>>, vector<1x1x2048xf32>
    %131 = vector.shape_cast %130 : vector<1x1x2048xf32> to vector<1x2048xf32>
    %132 = vector.broadcast %131 : vector<1x2048xf32> to vector<16x2048xf32>
    %133 = arith.addf %129, %132 : vector<16x2048xf32>
    %cst_50 = arith.constant 0.000000e+00 : f32
    %134 = vector.broadcast %cst_50 : f32 to vector<16x2048xf32>
    %135 = arith.maximumf %133, %134 : vector<16x2048xf32>
    %136 = arith.truncf %135 : vector<16x2048xf32> to vector<16x2048xbf16>
    %c0_51 = arith.constant 0 : index
    %c0_52 = arith.constant 0 : index
    %c0_53 = arith.constant 0 : index
    %137 = vector.load %arg8[%c0_51, %c0_52, %c0_53] : memref<2x2048x32xbf16, #tpu.memory_space<vmem>>, vector<1x2048x32xbf16>
    %138 = vector.shape_cast %137 : vector<1x2048x32xbf16> to vector<2048x32xbf16>
    %cst_54 = arith.constant dense<0.000000e+00> : vector<16x32xf32>
    %139 = tpu.matmul %136, %138, %cst_54 {dimension_numbers = #tpu.dot_dimension_numbers<[1], [0], [0], [1], [0, 0, 1, 1], [], []>} : vector<16x2048xbf16>, vector<2048x32xbf16>, vector<16x32xf32> -> vector<16x32xf32>
    %c0_55 = arith.constant 0 : index
    %c0_56 = arith.constant 0 : index
    %c0_57 = arith.constant 0 : index
    %140 = vector.load %arg9[%c0_55, %c0_56, %c0_57] : memref<2x1x32xf32, #tpu.memory_space<vmem>>, vector<1x1x32xf32>
    %141 = vector.shape_cast %140 : vector<1x1x32xf32> to vector<1x32xf32>
    %142 = vector.broadcast %141 : vector<1x32xf32> to vector<16x32xf32>
    %143 = arith.addf %139, %142 : vector<16x32xf32>
    %144 = arith.addf %125, %143 : vector<16x32xf32>
    %c0_58 = arith.constant 0 : index
    %c0_59 = arith.constant 0 : index
    %c0_60 = arith.constant 0 : index
    %145 = vector.load %arg12[%c0_58, %c0_59, %c0_60] : memref<2x1x32xf32, #tpu.memory_space<vmem>>, vector<1x1x32xf32>
    %146 = vector.shape_cast %145 : vector<1x1x32xf32> to vector<1x32xf32>
    %c0_61 = arith.constant 0 : index
    %c0_62 = arith.constant 0 : index
    %c0_63 = arith.constant 0 : index
    %147 = vector.load %arg13[%c0_61, %c0_62, %c0_63] : memref<2x1x32xf32, #tpu.memory_space<vmem>>, vector<1x1x32xf32>
    %148 = vector.shape_cast %147 : vector<1x1x32xf32> to vector<1x32xf32>
    %cst_64 = arith.constant dense<0.000000e+00> : vector<16xf32>
    %149 = vector.multi_reduction <add>, %144, %cst_64 [1] : vector<16x32xf32> to vector<16xf32>
    %150 = vector.shape_cast %149 : vector<16xf32> to vector<16x1xf32>
    %cst_65 = arith.constant 3.200000e+01 : f32
    %151 = vector.broadcast %cst_65 : f32 to vector<16x1xf32>
    %152 = arith.divf %150, %151 : vector<16x1xf32>
    %153 = vector.broadcast %152 : vector<16x1xf32> to vector<16x32xf32>
    %154 = arith.subf %144, %153 : vector<16x32xf32>
    %155 = arith.mulf %154, %154 : vector<16x32xf32>
    %cst_66 = arith.constant dense<0.000000e+00> : vector<16xf32>
    %156 = vector.multi_reduction <add>, %155, %cst_66 [1] : vector<16x32xf32> to vector<16xf32>
    %157 = vector.shape_cast %156 : vector<16xf32> to vector<16x1xf32>
    %cst_67 = arith.constant 3.200000e+01 : f32
    %158 = vector.broadcast %cst_67 : f32 to vector<16x1xf32>
    %159 = arith.divf %157, %158 : vector<16x1xf32>
    %160 = vector.broadcast %152 : vector<16x1xf32> to vector<16x32xf32>
    %161 = arith.subf %144, %160 : vector<16x32xf32>
    %cst_68 = arith.constant 9.99999974E-6 : f32
    %162 = vector.broadcast %cst_68 : f32 to vector<16x1xf32>
    %163 = arith.addf %159, %162 : vector<16x1xf32>
    %164 = math.rsqrt %163 : vector<16x1xf32>
    %165 = vector.broadcast %164 : vector<16x1xf32> to vector<16x32xf32>
    %166 = arith.mulf %161, %165 : vector<16x32xf32>
    %167 = vector.broadcast %146 : vector<1x32xf32> to vector<16x32xf32>
    %168 = arith.mulf %166, %167 : vector<16x32xf32>
    %169 = vector.broadcast %148 : vector<1x32xf32> to vector<16x32xf32>
    %170 = arith.addf %168, %169 : vector<16x32xf32>
    %171 = arith.truncf %170 : vector<16x32xf32> to vector<16x32xbf16>
    %c1 = arith.constant 1 : index
    %c0_69 = arith.constant 0 : index
    %c0_70 = arith.constant 0 : index
    %172 = vector.load %arg2[%c1, %c0_69, %c0_70] : memref<2x32x96xbf16, #tpu.memory_space<vmem>>, vector<1x32x96xbf16>
    %173 = vector.shape_cast %172 : vector<1x32x96xbf16> to vector<32x96xbf16>
    %cst_71 = arith.constant dense<0.000000e+00> : vector<16x96xf32>
    %174 = tpu.matmul %171, %173, %cst_71 {dimension_numbers = #tpu.dot_dimension_numbers<[1], [0], [0], [1], [0, 0, 1, 1], [], []>} : vector<16x32xbf16>, vector<32x96xbf16>, vector<16x96xf32> -> vector<16x96xf32>
    %c1_72 = arith.constant 1 : index
    %c0_73 = arith.constant 0 : index
    %c0_74 = arith.constant 0 : index
    %175 = vector.load %arg3[%c1_72, %c0_73, %c0_74] : memref<2x1x96xf32, #tpu.memory_space<vmem>>, vector<1x1x96xf32>
    %176 = vector.shape_cast %175 : vector<1x1x96xf32> to vector<1x96xf32>
    %177 = vector.broadcast %176 : vector<1x96xf32> to vector<16x96xf32>
    %178 = arith.addf %174, %177 : vector<16x96xf32>
    %179 = vector.extract_strided_slice %178 {offsets = [0, 0], sizes = [16, 8], strides = [1, 1]} : vector<16x96xf32> to vector<16x8xf32>
    %180 = arith.truncf %179 : vector<16x8xf32> to vector<16x8xbf16>
    %181 = vector.extract_strided_slice %178 {offsets = [0, 32], sizes = [16, 8], strides = [1, 1]} : vector<16x96xf32> to vector<16x8xf32>
    %182 = arith.truncf %181 : vector<16x8xf32> to vector<16x8xbf16>
    %183 = vector.extract_strided_slice %178 {offsets = [0, 64], sizes = [16, 8], strides = [1, 1]} : vector<16x96xf32> to vector<16x8xf32>
    %184 = arith.truncf %183 : vector<16x8xf32> to vector<16x8xbf16>
    "tpu.trace_start"() <{level = 10 : i32, message = "qd,kd->qk"}> : () -> ()
    %cst_75 = arith.constant dense<0.000000e+00> : vector<16x16xf32>
    %185 = tpu.matmul %180, %182, %cst_75 {dimension_numbers = #tpu.dot_dimension_numbers<[1], [1], [0], [0], [0, 0, 1, 0], [], []>} : vector<16x8xbf16>, vector<16x8xbf16>, vector<16x16xf32> -> vector<16x16xf32>
    "tpu.trace_stop"() : () -> ()
    %186 = arith.addf %185, %1 : vector<16x16xf32>
    %cst_76 = arith.constant dense<0xFF800000> : vector<16xf32>
    %187 = vector.multi_reduction <maximumf>, %186, %cst_76 [1] : vector<16x16xf32> to vector<16xf32>
    %188 = vector.shape_cast %187 : vector<16xf32> to vector<16x1xf32>
    %189 = vector.broadcast %188 : vector<16x1xf32> to vector<16x16xf32>
    %190 = arith.subf %186, %189 : vector<16x16xf32>
    %191 = math.exp %190 : vector<16x16xf32>
    %cst_77 = arith.constant dense<0.000000e+00> : vector<16xf32>
    %192 = vector.multi_reduction <add>, %191, %cst_77 [1] : vector<16x16xf32> to vector<16xf32>
    %193 = vector.shape_cast %192 : vector<16xf32> to vector<16x1xf32>
    %194 = tpu.reciprocal %193 {approx = true} : vector<16x1xf32> -> vector<16x1xf32>
    %195 = vector.broadcast %194 : vector<16x1xf32> to vector<16x16xf32>
    %196 = arith.mulf %191, %195 : vector<16x16xf32>
    %197 = arith.truncf %196 : vector<16x16xf32> to vector<16x16xbf16>
    %cst_78 = arith.constant dense<0.000000e+00> : vector<16x8xf32>
    %198 = tpu.matmul %197, %184, %cst_78 {dimension_numbers = #tpu.dot_dimension_numbers<[1], [0], [0], [1], [0, 0, 1, 1], [], []>} : vector<16x16xbf16>, vector<16x8xbf16>, vector<16x8xf32> -> vector<16x8xf32>
    %199 = vector.extract_strided_slice %178 {offsets = [0, 8], sizes = [16, 8], strides = [1, 1]} : vector<16x96xf32> to vector<16x8xf32>
    %200 = arith.truncf %199 : vector<16x8xf32> to vector<16x8xbf16>
    %201 = vector.extract_strided_slice %178 {offsets = [0, 40], sizes = [16, 8], strides = [1, 1]} : vector<16x96xf32> to vector<16x8xf32>
    %202 = arith.truncf %201 : vector<16x8xf32> to vector<16x8xbf16>
    %203 = vector.extract_strided_slice %178 {offsets = [0, 72], sizes = [16, 8], strides = [1, 1]} : vector<16x96xf32> to vector<16x8xf32>
    %204 = arith.truncf %203 : vector<16x8xf32> to vector<16x8xbf16>
    "tpu.trace_start"() <{level = 10 : i32, message = "qd,kd->qk"}> : () -> ()
    %cst_79 = arith.constant dense<0.000000e+00> : vector<16x16xf32>
    %205 = tpu.matmul %200, %202, %cst_79 {dimension_numbers = #tpu.dot_dimension_numbers<[1], [1], [0], [0], [0, 0, 1, 0], [], []>} : vector<16x8xbf16>, vector<16x8xbf16>, vector<16x16xf32> -> vector<16x16xf32>
    "tpu.trace_stop"() : () -> ()
    %206 = arith.addf %205, %1 : vector<16x16xf32>
    %cst_80 = arith.constant dense<0xFF800000> : vector<16xf32>
    %207 = vector.multi_reduction <maximumf>, %206, %cst_80 [1] : vector<16x16xf32> to vector<16xf32>
    %208 = vector.shape_cast %207 : vector<16xf32> to vector<16x1xf32>
    %209 = vector.broadcast %208 : vector<16x1xf32> to vector<16x16xf32>
    %210 = arith.subf %206, %209 : vector<16x16xf32>
    %211 = math.exp %210 : vector<16x16xf32>
    %cst_81 = arith.constant dense<0.000000e+00> : vector<16xf32>
    %212 = vector.multi_reduction <add>, %211, %cst_81 [1] : vector<16x16xf32> to vector<16xf32>
    %213 = vector.shape_cast %212 : vector<16xf32> to vector<16x1xf32>
    %214 = tpu.reciprocal %213 {approx = true} : vector<16x1xf32> -> vector<16x1xf32>
    %215 = vector.broadcast %214 : vector<16x1xf32> to vector<16x16xf32>
    %216 = arith.mulf %211, %215 : vector<16x16xf32>
    %217 = arith.truncf %216 : vector<16x16xf32> to vector<16x16xbf16>
    %cst_82 = arith.constant dense<0.000000e+00> : vector<16x8xf32>
    %218 = tpu.matmul %217, %204, %cst_82 {dimension_numbers = #tpu.dot_dimension_numbers<[1], [0], [0], [1], [0, 0, 1, 1], [], []>} : vector<16x16xbf16>, vector<16x8xbf16>, vector<16x8xf32> -> vector<16x8xf32>
    %219 = vector.extract_strided_slice %178 {offsets = [0, 16], sizes = [16, 8], strides = [1, 1]} : vector<16x96xf32> to vector<16x8xf32>
    %220 = arith.truncf %219 : vector<16x8xf32> to vector<16x8xbf16>
    %221 = vector.extract_strided_slice %178 {offsets = [0, 48], sizes = [16, 8], strides = [1, 1]} : vector<16x96xf32> to vector<16x8xf32>
    %222 = arith.truncf %221 : vector<16x8xf32> to vector<16x8xbf16>
    %223 = vector.extract_strided_slice %178 {offsets = [0, 80], sizes = [16, 8], strides = [1, 1]} : vector<16x96xf32> to vector<16x8xf32>
    %224 = arith.truncf %223 : vector<16x8xf32> to vector<16x8xbf16>
    "tpu.trace_start"() <{level = 10 : i32, message = "qd,kd->qk"}> : () -> ()
    %cst_83 = arith.constant dense<0.000000e+00> : vector<16x16xf32>
    %225 = tpu.matmul %220, %222, %cst_83 {dimension_numbers = #tpu.dot_dimension_numbers<[1], [1], [0], [0], [0, 0, 1, 0], [], []>} : vector<16x8xbf16>, vector<16x8xbf16>, vector<16x16xf32> -> vector<16x16xf32>
    "tpu.trace_stop"() : () -> ()
    %226 = arith.addf %225, %1 : vector<16x16xf32>
    %cst_84 = arith.constant dense<0xFF800000> : vector<16xf32>
    %227 = vector.multi_reduction <maximumf>, %226, %cst_84 [1] : vector<16x16xf32> to vector<16xf32>
    %228 = vector.shape_cast %227 : vector<16xf32> to vector<16x1xf32>
    %229 = vector.broadcast %228 : vector<16x1xf32> to vector<16x16xf32>
    %230 = arith.subf %226, %229 : vector<16x16xf32>
    %231 = math.exp %230 : vector<16x16xf32>
    %cst_85 = arith.constant dense<0.000000e+00> : vector<16xf32>
    %232 = vector.multi_reduction <add>, %231, %cst_85 [1] : vector<16x16xf32> to vector<16xf32>
    %233 = vector.shape_cast %232 : vector<16xf32> to vector<16x1xf32>
    %234 = tpu.reciprocal %233 {approx = true} : vector<16x1xf32> -> vector<16x1xf32>
    %235 = vector.broadcast %234 : vector<16x1xf32> to vector<16x16xf32>
    %236 = arith.mulf %231, %235 : vector<16x16xf32>
    %237 = arith.truncf %236 : vector<16x16xf32> to vector<16x16xbf16>
    %cst_86 = arith.constant dense<0.000000e+00> : vector<16x8xf32>
    %238 = tpu.matmul %237, %224, %cst_86 {dimension_numbers = #tpu.dot_dimension_numbers<[1], [0], [0], [1], [0, 0, 1, 1], [], []>} : vector<16x16xbf16>, vector<16x8xbf16>, vector<16x8xf32> -> vector<16x8xf32>
    %239 = vector.extract_strided_slice %178 {offsets = [0, 24], sizes = [16, 8], strides = [1, 1]} : vector<16x96xf32> to vector<16x8xf32>
    %240 = arith.truncf %239 : vector<16x8xf32> to vector<16x8xbf16>
    %241 = vector.extract_strided_slice %178 {offsets = [0, 56], sizes = [16, 8], strides = [1, 1]} : vector<16x96xf32> to vector<16x8xf32>
    %242 = arith.truncf %241 : vector<16x8xf32> to vector<16x8xbf16>
    %243 = vector.extract_strided_slice %178 {offsets = [0, 88], sizes = [16, 8], strides = [1, 1]} : vector<16x96xf32> to vector<16x8xf32>
    %244 = arith.truncf %243 : vector<16x8xf32> to vector<16x8xbf16>
    "tpu.trace_start"() <{level = 10 : i32, message = "qd,kd->qk"}> : () -> ()
    %cst_87 = arith.constant dense<0.000000e+00> : vector<16x16xf32>
    %245 = tpu.matmul %240, %242, %cst_87 {dimension_numbers = #tpu.dot_dimension_numbers<[1], [1], [0], [0], [0, 0, 1, 0], [], []>} : vector<16x8xbf16>, vector<16x8xbf16>, vector<16x16xf32> -> vector<16x16xf32>
    "tpu.trace_stop"() : () -> ()
    %246 = arith.addf %245, %1 : vector<16x16xf32>
    %cst_88 = arith.constant dense<0xFF800000> : vector<16xf32>
    %247 = vector.multi_reduction <maximumf>, %246, %cst_88 [1] : vector<16x16xf32> to vector<16xf32>
    %248 = vector.shape_cast %247 : vector<16xf32> to vector<16x1xf32>
    %249 = vector.broadcast %248 : vector<16x1xf32> to vector<16x16xf32>
    %250 = arith.subf %246, %249 : vector<16x16xf32>
    %251 = math.exp %250 : vector<16x16xf32>
    %cst_89 = arith.constant dense<0.000000e+00> : vector<16xf32>
    %252 = vector.multi_reduction <add>, %251, %cst_89 [1] : vector<16x16xf32> to vector<16xf32>
    %253 = vector.shape_cast %252 : vector<16xf32> to vector<16x1xf32>
    %254 = tpu.reciprocal %253 {approx = true} : vector<16x1xf32> -> vector<16x1xf32>
    %255 = vector.broadcast %254 : vector<16x1xf32> to vector<16x16xf32>
    %256 = arith.mulf %251, %255 : vector<16x16xf32>
    %257 = arith.truncf %256 : vector<16x16xf32> to vector<16x16xbf16>
    %cst_90 = arith.constant dense<0.000000e+00> : vector<16x8xf32>
    %258 = tpu.matmul %257, %244, %cst_90 {dimension_numbers = #tpu.dot_dimension_numbers<[1], [0], [0], [1], [0, 0, 1, 1], [], []>} : vector<16x16xbf16>, vector<16x8xbf16>, vector<16x8xf32> -> vector<16x8xf32>
    %259 = tpu.concatenate %198, %218, %238, %258 in 1 : vector<16x8xf32>, vector<16x8xf32>, vector<16x8xf32>, vector<16x8xf32> -> vector<16x32xf32>
    %260 = arith.truncf %259 : vector<16x32xf32> to vector<16x32xbf16>
    %c1_91 = arith.constant 1 : index
    %c0_92 = arith.constant 0 : index
    %c0_93 = arith.constant 0 : index
    %261 = vector.load %arg4[%c1_91, %c0_92, %c0_93] : memref<2x32x32xbf16, #tpu.memory_space<vmem>>, vector<1x32x32xbf16>
    %262 = vector.shape_cast %261 : vector<1x32x32xbf16> to vector<32x32xbf16>
    %cst_94 = arith.constant dense<0.000000e+00> : vector<16x32xf32>
    %263 = tpu.matmul %260, %262, %cst_94 {dimension_numbers = #tpu.dot_dimension_numbers<[1], [0], [0], [1], [0, 0, 1, 1], [], []>} : vector<16x32xbf16>, vector<32x32xbf16>, vector<16x32xf32> -> vector<16x32xf32>
    %c1_95 = arith.constant 1 : index
    %c0_96 = arith.constant 0 : index
    %c0_97 = arith.constant 0 : index
    %264 = vector.load %arg5[%c1_95, %c0_96, %c0_97] : memref<2x1x32xf32, #tpu.memory_space<vmem>>, vector<1x1x32xf32>
    %265 = vector.shape_cast %264 : vector<1x1x32xf32> to vector<1x32xf32>
    %266 = vector.broadcast %265 : vector<1x32xf32> to vector<16x32xf32>
    %267 = arith.addf %263, %266 : vector<16x32xf32>
    %268 = arith.addf %170, %267 : vector<16x32xf32>
    %c1_98 = arith.constant 1 : index
    %c0_99 = arith.constant 0 : index
    %c0_100 = arith.constant 0 : index
    %269 = vector.load %arg10[%c1_98, %c0_99, %c0_100] : memref<2x1x32xf32, #tpu.memory_space<vmem>>, vector<1x1x32xf32>
    %270 = vector.shape_cast %269 : vector<1x1x32xf32> to vector<1x32xf32>
    %c1_101 = arith.constant 1 : index
    %c0_102 = arith.constant 0 : index
    %c0_103 = arith.constant 0 : index
    %271 = vector.load %arg11[%c1_101, %c0_102, %c0_103] : memref<2x1x32xf32, #tpu.memory_space<vmem>>, vector<1x1x32xf32>
    %272 = vector.shape_cast %271 : vector<1x1x32xf32> to vector<1x32xf32>
    %cst_104 = arith.constant dense<0.000000e+00> : vector<16xf32>
    %273 = vector.multi_reduction <add>, %268, %cst_104 [1] : vector<16x32xf32> to vector<16xf32>
    %274 = vector.shape_cast %273 : vector<16xf32> to vector<16x1xf32>
    %cst_105 = arith.constant 3.200000e+01 : f32
    %275 = vector.broadcast %cst_105 : f32 to vector<16x1xf32>
    %276 = arith.divf %274, %275 : vector<16x1xf32>
    %277 = vector.broadcast %276 : vector<16x1xf32> to vector<16x32xf32>
    %278 = arith.subf %268, %277 : vector<16x32xf32>
    %279 = arith.mulf %278, %278 : vector<16x32xf32>
    %cst_106 = arith.constant dense<0.000000e+00> : vector<16xf32>
    %280 = vector.multi_reduction <add>, %279, %cst_106 [1] : vector<16x32xf32> to vector<16xf32>
    %281 = vector.shape_cast %280 : vector<16xf32> to vector<16x1xf32>
    %cst_107 = arith.constant 3.200000e+01 : f32
    %282 = vector.broadcast %cst_107 : f32 to vector<16x1xf32>
    %283 = arith.divf %281, %282 : vector<16x1xf32>
    %284 = vector.broadcast %276 : vector<16x1xf32> to vector<16x32xf32>
    %285 = arith.subf %268, %284 : vector<16x32xf32>
    %cst_108 = arith.constant 9.99999974E-6 : f32
    %286 = vector.broadcast %cst_108 : f32 to vector<16x1xf32>
    %287 = arith.addf %283, %286 : vector<16x1xf32>
    %288 = math.rsqrt %287 : vector<16x1xf32>
    %289 = vector.broadcast %288 : vector<16x1xf32> to vector<16x32xf32>
    %290 = arith.mulf %285, %289 : vector<16x32xf32>
    %291 = vector.broadcast %270 : vector<1x32xf32> to vector<16x32xf32>
    %292 = arith.mulf %290, %291 : vector<16x32xf32>
    %293 = vector.broadcast %272 : vector<1x32xf32> to vector<16x32xf32>
    %294 = arith.addf %292, %293 : vector<16x32xf32>
    %295 = arith.truncf %294 : vector<16x32xf32> to vector<16x32xbf16>
    %c1_109 = arith.constant 1 : index
    %c0_110 = arith.constant 0 : index
    %c0_111 = arith.constant 0 : index
    %296 = vector.load %arg6[%c1_109, %c0_110, %c0_111] : memref<2x32x2048xbf16, #tpu.memory_space<vmem>>, vector<1x32x2048xbf16>
    %297 = vector.shape_cast %296 : vector<1x32x2048xbf16> to vector<32x2048xbf16>
    %cst_112 = arith.constant dense<0.000000e+00> : vector<16x2048xf32>
    %298 = tpu.matmul %295, %297, %cst_112 {dimension_numbers = #tpu.dot_dimension_numbers<[1], [0], [0], [1], [0, 0, 1, 1], [], []>} : vector<16x32xbf16>, vector<32x2048xbf16>, vector<16x2048xf32> -> vector<16x2048xf32>
    %c1_113 = arith.constant 1 : index
    %c0_114 = arith.constant 0 : index
    %c0_115 = arith.constant 0 : index
    %299 = vector.load %arg7[%c1_113, %c0_114, %c0_115] : memref<2x1x2048xf32, #tpu.memory_space<vmem>>, vector<1x1x2048xf32>
    %300 = vector.shape_cast %299 : vector<1x1x2048xf32> to vector<1x2048xf32>
    %301 = vector.broadcast %300 : vector<1x2048xf32> to vector<16x2048xf32>
    %302 = arith.addf %298, %301 : vector<16x2048xf32>
    %cst_116 = arith.constant 0.000000e+00 : f32
    %303 = vector.broadcast %cst_116 : f32 to vector<16x2048xf32>
    %304 = arith.maximumf %302, %303 : vector<16x2048xf32>
    %305 = arith.truncf %304 : vector<16x2048xf32> to vector<16x2048xbf16>
    %c1_117 = arith.constant 1 : index
    %c0_118 = arith.constant 0 : index
    %c0_119 = arith.constant 0 : index
    %306 = vector.load %arg8[%c1_117, %c0_118, %c0_119] : memref<2x2048x32xbf16, #tpu.memory_space<vmem>>, vector<1x2048x32xbf16>
    %307 = vector.shape_cast %306 : vector<1x2048x32xbf16> to vector<2048x32xbf16>
    %cst_120 = arith.constant dense<0.000000e+00> : vector<16x32xf32>
    %308 = tpu.matmul %305, %307, %cst_120 {dimension_numbers = #tpu.dot_dimension_numbers<[1], [0], [0], [1], [0, 0, 1, 1], [], []>} : vector<16x2048xbf16>, vector<2048x32xbf16>, vector<16x32xf32> -> vector<16x32xf32>
    %c1_121 = arith.constant 1 : index
    %c0_122 = arith.constant 0 : index
    %c0_123 = arith.constant 0 : index
    %309 = vector.load %arg9[%c1_121, %c0_122, %c0_123] : memref<2x1x32xf32, #tpu.memory_space<vmem>>, vector<1x1x32xf32>
    %310 = vector.shape_cast %309 : vector<1x1x32xf32> to vector<1x32xf32>
    %311 = vector.broadcast %310 : vector<1x32xf32> to vector<16x32xf32>
    %312 = arith.addf %308, %311 : vector<16x32xf32>
    %313 = arith.addf %294, %312 : vector<16x32xf32>
    %c1_124 = arith.constant 1 : index
    %c0_125 = arith.constant 0 : index
    %c0_126 = arith.constant 0 : index
    %314 = vector.load %arg12[%c1_124, %c0_125, %c0_126] : memref<2x1x32xf32, #tpu.memory_space<vmem>>, vector<1x1x32xf32>
    %315 = vector.shape_cast %314 : vector<1x1x32xf32> to vector<1x32xf32>
    %c1_127 = arith.constant 1 : index
    %c0_128 = arith.constant 0 : index
    %c0_129 = arith.constant 0 : index
    %316 = vector.load %arg13[%c1_127, %c0_128, %c0_129] : memref<2x1x32xf32, #tpu.memory_space<vmem>>, vector<1x1x32xf32>
    %317 = vector.shape_cast %316 : vector<1x1x32xf32> to vector<1x32xf32>
    %cst_130 = arith.constant dense<0.000000e+00> : vector<16xf32>
    %318 = vector.multi_reduction <add>, %313, %cst_130 [1] : vector<16x32xf32> to vector<16xf32>
    %319 = vector.shape_cast %318 : vector<16xf32> to vector<16x1xf32>
    %cst_131 = arith.constant 3.200000e+01 : f32
    %320 = vector.broadcast %cst_131 : f32 to vector<16x1xf32>
    %321 = arith.divf %319, %320 : vector<16x1xf32>
    %322 = vector.broadcast %321 : vector<16x1xf32> to vector<16x32xf32>
    %323 = arith.subf %313, %322 : vector<16x32xf32>
    %324 = arith.mulf %323, %323 : vector<16x32xf32>
    %cst_132 = arith.constant dense<0.000000e+00> : vector<16xf32>
    %325 = vector.multi_reduction <add>, %324, %cst_132 [1] : vector<16x32xf32> to vector<16xf32>
    %326 = vector.shape_cast %325 : vector<16xf32> to vector<16x1xf32>
    %cst_133 = arith.constant 3.200000e+01 : f32
    %327 = vector.broadcast %cst_133 : f32 to vector<16x1xf32>
    %328 = arith.divf %326, %327 : vector<16x1xf32>
    %329 = vector.broadcast %321 : vector<16x1xf32> to vector<16x32xf32>
    %330 = arith.subf %313, %329 : vector<16x32xf32>
    %cst_134 = arith.constant 9.99999974E-6 : f32
    %331 = vector.broadcast %cst_134 : f32 to vector<16x1xf32>
    %332 = arith.addf %328, %331 : vector<16x1xf32>
    %333 = math.rsqrt %332 : vector<16x1xf32>
    %334 = vector.broadcast %333 : vector<16x1xf32> to vector<16x32xf32>
    %335 = arith.mulf %330, %334 : vector<16x32xf32>
    %336 = vector.broadcast %315 : vector<1x32xf32> to vector<16x32xf32>
    %337 = arith.mulf %335, %336 : vector<16x32xf32>
    %338 = vector.broadcast %317 : vector<1x32xf32> to vector<16x32xf32>
    %339 = arith.addf %337, %338 : vector<16x32xf32>
    %340 = arith.truncf %339 : vector<16x32xf32> to vector<16x32xbf16>
    %c0_135 = arith.constant 0 : index
    %c0_136 = arith.constant 0 : index
    %341 = vector.load %arg14[%c0_135, %c0_136] : memref<32x128xbf16, #tpu.memory_space<vmem>>, vector<32x128xbf16>
    %cst_137 = arith.constant dense<0.000000e+00> : vector<16x128xf32>
    %342 = tpu.matmul %340, %341, %cst_137 {dimension_numbers = #tpu.dot_dimension_numbers<[1], [0], [0], [1], [0, 0, 1, 1], [], []>} : vector<16x32xbf16>, vector<32x128xbf16>, vector<16x128xf32> -> vector<16x128xf32>
    %c0_138 = arith.constant 0 : index
    %c0_139 = arith.constant 0 : index
    %343 = vector.load %arg15[%c0_138, %c0_139] : memref<1x128xf32, #tpu.memory_space<vmem>>, vector<1x128xf32>
    %344 = vector.broadcast %343 : vector<1x128xf32> to vector<16x128xf32>
    %345 = arith.addf %342, %344 : vector<16x128xf32>
    %c0_140 = arith.constant 0 : index
    %c0_141 = arith.constant 0 : index
    %346 = vector.load %arg16[%c0_140, %c0_141] : memref<16x128xf32, #tpu.memory_space<vmem>>, vector<16x128xf32>
    tpu.vector_store %arg16[%c0_140, %c0_141], %345 {strides = array<i32>} : memref<16x128xf32, #tpu.memory_space<vmem>>, vector<16x128xf32>,
    return
  }
}

</mosaic_0001>

<bundles_post_ra>
// kernel: vae_transformer_decoder.1
= control target key start
LH: loop header
LB: loop body
LE: loop exit
PB: predicated region body
PF: predicated region fallthrough
CT: control target
= control target key end

     0   :  { %v7312_v0 = vmov 0.0   ;;  %vm7313_vm0 = vmmov 0   ;;  %vm82_vm1 = vcmask 261120   ;;  %s7315_s17 = smov 96   ;;  %s8948_s18 = smov 80   ;;  %vm131_vm2 = vcmask 64512   ;;  %s8922_s2 = inlined_call_operand.vmem [shape: bf16[2,32,96], index: 2, kind: input, shape index: {}]   ;;  %s8923_s0 = inlined_call_operand.vmem [shape: f32[16,32], index: 0, kind: input, shape index: {}]   ;;  %s8924_s3 = inlined_call_operand.vmem [shape: f32[2,1,96], index: 3, kind: input, shape index: {}]   ;;  %s8925_s1 = inlined_call_operand.vmem [shape: f32[16,16], index: 1, kind: input, shape index: {}]   ;;  %s8926_s4 = inlined_call_operand.vmem [shape: bf16[2,32,32], index: 4, kind: input, shape index: {}]   ;;  %s8927_s5 = inlined_call_operand.vmem [shape: f32[2,1,32], index: 5, kind: input, shape index: {}]   ;;  %s8928_s6 = inlined_call_operand.vmem [shape: bf16[2,32,2048], index: 6, kind: input, shape index: {}]   ;;  %s8929_s8 = inlined_call_operand.vmem [shape: bf16[2,2048,32], index: 8, kind: input, shape index: {}]   ;;  %s8930_s10 = inlined_call_operand.vmem [shape: f32[2,1,32], index: 10, kind: input, shape index: {}]   ;;  %s8931_s11 = inlined_call_operand.vmem [shape: f32[2,1,32], index: 11, kind: input, shape index: {}]   ;;  %s8932_s7 = inlined_call_operand.vmem [shape: f32[2,1,2048], index: 7, kind: input, shape index: {}]   ;;  %s8933_s9 = inlined_call_operand.vmem [shape: f32[2,1,32], index: 9, kind: input, shape index: {}]   ;;  %s8934_s12 = inlined_call_operand.vmem [shape: f32[2,1,32], index: 12, kind: input, shape index: {}]   ;;  %s8935_s13 = inlined_call_operand.vmem [shape: f32[2,1,32], index: 13, kind: input, shape index: {}]   ;;  %s8936_s14 = inlined_call_operand.vmem [shape: bf16[32,128], index: 14, kind: input, shape index: {}]   ;;  %s8937_s15 = inlined_call_operand.vmem [shape: f32[1,128], index: 15, kind: input, shape index: {}]   ;;  %s8938_s16 = inlined_call_operand.vmem [shape: f32[16,128], index: 16, kind: output, shape index: {}]  }
   0x1   :  { %8949 = sst [smem:[#allocation2_spill]] %s8922_s2  ;;  %6781 = vmatprep.subr.bf16.mxu0 %v7312_v0  ;;  %6785 = vmatprep.mubr.msk.bf16.mxu0 %vm7313_vm0, %v7312_v0  ;;  %v7429_v3 = vld [vmem:[%s8923_s0] sm:$0xff]  ;;  %v7434_v4 = vld [vmem:[%s8923_s0 + $0x8] sm:$0xff]  ;;  %s7314_s0 = smov 120   ;;  %vm179_vm3 = vcmask 130048   ;;  %vm641_vm4 = vcmask 195584  }
   0x2   :  { %s8950_s23 = sld [smem:[#allocation2_spill]]  ;;  %6789 = vmatprep.subr.bf16.mxu1 %v7312_v0  ;;  %6791 = vmatprep.mubr.msk.bf16.mxu1 %vm7313_vm0, %v7312_v0  ;;  %v58_v5 = vpack.c.bf16 %v7434_v4, %v7429_v3  ;;  %v5695_v6 = vld [vmem:[%s8924_s3] ss:$0 sm:$0xff]  ;;  %s7317_s19 = smov 88   ;;  %v57_v27 = vld [vmem:[%s8925_s1 + $0x8] sm:$0xff] }
   0x3   :  { %s8947_s20 = smov 72   ;;  %s7319_s21 = smov 112   ;;  %v56_v25 = vld [vmem:[%s8925_s1] sm:$0xff] }
   0x4   :  { %s7320_s22 = smov 104   ;;  %s8946_s28 = smov 56  }
   0x5   :  { %s8945_s29 = smov 64   ;;  %s8941_s30 = smov 48  }
   0x6   :  { %s8940_s2 = smov 40   ;;  %s8944_s26 = smov 8  }
   0x7   :  { %s8942_s24 = smov 24   ;;  %s8957_s27 = smov 8  }
   0x8   :  { %v6964_v1 = vld [vmem:[%s8950_s23] sm:$0xff]   ;;  %v6965_v2 = vld [vmem:[%s8950_s23 + $0x8] sm:$0xff]   ;;  %s8959_s25 = smov 24  }
   0x9   :  { %6782 = vmatpush3.bf16.msra.mxu0 %v6964_v1 }
   0xa   :  { %6783 = vmatprep.subr.bf16.mxu0 %v7312_v0 }
   0xd   :  { %6784 = vmatpush3.bf16.msra.mxu0 %v6965_v2 }
   0xe   :  { %6795 = vmatprep.subr.bf16.mxu0 %v7312_v0 }
  0x10   :  { %6786 = vmatmul.mubr.msk.bf16.vlgmr.msra.gmra.mrb[0].mxu0 %vm82_vm1, %v58_v5 }
  0x11   :  { %6797 = vmatprep.mubr.msk.bf16.mxu0 %vm7313_vm0, %v7312_v0 }
  0xe3   :  { %v120_v7 = vpop.f32.mrb[0].mxu0 }
  0xe4   :  { %v6787_v8 = vpop.f32.mrb[1].mxu0  ;;  %v121_v10 = vadd.f32 %v5695_v6, %v120_v7 }
  0xe5   :  { %v123_v9 = vpop.f32.mrb[2].mxu0 }
  0xe6   :  { %v124_v11 = vadd.f32 %v5695_v6, %v123_v9  ;;  %v6788_v12 = vpop.f32.mrb[3].mxu0 }
  0xe8   :  { %v7446_v13 = vpack.c.bf16 %v124_v11, %v121_v10 }
  0xea   :  { %250 = vrot.lane.b32.xlu1 %v7446_v13, %s7314_s0  ;;  %129 = vrot.lane.b32.xlu0 %v7446_v13, %s7315_s17 }
  0xee   :  { %373 = vrot.lane.b32.xlu1 %v7446_v13, %s8948_s18  ;;  %252 = vrot.lane.b32.xlu0 %v7446_v13, %s7317_s19  ;;  %s8956_s18 = smov 40  }
  0xf2   :  { %494 = vrot.lane.b32.xlu1 %v7446_v13, %s8947_s20  ;;  %371 = vrot.lane.b32.xlu0 %v7446_v13, %s7319_s21 }
  0xf6   :  { %492 = vrot.lane.b32.xlu0 %v7446_v13, %s7320_s22 }
 0x15c   :  { %v130_v14 = vpop.permute.xlu0 %129  ;;  %v251_v17 = vpop.permute.xlu1 %250 }
 0x15d   :  { %v136_v15 = vsel %vm131_vm2, %v130_v14, 0 }
 0x15e   :  { %6790 = vmatpush3.bf16.xpose.msra.mxu1 %v136_v15 }
 0x15f   :  { %6801 = vmatprep.subr.bf16.mxu1 %v7312_v0 }
 0x160   :  { %v253_v16 = vpop.permute.xlu0 %252  ;;  %v374_v19 = vpop.permute.xlu1 %373 }
 0x161   :  { %v258_v18 = vsel %vm131_vm2, %v253_v16, 0  ;;  %v379_v20 = vsel %vm131_vm2, %v374_v19, 0 }
 0x164   :  { %v495_v21 = vpop.permute.xlu1 %494  ;;  %v372_v22 = vpop.permute.xlu0 %371 }
 0x165   :  { %6792 = vmatmul.mubr.msk.bf16.vlgmr.msra.gmra.mrb[0].mxu1 %vm131_vm2, %v7446_v13  ;;  %v500_v23 = vsel %vm131_vm2, %v495_v21, 0 }
 0x166   :  { %6802 = vmatpush3.bf16.xpose.msra.mxu1 %v258_v18  ;;  %6803 = vmatprep.mubr.msk.bf16.mxu1 %vm7313_vm0, %v7312_v0 }
 0x167   :  { %6813 = vmatprep.subr.bf16.mxu1 %v7312_v0 }
 0x168   :  { %v493_v24 = vpop.permute.xlu0 %492 }
 0x16d   :  { %6804 = vmatmul.mubr.msk.bf16.vlgmr.msra.gmra.mrb[4].mxu1 %vm131_vm2, %v251_v17 }
 0x16e   :  { %6814 = vmatpush3.bf16.xpose.msra.mxu1 %v379_v20  ;;  %6815 = vmatprep.mubr.msk.bf16.mxu1 %vm7313_vm0, %v7312_v0 }
 0x16f   :  { %6825 = vmatprep.subr.bf16.mxu1 %v7312_v0 }
 0x175   :  { %6816 = vmatmul.mubr.msk.bf16.vlgmr.msra.gmra.mrb[8].mxu1 %vm131_vm2, %v372_v22 }
 0x176   :  { %6826 = vmatpush3.bf16.xpose.msra.mxu1 %v500_v23  ;;  %6827 = vmatprep.mubr.msk.bf16.mxu1 %vm7313_vm0, %v7312_v0 }
 0x177   :  { %6837 = vmatprep.subr.bf16.mxu1 %v7312_v0 }
 0x17d   :  { %6828 = vmatmul.mubr.msk.bf16.vlgmr.msra.gmra.mrb[12].mxu1 %vm131_vm2, %v493_v24 }
 0x17e   :  { %6841 = vmatprep.mubr.msk.bf16.mxu1 %vm7313_vm0, %v7312_v0 }
 0x238   :  { %v172_v26 = vpop.f32.mrb[0].mxu1 }
 0x239   :  { %v173_v28 = vadd.f32 %v172_v26, %v56_v25  ;;  %v6793_v29 = vpop.f32.mrb[1].mxu1 }
 0x23a   :  { %v175_v30 = vpop.f32.mrb[2].mxu1 }
 0x23b   :  { %v176_v31 = vadd.f32 %v175_v30, %v57_v27  ;;  %v6794_v32 = vpop.f32.mrb[3].mxu1  ;;  %v180_v33 = vsel %vm179_vm3, %v173_v28, -inf }
 0x23c   :  { %181 = vmax.xlane.f32.xlu1 %v180_v33 }
 0x23d   :  { %v183_v34 = vsel %vm179_vm3, %v176_v31, -inf }
 0x23e   :  { %184 = vmax.xlane.f32.xlu0 %v183_v34 }
 0x240   :  { %v294_v35 = vpop.f32.mrb[4].mxu1 }
 0x241   :  { %v295_v36 = vadd.f32 %v294_v35, %v56_v25  ;;  %v6805_v37 = vpop.f32.mrb[5].mxu1 }
 0x242   :  { %v297_v38 = vpop.f32.mrb[6].mxu1 }
 0x243   :  { %v298_v39 = vadd.f32 %v297_v38, %v57_v27  ;;  %v6806_v40 = vpop.f32.mrb[7].mxu1  ;;  %v301_v41 = vsel %vm179_vm3, %v295_v36, -inf }
 0x244   :  { %302 = vmax.xlane.f32.xlu0 %v301_v41 }
 0x245   :  { %v304_v42 = vsel %vm179_vm3, %v298_v39, -inf }
 0x246   :  { %305 = vmax.xlane.f32.xlu1 %v304_v42 }
 0x248   :  { %v415_v43 = vpop.f32.mrb[8].mxu1 }
 0x249   :  { %v416_v44 = vadd.f32 %v415_v43, %v56_v25  ;;  %v6817_v45 = vpop.f32.mrb[9].mxu1 }
 0x24a   :  { %v418_v46 = vpop.f32.mrb[10].mxu1 }
 0x24b   :  { %v419_v47 = vadd.f32 %v418_v46, %v57_v27  ;;  %v6818_v48 = vpop.f32.mrb[11].mxu1  ;;  %v422_v49 = vsel %vm179_vm3, %v416_v44, -inf }
 0x24c   :  { %423 = vmax.xlane.f32.xlu0 %v422_v49 }
 0x24d   :  { %v425_v50 = vsel %vm179_vm3, %v419_v47, -inf }
 0x24e   :  { %426 = vmax.xlane.f32.xlu1 %v425_v50 }
 0x250   :  { %v536_v51 = vpop.f32.mrb[12].mxu1 }
 0x251   :  { %v537_v52 = vadd.f32 %v536_v51, %v56_v25  ;;  %v6829_v53 = vpop.f32.mrb[13].mxu1 }
 0x252   :  { %v539_v54 = vpop.f32.mrb[14].mxu1 }
 0x253   :  { %v540_v55 = vadd.f32 %v539_v54, %v57_v27  ;;  %v6830_v56 = vpop.f32.mrb[15].mxu1  ;;  %v543_v57 = vsel %vm179_vm3, %v537_v52, -inf }
 0x254   :  { %544 = vmax.xlane.f32.xlu0 %v543_v57 }
 0x255   :  { %v546_v58 = vsel %vm179_vm3, %v540_v55, -inf }
 0x256   :  { %547 = vmax.xlane.f32.xlu1 %v546_v58 }
 0x2c9   :  { %v182_v59 = vpop.xlane.xlu1 %181 }
 0x2ca   :  { %v186_v60 = vsub.f32 %v173_v28, %v182_v59 }
 0x2cb   :  { %v185_v61 = vpop.xlane.xlu0 %184 }
 0x2cc   :  { %v188_v62 = vmul.f32 1.442695, %v186_v60  ;;  %v187_v63 = vsub.f32 %v176_v31, %v185_v61 }
 0x2ce   :  { %7230 = vpow2.f32 %v188_v62  ;;  %v190_v1 = vmul.f32 1.442695, %v187_v63 }
 0x2d0   :  { %7232 = vpow2.f32 %v190_v1 }
 0x2d1   :  { %v303_v2 = vpop.xlane.xlu0 %302 }
 0x2d2   :  { %v307_v5 = vsub.f32 %v295_v36, %v303_v2 }
 0x2d3   :  { %v306_v14 = vpop.xlane.xlu1 %305 }
 0x2d4   :  { %v309_v6 = vmul.f32 1.442695, %v307_v5  ;;  %v308_v15 = vsub.f32 %v298_v39, %v306_v14 }
 0x2d6   :  { %7234 = vpow2.f32 %v309_v6  ;;  %v311_v18 = vmul.f32 1.442695, %v308_v15 }
 0x2d8   :  { %v7231_v7 = vpop.eup %7230  ;;  %7236 = vpow2.f32 %v311_v18 }
 0x2d9   :  { %v192_v8 = vsel %vm179_vm3, %v7231_v7, 0.0  ;;  %v424_v17 = vpop.xlane.xlu0 %423 }
 0x2da   :  { %v7233_v9 = vpop.eup %7232  ;;  %193 = vadd.xlane.f32.xlu0 %v192_v8  ;;  %v428_v21 = vsub.f32 %v416_v44, %v424_v17 }
 0x2db   :  { %v195_v10 = vsel %vm179_vm3, %v7233_v9, 0.0  ;;  %v427_v16 = vpop.xlane.xlu1 %426 }
 0x2dc   :  { %196 = vadd.xlane.f32.xlu1 %v195_v10  ;;  %v429_v19 = vsub.f32 %v419_v47, %v427_v16  ;;  %v430_v25 = vmul.f32 1.442695, %v428_v21 }
 0x2de   :  { %v432_v23 = vmul.f32 1.442695, %v429_v19  ;;  %v6966_v19 = vld [vmem:[%s8926_s4] sm:$0xff]  }
 0x2df   :  { %6838 = vmatpush3.bf16.msra.mxu1 %v6966_v19 }
 0x2e0   :  { %v7499_v11 = vpop.eup %7234  ;;  %7238 = vpow2.f32 %v432_v23  ;;  %6839 = vmatprep.subr.bf16.mxu1 %v7312_v0 }
 0x2e1   :  { %v313_v12 = vsel %vm179_vm3, %v7499_v11, 0.0  ;;  %v545_v22 = vpop.xlane.xlu0 %544  ;;  %7240 = vpow2.f32 %v430_v25 }
 0x2e2   :  { %314 = vadd.xlane.f32.xlu0 %v313_v12  ;;  %v549_v26 = vsub.f32 %v537_v52, %v545_v22  ;;  %v7237_v29 = vpop.eup %7236  ;;  %v6967_v22 = vld [vmem:[%s8926_s4 + $0x8] sm:$0xff]  }
 0x2e3   :  { %v548_v20 = vpop.xlane.xlu1 %547  ;;  %v316_v30 = vsel %vm179_vm3, %v7237_v29, 0.0  ;;  %6840 = vmatpush3.bf16.msra.mxu1 %v6967_v22  ;;  %v770_v22 = vld [vmem:[%s8928_s6 + $0x50] sm:$0xff] }
 0x2e4   :  { %v550_v24 = vsub.f32 %v540_v55, %v548_v20  ;;  %v551_v28 = vmul.f32 1.442695, %v549_v26 }
 0x2e6   :  { %v553_v27 = vmul.f32 1.442695, %v550_v24 }
 0x2e8   :  { %7242 = vpow2.f32 %v553_v27 }
 0x2e9   :  { %7244 = vpow2.f32 %v551_v28 }
 0x2ea   :  { %v7239_v31 = vpop.eup %7238 }
 0x2eb   :  { %v7241_v32 = vpop.eup %7240  ;;  %v437_v33 = vsel %vm179_vm3, %v7239_v31, 0.0 }
 0x2ec   :  { %v434_v35 = vsel %vm179_vm3, %v7241_v32, 0.0 }
 0x2ed   :  { %324 = vrot.lane.b32.xlu1 %v7446_v13, %s8946_s28  ;;  %s8955_s28 = smov 48  }
 0x2f2   :  { %v7509_v34 = vpop.eup %7242 }
 0x2f3   :  { %v7245_v36 = vpop.eup %7244  ;;  %v558_v37 = vsel %vm179_vm3, %v7509_v34, 0.0 }
 0x2f4   :  { %v555_v38 = vsel %vm179_vm3, %v7245_v36, 0.0 }
 0x2f8   :  { %203 = vrot.lane.b32.xlu0 %v7446_v13, %s8945_s29 }
 0x311   :  { %317 = vadd.xlane.f32.xlu1 %v316_v30 }
 0x315   :  { %438 = vadd.xlane.f32.xlu1 %v437_v33 }
 0x317   :  { %435 = vadd.xlane.f32.xlu0 %v434_v35 }
 0x319   :  { %559 = vadd.xlane.f32.xlu1 %v558_v37 }
 0x31b   :  { %556 = vadd.xlane.f32.xlu0 %v555_v38 }
 0x32a   :  { %445 = vrot.lane.b32.xlu1 %v7446_v13, %s8941_s30  ;;  %s8943_s30 = smov 16  }
 0x331   :  { %566 = vrot.lane.b32.xlu0 %v7446_v13, %s8940_s2 }
 0x367   :  { %v194_v39 = vpop.xlane.xlu0 %193 }
 0x368   :  { %7246 = vrcp.f32 %v194_v39 }
 0x369   :  { %v197_v40 = vpop.xlane.xlu1 %196 }
 0x36a   :  { %7248 = vrcp.f32 %v197_v40 }
 0x36d   :  { %v325_v48 = vpop.permute.xlu1 %324 }
 0x36f   :  { %v315_v41 = vpop.xlane.xlu0 %314 }
 0x370   :  { %7250 = vrcp.f32 %v315_v41 }
 0x372   :  { %v7247_v42 = vpop.eup %7246 }
 0x373   :  { %v204_v43 = vpop.permute.xlu0 %203  ;;  %v200_v45 = vmul.f32 %v7247_v42, %v7231_v7 }
 0x374   :  { %v7249_v44 = vpop.eup %7248  ;;  %6796 = vmatpush3.bf16.msra.mxu0 %v204_v43 }
 0x375   :  { %v201_v46 = vmul.f32 %v7249_v44, %v7233_v9  ;;  %6807 = vmatprep.subr.bf16.mxu0 %v7312_v0 }
 0x377   :  { %v202_v47 = vpack.c.bf16 %v201_v46, %v200_v45 }
 0x379   :  { %6798 = vmatmul.mubr.msk.bf16.vlgmr.msra.gmra.mrb[4].mxu0 %vm179_vm3, %v202_v47  ;;  %v5707_v47 = vld [vmem:[%s8927_s5] ss:$0 sm:$0xff] }
 0x37a   :  { %6808 = vmatpush3.bf16.msra.mxu0 %v325_v48  ;;  %6809 = vmatprep.mubr.msk.bf16.mxu0 %vm7313_vm0, %v7312_v0  ;;  %v7251_v51 = vpop.eup %7250 }
 0x37b   :  { %6819 = vmatprep.subr.bf16.mxu0 %v7312_v0  ;;  %v321_v55 = vmul.f32 %v7251_v51, %v7499_v11 }
 0x39e   :  { %v318_v13 = vpop.xlane.xlu1 %317 }
 0x39f   :  { %7252 = vrcp.f32 %v318_v13 }
 0x3a2   :  { %v439_v49 = vpop.xlane.xlu1 %438 }
 0x3a3   :  { %7254 = vrcp.f32 %v439_v49 }
 0x3a4   :  { %v436_v50 = vpop.xlane.xlu0 %435 }
 0x3a5   :  { %7256 = vrcp.f32 %v436_v50 }
 0x3a6   :  { %v560_v52 = vpop.xlane.xlu1 %559 }
 0x3a8   :  { %v557_v53 = vpop.xlane.xlu0 %556 }
 0x3a9   :  { %v7253_v54 = vpop.eup %7252  ;;  %7258 = vrcp.f32 %v557_v53 }
 0x3aa   :  { %v322_v56 = vmul.f32 %v7253_v54, %v7237_v29  ;;  %7260 = vrcp.f32 %v560_v52  ;;  %v446_v59 = vpop.permute.xlu1 %445 }
 0x3ac   :  { %v323_v57 = vpack.c.bf16 %v322_v56, %v321_v55  ;;  %v567_v2 = vpop.permute.xlu0 %566 }
 0x3ad   :  { %v7255_v58 = vpop.eup %7254 }
 0x3ae   :  { %6810 = vmatmul.mubr.msk.bf16.vlgmr.msra.gmra.mrb[8].mxu0 %vm179_vm3, %v323_v57  ;;  %v443_v62 = vmul.f32 %v7255_v58, %v7239_v31 }
 0x3af   :  { %v7257_v60 = vpop.eup %7256  ;;  %6820 = vmatpush3.bf16.msra.mxu0 %v446_v59  ;;  %6821 = vmatprep.mubr.msk.bf16.mxu0 %vm7313_vm0, %v7312_v0 }
 0x3b0   :  { %v442_v61 = vmul.f32 %v7257_v60, %v7241_v32  ;;  %6831 = vmatprep.subr.bf16.mxu0 %v7312_v0 }
 0x3b2   :  { %v444_v63 = vpack.c.bf16 %v443_v62, %v442_v61 }
 0x3b3   :  { %v7259_v1 = vpop.eup %7258 }
 0x3b4   :  { %v7261_v5 = vpop.eup %7260  ;;  %v563_v6 = vmul.f32 %v7259_v1, %v7245_v36 }
 0x3b5   :  { %v564_v7 = vmul.f32 %v7261_v5, %v7509_v34  ;;  %v768_v5 = vld [vmem:[%s8928_s6 + $0x40] sm:$0xff] }
 0x3b6   :  { %6822 = vmatmul.mubr.msk.bf16.vlgmr.msra.gmra.mrb[12].mxu0 %vm179_vm3, %v444_v63 }
 0x3b7   :  { %6832 = vmatpush3.bf16.msra.mxu0 %v567_v2  ;;  %6833 = vmatprep.mubr.msk.bf16.mxu0 %vm7313_vm0, %v7312_v0  ;;  %v565_v8 = vpack.c.bf16 %v564_v7, %v563_v6  ;;  %v761_v6 = vld [vmem:[%s8928_s6 + $0x8] sm:$0xff] }
 0x3be   :  { %6834 = vmatmul.mubr.msk.bf16.vlgmr.msra.gmra.mrb[16].mxu0 %vm179_vm3, %v565_v8  ;;  %v769_v8 = vld [vmem:[%s8928_s6 + $0x48] sm:$0xff] }
 0x44c   :  { %v243_v9 = vpop.f32.mrb[4].mxu0 }
 0x44d   :  { %v6799_v10 = vpop.f32.mrb[5].mxu0 }
 0x44e   :  { %v246_v11 = vpop.f32.mrb[6].mxu0  ;;  %v5715_v10 = vcombine.low %v761_v6, %v769_v8 }
 0x44f   :  { %v6800_v12 = vpop.f32.mrb[7].mxu0 }
 0x450   :  { %v776_v12 = vld [vmem:[%s8928_s6 + $0x80] sm:$0xff] }
 0x481   :  { %v364_v14 = vpop.f32.mrb[8].mxu0 }
 0x482   :  { %v6811_v15 = vpop.f32.mrb[9].mxu0 }
 0x483   :  { %v367_v16 = vpop.f32.mrb[10].mxu0  ;;  %v777_v15 = vld [vmem:[%s8928_s6 + $0x88] sm:$0xff] }
 0x484   :  { %v6934_v17 = vpack.i.bf16 %v367_v16, %v364_v14  ;;  %v6812_v18 = vpop.f32.mrb[11].mxu0  ;;  %v784_v14 = vld [vmem:[%s8928_s6 + $0xc0] sm:$0xff] }
 0x485   :  { %v5730_v16 = vcombine.high %v776_v12, %v784_v14  ;;  %v5729_v18 = vcombine.low %v776_v12, %v784_v14  ;;  %v790_v12 = vld [vmem:[%s8928_s6 + $0xf0] sm:$0xff]  ;;  %v783_v14 = vld [vmem:[%s8928_s6 + $0xb8] sm:$0xff] }
 0x486   :  { %6935 = vrot.lane.b32.xlu1 %v6934_v17, %s8944_s26  ;;  %v785_v17 = vld [vmem:[%s8928_s6 + $0xc8] sm:$0xff]  ;;  %s8952_s26 = smov 72  }
 0x487   :  { %v5731_v19 = vcombine.low %v777_v15, %v785_v17 }
 0x489   :  { %v485_v20 = vpop.f32.mrb[12].mxu0 }
 0x48a   :  { %v6823_v21 = vpop.f32.mrb[13].mxu0 }
 0x48b   :  { %v488_v23 = vpop.f32.mrb[14].mxu0  ;;  %v762_v21 = vld [vmem:[%s8928_s6 + $0x10] sm:$0xff] }
 0x48c   :  { %v6939_v24 = vpack.i.bf16 %v488_v23, %v485_v20  ;;  %v6824_v25 = vpop.f32.mrb[15].mxu0  ;;  %v5732_v20 = vcombine.high %v777_v15, %v785_v17  ;;  %v763_v23 = vld [vmem:[%s8928_s6 + $0x18] sm:$0xff] }
 0x48d   :  { %v5718_v25 = vcombine.high %v762_v21, %v770_v22  ;;  %v791_v15 = vld [vmem:[%s8928_s6 + $0xf8] sm:$0xff] }
 0x48e   :  { %6940 = vrot.lane.b32.xlu0 %v6939_v24, %s8943_s30  ;;  %v7328_v24 = vmov 0  }
 0x48f   :  { %1071 = vmatprep.mubr.bf16.mxu0 %v7328_v24 }
 0x491   :  { %v606_v26 = vpop.f32.mrb[16].mxu0 }
 0x492   :  { %v6835_v27 = vpop.f32.mrb[17].mxu0 }
 0x493   :  { %v609_v28 = vpop.f32.mrb[18].mxu0  ;;  %v5717_v27 = vcombine.low %v762_v21, %v770_v22  ;;  %v5744_v21 = vcombine.high %v783_v14, %v791_v15  ;;  %v6968_v22 = vld [vmem:[%s8929_s8 + $0x40] sm:$0xff]  }
 0x494   :  { %v6944_v29 = vpack.i.bf16 %v609_v28, %v606_v26  ;;  %v6836_v30 = vpop.f32.mrb[19].mxu0  ;;  %v771_v26 = vld [vmem:[%s8928_s6 + $0x58] sm:$0xff] }
 0x495   :  { %v5719_v28 = vcombine.low %v763_v23, %v771_v26 }
 0x496   :  { %6945 = vrot.lane.b32.xlu1 %v6944_v29, %s8942_s24  ;;  %v5720_v29 = vcombine.high %v763_v23, %v771_v26  ;;  %v6969_v23 = vld [vmem:[%s8929_s8 + $0xc0] sm:$0xff]   ;;  %v5743_v26 = vcombine.low %v783_v14, %v791_v15  ;;  %s8958_s24 = smov 16  }
 0x4f8   :  { %v6936_v31 = vpop.permute.xlu1 %6935 }
 0x4f9   :  { %v6938_v33 = vunpack.i.h.bf16 %v6936_v31  ;;  %v6937_v34 = vunpack.i.l.bf16 %v6936_v31 }
 0x4fb   :  { %v638_v38 = vsel %vm131_vm2, %v246_v11, %v6938_v33  ;;  %v637_v39 = vsel %vm131_vm2, %v243_v9, %v6937_v34  ;;  %v5716_v11 = vcombine.high %v761_v6, %v769_v8  ;;  %v775_v6 = vld [vmem:[%s8928_s6 + $0x78] sm:$0xff] }
 0x4fd   :  { %1082 = vmatprep.subr.bf16.mxu1 %v5716_v11  ;;  %v782_v11 = vld [vmem:[%s8928_s6 + $0xb0] sm:$0xff] }
 0x500   :  { %v6941_v32 = vpop.permute.xlu0 %6940 }
 0x501   :  { %v6943_v35 = vunpack.i.h.bf16 %v6941_v32  ;;  %v6942_v36 = vunpack.i.l.bf16 %v6941_v32 }
 0x503   :  { %v640_v42 = vsel %vm179_vm3, %v638_v38, %v6943_v35  ;;  %v639_v43 = vsel %vm179_vm3, %v637_v39, %v6942_v36 }
 0x508   :  { %v6946_v37 = vpop.permute.xlu1 %6945 }
 0x509   :  { %v6948_v40 = vunpack.i.h.bf16 %v6946_v37  ;;  %v6947_v41 = vunpack.i.l.bf16 %v6946_v37  ;;  %v5711_v37 = vld [vmem:[%s8930_s10] ss:$0 sm:$0xff] }
 0x50b   :  { %v643_v44 = vsel %vm641_vm4, %v640_v42, %v6948_v40  ;;  %v642_v45 = vsel %vm641_vm4, %v639_v43, %v6947_v41  ;;  %v5712_v40 = vld [vmem:[%s8931_s11] ss:$0 sm:$0xff]  ;;  %v778_v43 = vld [vmem:[%s8928_s6 + $0x90] sm:$0xff] }
 0x50c   :  { %v644_v46 = vpack.c.bf16 %v643_v44, %v642_v45  ;;  %v786_v44 = vld [vmem:[%s8928_s6 + $0xd0] sm:$0xff]  ;;  %v779_v45 = vld [vmem:[%s8928_s6 + $0x98] sm:$0xff] }
 0x50e   :  { %6842 = vmatmul.mubr.msk.bf16.vlgmr.msra.gmra.mrb[16].mxu1 %vm82_vm1, %v644_v46  ;;  %v787_v46 = vld [vmem:[%s8928_s6 + $0xd8] sm:$0xff] }
 0x50f   :  { %1083 = vmatpush1.bf16.msra.mxu1 %v5715_v10  ;;  %1114 = vmatprep.mubr.bf16.mxu1 %v7328_v24 }
 0x510   :  { %1084 = vmatprep.subr.bf16.mxu1 %v5732_v20  ;;  %v5742_v20 = vcombine.high %v782_v11, %v790_v12 }
 0x513   :  { %1085 = vmatpush1.bf16.msra.mxu1 %v5731_v19 }
 0x514   :  { %1168 = vmatprep.subr.bf16.mxu1 %v5720_v29  ;;  %v6972_v29 = vld [vmem:[%s8929_s8 + $0x48] sm:$0xff]  }
 0x5e1   :  { %v705_v48 = vpop.f32.mrb[16].mxu1 }
 0x5e2   :  { %v706_v13 = vadd.f32 %v5707_v47, %v705_v48  ;;  %v6843_v49 = vpop.f32.mrb[17].mxu1 }
 0x5e3   :  { %v708_v50 = vpop.f32.mrb[18].mxu1  ;;  %v764_v49 = vld [vmem:[%s8928_s6 + $0x20] sm:$0xff] }
 0x5e4   :  { %v709_v51 = vadd.f32 %v5707_v47, %v708_v50  ;;  %v6844_v52 = vpop.f32.mrb[19].mxu1  ;;  %v712_v53 = vadd.f32 %v706_v13, %v7429_v3  ;;  %v772_v50 = vld [vmem:[%s8928_s6 + $0x60] sm:$0xff] }
 0x5e5   :  { %v773_v52 = vld [vmem:[%s8928_s6 + $0x68] sm:$0xff] }
 0x5e6   :  { %v716_v54 = vsel %vm82_vm1, %v712_v53, 0.0  ;;  %v713_v55 = vadd.f32 %v709_v51, %v7434_v4  ;;  %v760_v4 = vld [vmem:[%s8928_s6] sm:$0xff]  ;;  %v765_v51 = vld [vmem:[%s8928_s6 + $0x28] sm:$0xff] }
 0x5e7   :  { %717 = vadd.xlane.f32.xlu0 %v716_v54  ;;  %v5714_v7 = vcombine.high %v760_v4, %v768_v5  ;;  %v5713_v9 = vcombine.low %v760_v4, %v768_v5  ;;  %v5734_v54 = vcombine.high %v778_v43, %v786_v44  ;;  %v774_v4 = vld [vmem:[%s8928_s6 + $0x70] sm:$0xff]  ;;  %v767_v5 = vld [vmem:[%s8928_s6 + $0x38] sm:$0xff] }
 0x5e8   :  { %v719_v56 = vsel %vm82_vm1, %v713_v55, 0.0  ;;  %v5728_v17 = vcombine.high %v767_v5, %v775_v6  ;;  %v5727_v19 = vcombine.low %v767_v5, %v775_v6 }
 0x5e9   :  { %720 = vadd.xlane.f32.xlu1 %v719_v56  ;;  %1039 = vmatprep.subr.bf16.mxu0 %v5714_v7  ;;  %v5733_v56 = vcombine.low %v778_v43, %v786_v44  ;;  %v6986_v43 = vld [vmem:[%s8929_s8 + $0x20] sm:$0xff]  }
 0x5ea   :  { %1040 = vmatpush1.bf16.msra.mxu0 %v5713_v9  ;;  %v6987_v44 = vld [vmem:[%s8929_s8 + $0xa0] sm:$0xff]  }
 0x5eb   :  { %1041 = vmatprep.subr.bf16.mxu0 %v5730_v16 }
 0x5ee   :  { %1042 = vmatpush1.bf16.msra.mxu0 %v5729_v18 }
 0x5ef   :  { %1125 = vmatprep.subr.bf16.mxu0 %v5718_v25  ;;  %v5741_v25 = vcombine.low %v782_v11, %v790_v12 }
 0x674   :  { %v718_v57 = vpop.xlane.xlu0 %717 }
 0x675   :  { %v723_v58 = vmul.f32 0.03125, %v718_v57  ;;  %v5735_v57 = vcombine.low %v779_v45, %v787_v46 }
 0x676   :  { %v721_v59 = vpop.xlane.xlu1 %720 }
 0x677   :  { %v725_v60 = vsub.f32 %v712_v53, %v723_v58  ;;  %v724_v61 = vmul.f32 0.03125, %v721_v59  ;;  %v780_v58 = vld [vmem:[%s8928_s6 + $0xa0] sm:$0xff] }
 0x678   :  { %v788_v59 = vld [vmem:[%s8928_s6 + $0xe0] sm:$0xff] }
 0x679   :  { %v726_v62 = vsub.f32 %v713_v55, %v724_v61  ;;  %v727_v63 = vmul.f32 %v725_v60, %v725_v60  ;;  %v5736_v55 = vcombine.high %v779_v45, %v787_v46  ;;  %v789_v61 = vld [vmem:[%s8928_s6 + $0xe8] sm:$0xff]  ;;  %v5738_v7 = vcombine.high %v780_v58, %v788_v59 }
 0x67a   :  { %v5737_v9 = vcombine.low %v780_v58, %v788_v59  ;;  %v6988_v45 = vld [vmem:[%s8929_s8 + $0x68] sm:$0xff]   ;;  %v7000_v58 = vld [vmem:[%s8929_s8 + $0x140] sm:$0xff]  }
 0x67b   :  { %v729_v1 = vsel %vm82_vm1, %v727_v63, 0.0  ;;  %v728_v2 = vmul.f32 %v726_v62, %v726_v62  ;;  %v5724_v63 = vcombine.high %v765_v51, %v773_v52  ;;  %v6989_v46 = vld [vmem:[%s8929_s8 + $0xe8] sm:$0xff]   ;;  %v7001_v59 = vld [vmem:[%s8929_s8 + $0x1c0] sm:$0xff]  }
 0x67c   :  { %730 = vadd.xlane.f32.xlu0 %v729_v1  ;;  %v5721_v1 = vcombine.low %v764_v49, %v772_v50 }
 0x67d   :  { %v732_v3 = vsel %vm82_vm1, %v728_v2, 0.0  ;;  %v5723_v2 = vcombine.low %v765_v51, %v773_v52  ;;  %v6993_v51 = vld [vmem:[%s8929_s8 + $0xf0] sm:$0xff]  }
 0x67e   :  { %v6994_v52 = vld [vmem:[%s8929_s8 + $0x30] sm:$0xff]  }
 0x680   :  { %733 = vadd.xlane.f32.xlu0 %v732_v3  ;;  %v766_v3 = vld [vmem:[%s8928_s6 + $0x30] sm:$0xff] }
 0x681   :  { %v5726_v16 = vcombine.high %v766_v3, %v774_v4  ;;  %v5725_v18 = vcombine.low %v766_v3, %v774_v4 }
 0x709   :  { %v731_v30 = vpop.xlane.xlu0 %730 }
 0x70a   :  { %v735_v31 = vmul.f32 0.03125, %v731_v30  ;;  %v6973_v30 = vld [vmem:[%s8929_s8 + $0xc8] sm:$0xff]  }
 0x70c   :  { %v737_v32 = vadd.f32 1e-05, %v735_v31  ;;  %v6974_v31 = vld [vmem:[%s8929_s8 + $0x8] sm:$0xff]  }
 0x70d   :  { %v734_v33 = vpop.xlane.xlu0 %733 }
 0x70e   :  { %7262 = vrsqrt.f32 %v737_v32  ;;  %v736_v34 = vmul.f32 0.03125, %v734_v33  ;;  %v6975_v32 = vld [vmem:[%s8929_s8 + $0x88] sm:$0xff]   ;;  %v6976_v33 = vld [vmem:[%s8929_s8 + $0x50] sm:$0xff]  }
 0x710   :  { %v738_v35 = vadd.f32 1e-05, %v736_v34  ;;  %v6977_v34 = vld [vmem:[%s8929_s8 + $0xd0] sm:$0xff]  }
 0x712   :  { %7264 = vrsqrt.f32 %v738_v35  ;;  %v6978_v35 = vld [vmem:[%s8929_s8 + $0x10] sm:$0xff]  }
 0x718   :  { %v7263_v36 = vpop.eup %7262 }
 0x719   :  { %v741_v38 = vmul.f32 %v7263_v36, %v725_v60  ;;  %v781_v60 = vld [vmem:[%s8928_s6 + $0xa8] sm:$0xff]  ;;  %v6979_v36 = vld [vmem:[%s8929_s8 + $0x90] sm:$0xff]  }
 0x71a   :  { %v5740_v8 = vcombine.high %v781_v60, %v789_v61  ;;  %v5739_v10 = vcombine.low %v781_v60, %v789_v61  ;;  %v796_v60 = vlaneseq }
 0x71b   :  { %v749_v41 = vmul.f32 %v5711_v37, %v741_v38  ;;  %v6981_v38 = vld [vmem:[%s8929_s8 + $0xd8] sm:$0xff]  }
 0x71c   :  { %v7265_v39 = vpop.eup %7264  ;;  %v797_v61 = vshrl.u32 %v796_v60, 7 }
 0x71d   :  { %v742_v42 = vmul.f32 %v7265_v39, %v726_v62  ;;  %v7616_v48 = vadd.f32 %v5712_v40, %v749_v41  ;;  %v5722_v62 = vcombine.high %v764_v49, %v772_v50  ;;  %v6982_v39 = vld [vmem:[%s8929_s8 + $0x18] sm:$0xff]   ;;  %v6984_v41 = vld [vmem:[%s8929_s8 + $0x60] sm:$0xff]   ;;  %v6991_v49 = vld [vmem:[%s8929_s8 + $0xa8] sm:$0xff]  }
 0x71e   :  { %v6992_v50 = vld [vmem:[%s8929_s8 + $0x70] sm:$0xff]   ;;  %v7805_v3 = vsub.s32 3, %v797_v61  ;;  %v7815_v12 = vsub.s32 5, %v797_v61  ;;  %v7817_v14 = vsub.s32 7, %v797_v61 }
 0x71f   :  { %v750_v47 = vmul.f32 %v5711_v37, %v742_v42  ;;  %v6980_v37 = vld [vmem:[%s8929_s8 + $0x58] sm:$0xff]   ;;  %v6985_v42 = vld [vmem:[%s8929_s8 + $0xe0] sm:$0xff]  }
 0x721   :  { %v7618_v13 = vadd.f32 %v5712_v40, %v750_v47  ;;  %v6983_v40 = vld [vmem:[%s8929_s8 + $0x98] sm:$0xff]   ;;  %v6990_v47 = vld [vmem:[%s8929_s8 + $0x28] sm:$0xff]  }
 0x723   :  { %v7634_v53 = vpack.c.bf16 %v7618_v13, %v7616_v48 }
 0x725   :  { %5745 = vmatmul.mubr.msk.bf16.vlgmr.msra.gmra.mrb[20].mxu0 %vm82_vm1, %v7634_v53  ;;  %5746 = vmatmul.mubr.msk.bf16.vlgmr.msra.gmra.mrb[20].mxu1 %vm82_vm1, %v7634_v53 }
 0x726   :  { %1126 = vmatpush1.bf16.msra.mxu0 %v5717_v27  ;;  %1169 = vmatpush1.bf16.msra.mxu1 %v5719_v28  ;;  %v6970_v27 = vld [vmem:[%s8929_s8] sm:$0xff]  }
 0x727   :  { %1127 = vmatprep.subr.bf16.mxu0 %v5734_v54  ;;  %1170 = vmatprep.subr.bf16.mxu1 %v5736_v55  ;;  %v6971_v28 = vld [vmem:[%s8929_s8 + $0x80] sm:$0xff]   ;;  %v6996_v54 = vld [vmem:[%s8929_s8 + $0x78] sm:$0xff]  }
 0x728   :  { %1157 = vmatprep.mubr.bf16.mxu0 %v7328_v24  ;;  %1200 = vmatprep.mubr.bf16.mxu1 %v7328_v24  ;;  %v6997_v55 = vld [vmem:[%s8929_s8 + $0xf8] sm:$0xff]  }
 0x72a   :  { %1128 = vmatpush1.bf16.msra.mxu0 %v5733_v56  ;;  %1171 = vmatpush1.bf16.msra.mxu1 %v5735_v57  ;;  %v6998_v56 = vld [vmem:[%s8929_s8 + $0x38] sm:$0xff]  }
 0x72b   :  { %1211 = vmatprep.subr.bf16.mxu0 %v5722_v62  ;;  %1254 = vmatprep.subr.bf16.mxu1 %v5724_v63  ;;  %v6999_v57 = vld [vmem:[%s8929_s8 + $0xb8] sm:$0xff]   ;;  %v7796_v62 = vsub.s32 0, %v797_v61  ;;  %v7798_v63 = vsub.s32 2, %v797_v61 }
 0x72d   :  { %5747 = vmatmul.mubr.msk.bf16.vlgmr.msra.gmra.mrb[24].mxu0 %vm82_vm1, %v7634_v53  ;;  %5748 = vmatmul.mubr.msk.bf16.vlgmr.msra.gmra.mrb[24].mxu1 %vm82_vm1, %v7634_v53 }
 0x72e   :  { %1212 = vmatpush1.bf16.msra.mxu0 %v5721_v1  ;;  %1255 = vmatpush1.bf16.msra.mxu1 %v5723_v2  ;;  %v792_v1 = vld [vmem:[%s8932_s7] sm:$0xff]  ;;  %v7803_v2 = vsub.s32 1, %v797_v61 }
 0x72f   :  { %1213 = vmatprep.subr.bf16.mxu0 %v5738_v7  ;;  %1256 = vmatprep.subr.bf16.mxu1 %v5740_v8  ;;  %v799_v4 = vrot.slane %v792_v1, %v7796_v62  ;;  %v807_v5 = vrot.slane %v792_v1, %v7798_v63  ;;  %v811_v7 = vrot.slane %v792_v1, %v7805_v3  ;;  %v7811_v8 = vsub.s32 4, %v797_v61 }
 0x730   :  { %1243 = vmatprep.mubr.bf16.mxu0 %v7328_v24  ;;  %1286 = vmatprep.mubr.bf16.mxu1 %v7328_v24  ;;  %v803_v6 = vrot.slane %v792_v1, %v7803_v2 }
 0x732   :  { %1214 = vmatpush1.bf16.msra.mxu0 %v5737_v9  ;;  %1257 = vmatpush1.bf16.msra.mxu1 %v5739_v10  ;;  %v7813_v9 = vsub.s32 6, %v797_v61 }
 0x733   :  { %1297 = vmatprep.subr.bf16.mxu0 %v5726_v16  ;;  %1340 = vmatprep.subr.bf16.mxu1 %v5728_v17 }
 0x735   :  { %5749 = vmatmul.mubr.msk.bf16.vlgmr.msra.gmra.mrb[28].mxu0 %vm82_vm1, %v7634_v53  ;;  %5750 = vmatmul.mubr.msk.bf16.vlgmr.msra.gmra.mrb[28].mxu1 %vm82_vm1, %v7634_v53 }
 0x736   :  { %1298 = vmatpush1.bf16.msra.mxu0 %v5725_v18  ;;  %1341 = vmatpush1.bf16.msra.mxu1 %v5727_v19 }
 0x737   :  { %1299 = vmatprep.subr.bf16.mxu0 %v5742_v20  ;;  %1342 = vmatprep.subr.bf16.mxu1 %v5744_v21 }
 0x738   :  { %1329 = vmatprep.mubr.bf16.mxu0 %v7328_v24  ;;  %1372 = vmatprep.mubr.bf16.mxu1 %v7328_v24 }
 0x73a   :  { %1300 = vmatpush1.bf16.msra.mxu0 %v5741_v25  ;;  %1343 = vmatpush1.bf16.msra.mxu1 %v5743_v26 }
 0x73b   :  { %6404 = vmatprep.subr.bf16.mxu0 %v6968_v22  ;;  %6426 = vmatprep.subr.bf16.mxu1 %v6969_v23 }
 0x73d   :  { %5751 = vmatmul.mubr.msk.bf16.vlgmr.msra.gmra.mrb[32].mxu0 %vm82_vm1, %v7634_v53  ;;  %5752 = vmatmul.mubr.msk.bf16.vlgmr.msra.gmra.mrb[32].mxu1 %vm82_vm1, %v7634_v53  ;;  %v6995_v53 = vld [vmem:[%s8929_s8 + $0xb0] sm:$0xff]  }
 0x73e   :  { %6405 = vmatpush3.bf16.msra.mxu0 %v6970_v27  ;;  %6427 = vmatpush3.bf16.msra.mxu1 %v6971_v28  ;;  %v815_v28 = vrot.slane %v792_v1, %v7811_v8 }
 0x73f   :  { %6406 = vmatprep.subr.bf16.mxu0 %v6972_v29  ;;  %6428 = vmatprep.subr.bf16.mxu1 %v6973_v30  ;;  %v823_v29 = vrot.slane %v792_v1, %v7813_v9 }
 0x742   :  { %6407 = vmatpush3.bf16.msra.mxu0 %v6974_v31  ;;  %6429 = vmatpush3.bf16.msra.mxu1 %v6975_v32  ;;  %v819_v32 = vrot.slane %v792_v1, %v7815_v12 }
 0x743   :  { %6408 = vmatprep.subr.bf16.mxu0 %v6976_v33  ;;  %6430 = vmatprep.subr.bf16.mxu1 %v6977_v34  ;;  %v827_v33 = vrot.slane %v792_v1, %v7817_v14 }
 0x746   :  { %6409 = vmatpush3.bf16.msra.mxu0 %v6978_v35  ;;  %6431 = vmatpush3.bf16.msra.mxu1 %v6979_v36 }
 0x747   :  { %6410 = vmatprep.subr.bf16.mxu0 %v6980_v37  ;;  %6432 = vmatprep.subr.bf16.mxu1 %v6981_v38 }
 0x74a   :  { %6411 = vmatpush3.bf16.msra.mxu0 %v6982_v39  ;;  %6433 = vmatpush3.bf16.msra.mxu1 %v6983_v40 }
 0x74b   :  { %6412 = vmatprep.subr.bf16.mxu0 %v6984_v41  ;;  %6434 = vmatprep.subr.bf16.mxu1 %v6985_v42  ;;  %v7826_v42 = vld [vmem:[%s8932_s7 + $0x8] sm:$0xff] }
 0x74e   :  { %6413 = vmatpush3.bf16.msra.mxu0 %v6986_v43  ;;  %6435 = vmatpush3.bf16.msra.mxu1 %v6987_v44 }
 0x74f   :  { %6414 = vmatprep.subr.bf16.mxu0 %v6988_v45  ;;  %6436 = vmatprep.subr.bf16.mxu1 %v6989_v46 }
 0x752   :  { %6415 = vmatpush3.bf16.msra.mxu0 %v6990_v47  ;;  %6437 = vmatpush3.bf16.msra.mxu1 %v6991_v49 }
 0x753   :  { %6416 = vmatprep.subr.bf16.mxu0 %v6992_v50  ;;  %6438 = vmatprep.subr.bf16.mxu1 %v6993_v51  ;;  %v7002_v50 = vld [vmem:[%s8929_s8 + $0x100] sm:$0xff]  }
 0x754   :  { %v7003_v51 = vld [vmem:[%s8929_s8 + $0x180] sm:$0xff]  }
 0x756   :  { %6417 = vmatpush3.bf16.msra.mxu0 %v6994_v52  ;;  %6439 = vmatpush3.bf16.msra.mxu1 %v6995_v53 }
 0x757   :  { %6418 = vmatprep.subr.bf16.mxu0 %v6996_v54  ;;  %6440 = vmatprep.subr.bf16.mxu1 %v6997_v55 }
 0x75a   :  { %6419 = vmatpush3.bf16.msra.mxu0 %v6998_v56  ;;  %6441 = vmatpush3.bf16.msra.mxu1 %v6999_v57  ;;  %v7004_v56 = vld [vmem:[%s8929_s8 + $0x148] sm:$0xff]  }
 0x75b   :  { %6448 = vmatprep.subr.bf16.mxu0 %v7000_v58  ;;  %6470 = vmatprep.subr.bf16.mxu1 %v7001_v59  ;;  %v7005_v57 = vld [vmem:[%s8929_s8 + $0x1c8] sm:$0xff]   ;;  %v831_v58 = vrot.slane %v7826_v42, %v7796_v62 }
 0x7f8   :  { %v1073_v10 = vpop.f32.mrb[20].mxu0  ;;  %v1116_v11 = vpop.f32.mrb[20].mxu1 }
 0x7f9   :  { %v1074_v15 = vadd.f32 %v1073_v10, %v799_v4  ;;  %v1117_v16 = vadd.f32 %v1116_v11, %v807_v5  ;;  %v1075_v17 = vpop.f32.mrb[21].mxu0  ;;  %v1118_v18 = vpop.f32.mrb[21].mxu1  ;;  %v835_v11 = vrot.slane %v7826_v42, %v7803_v2 }
 0x7fa   :  { %v1076_v19 = vadd.f32 %v1075_v17, %v803_v6  ;;  %v1119_v20 = vadd.f32 %v1118_v18, %v811_v7  ;;  %v1077_v21 = vpop.f32.mrb[22].mxu0  ;;  %v1120_v22 = vpop.f32.mrb[22].mxu1  ;;  %v7006_v17 = vld [vmem:[%s8929_s8 + $0x108] sm:$0xff]  }
 0x7fb   :  { %v1078_v23 = vadd.f32 %v1077_v21, %v799_v4  ;;  %v1121_v25 = vadd.f32 %v1120_v22, %v807_v5  ;;  %v1079_v26 = vpop.f32.mrb[23].mxu0  ;;  %v1122_v27 = vpop.f32.mrb[23].mxu1  ;;  %v1383_v34 = vmax.f32 %v1074_v15, 0.0  ;;  %v1385_v35 = vmax.f32 %v1117_v16, 0.0  ;;  %v7007_v18 = vld [vmem:[%s8929_s8 + $0x188] sm:$0xff]  }
 0x7fc   :  { %v1080_v30 = vadd.f32 %v1079_v26, %v803_v6  ;;  %v1123_v31 = vadd.f32 %v1122_v27, %v811_v7  ;;  %v1384_v38 = vmax.f32 %v1076_v19, 0.0  ;;  %v1386_v39 = vmax.f32 %v1119_v20, 0.0  ;;  %v7009_v26 = vld [vmem:[%s8929_s8 + $0x1d0] sm:$0xff]  }
 0x7fd   :  { %v1399_v36 = vmax.f32 %v1078_v23, 0.0  ;;  %v1401_v37 = vmax.f32 %v1121_v25, 0.0  ;;  %v839_v4 = vrot.slane %v7826_v42, %v7798_v63  ;;  %v843_v19 = vrot.slane %v7826_v42, %v7805_v3  ;;  %v7008_v25 = vld [vmem:[%s8929_s8 + $0x150] sm:$0xff]  }
 0x7fe   :  { %v1400_v40 = vmax.f32 %v1080_v30, 0.0  ;;  %v1402_v41 = vmax.f32 %v1123_v31, 0.0 }
 0x7ff   :  { %v1415_v43 = vpack.c.bf16 %v1399_v36, %v1383_v34  ;;  %v1417_v44 = vpack.c.bf16 %v1401_v37, %v1385_v35  ;;  %v7010_v37 = vld [vmem:[%s8929_s8 + $0x110] sm:$0xff]  }
 0x800   :  { %v1416_v45 = vpack.c.bf16 %v1400_v40, %v1384_v38  ;;  %v1418_v46 = vpack.c.bf16 %v1402_v41, %v1386_v39  ;;  %v1159_v47 = vpop.f32.mrb[24].mxu0  ;;  %v1202_v49 = vpop.f32.mrb[24].mxu1  ;;  %v7011_v38 = vld [vmem:[%s8929_s8 + $0x190] sm:$0xff]  }
 0x801   :  { %v1160_v52 = vadd.f32 %v1159_v47, %v815_v28  ;;  %v1203_v53 = vadd.f32 %v1202_v49, %v823_v29  ;;  %v1161_v54 = vpop.f32.mrb[25].mxu0  ;;  %v1204_v55 = vpop.f32.mrb[25].mxu1 }
 0x802   :  { %v1162_v59 = vadd.f32 %v1161_v54, %v819_v32  ;;  %v1205_v60 = vadd.f32 %v1204_v55, %v827_v33  ;;  %v1163_v61 = vpop.f32.mrb[26].mxu0  ;;  %v1206_v1 = vpop.f32.mrb[26].mxu1  ;;  %2494 = vmatprep.mubr.bf16.mxu0 %v1416_v45  ;;  %2535 = vmatprep.mubr.bf16.mxu1 %v1418_v46  ;;  %v7013_v45 = vld [vmem:[%s8929_s8 + $0x1d8] sm:$0xff]  }
 0x803   :  { %v1164_v5 = vadd.f32 %v1163_v61, %v815_v28  ;;  %v1207_v6 = vadd.f32 %v1206_v1, %v823_v29  ;;  %v1165_v7 = vpop.f32.mrb[27].mxu0  ;;  %v1208_v10 = vpop.f32.mrb[27].mxu1  ;;  %2495 = vmatmul.mubr.bf16.vlgmr.msra.gmra.mrb[36].mxu0 %v1415_v43  ;;  %2536 = vmatmul.mubr.bf16.vlgmr.msra.gmra.mrb[36].mxu1 %v1417_v44  ;;  %v1387_v20 = vmax.f32 %v1160_v52, 0.0  ;;  %v1389_v21 = vmax.f32 %v1203_v53, 0.0  ;;  %v7012_v44 = vld [vmem:[%s8929_s8 + $0x158] sm:$0xff]  }
 0x804   :  { %v1166_v15 = vadd.f32 %v1165_v7, %v819_v32  ;;  %v1209_v16 = vadd.f32 %v1208_v10, %v827_v33  ;;  %6449 = vmatpush3.bf16.msra.mxu0 %v7002_v50  ;;  %6471 = vmatpush3.bf16.msra.mxu1 %v7003_v51  ;;  %v1388_v27 = vmax.f32 %v1162_v59, 0.0  ;;  %v1390_v28 = vmax.f32 %v1205_v60, 0.0  ;;  %v7014_v61 = vld [vmem:[%s8929_s8 + $0x118] sm:$0xff]   ;;  %v7016_v10 = vld [vmem:[%s8929_s8 + $0x160] sm:$0xff]  }
 0x805   :  { %v1403_v22 = vmax.f32 %v1164_v5, 0.0  ;;  %v1405_v23 = vmax.f32 %v1207_v6, 0.0  ;;  %6450 = vmatprep.subr.bf16.mxu0 %v7004_v56  ;;  %6472 = vmatprep.subr.bf16.mxu1 %v7005_v57  ;;  %v847_v51 = vrot.slane %v7826_v42, %v7811_v8  ;;  %v855_v56 = vrot.slane %v7826_v42, %v7813_v9 }
 0x806   :  { %v1404_v29 = vmax.f32 %v1166_v15, 0.0  ;;  %v1406_v30 = vmax.f32 %v1209_v16, 0.0  ;;  %v851_v57 = vrot.slane %v7826_v42, %v7815_v12  ;;  %v859_v1 = vrot.slane %v7826_v42, %v7817_v14 }
 0x807   :  { %v7860_v31 = vpack.c.bf16 %v1403_v22, %v1387_v20  ;;  %v7862_v32 = vpack.c.bf16 %v1405_v23, %v1389_v21 }
 0x808   :  { %v1420_v33 = vpack.c.bf16 %v1404_v29, %v1388_v27  ;;  %v1422_v34 = vpack.c.bf16 %v1406_v30, %v1390_v28  ;;  %6451 = vmatpush3.bf16.msra.mxu0 %v7006_v17  ;;  %6473 = vmatpush3.bf16.msra.mxu1 %v7007_v18  ;;  %v1245_v35 = vpop.f32.mrb[28].mxu0  ;;  %v1288_v36 = vpop.f32.mrb[28].mxu1 }
 0x809   :  { %v1246_v39 = vadd.f32 %v1245_v35, %v831_v58  ;;  %v1289_v40 = vadd.f32 %v1288_v36, %v839_v4  ;;  %v1247_v41 = vpop.f32.mrb[29].mxu0  ;;  %v1290_v43 = vpop.f32.mrb[29].mxu1  ;;  %6452 = vmatprep.subr.bf16.mxu0 %v7008_v25  ;;  %6474 = vmatprep.subr.bf16.mxu1 %v7009_v26  ;;  %v7018_v25 = vld [vmem:[%s8929_s8 + $0x120] sm:$0xff]  }
 0x80a   :  { %v1248_v46 = vadd.f32 %v1247_v41, %v835_v11  ;;  %v1291_v47 = vadd.f32 %v1290_v43, %v843_v19  ;;  %v1249_v49 = vpop.f32.mrb[30].mxu0  ;;  %v1292_v50 = vpop.f32.mrb[30].mxu1  ;;  %2576 = vmatprep.mubr.bf16.mxu0 %v1420_v33  ;;  %2617 = vmatprep.mubr.bf16.mxu1 %v1422_v34  ;;  %v7019_v26 = vld [vmem:[%s8929_s8 + $0x1a0] sm:$0xff]   ;;  %v7020_v33 = vld [vmem:[%s8929_s8 + $0x168] sm:$0xff]  }
 0x80b   :  { %v1250_v52 = vadd.f32 %v1249_v49, %v831_v58  ;;  %v1293_v53 = vadd.f32 %v1292_v50, %v839_v4  ;;  %v1251_v54 = vpop.f32.mrb[31].mxu0  ;;  %v1294_v55 = vpop.f32.mrb[31].mxu1  ;;  %v7015_v58 = vld [vmem:[%s8929_s8 + $0x198] sm:$0xff]   ;;  %v1391_v4 = vmax.f32 %v1246_v39, 0.0  ;;  %v1393_v5 = vmax.f32 %v1289_v40, 0.0  ;;  %v7021_v34 = vld [vmem:[%s8929_s8 + $0x1e8] sm:$0xff]  }
 0x80c   :  { %v1252_v59 = vadd.f32 %v1251_v54, %v835_v11  ;;  %v1295_v60 = vadd.f32 %v1294_v55, %v843_v19  ;;  %6453 = vmatpush3.bf16.msra.mxu0 %v7010_v37  ;;  %6475 = vmatpush3.bf16.msra.mxu1 %v7011_v38  ;;  %v7017_v11 = vld [vmem:[%s8929_s8 + $0x1e0] sm:$0xff]   ;;  %v1392_v15 = vmax.f32 %v1248_v46, 0.0  ;;  %v1394_v16 = vmax.f32 %v1291_v47, 0.0  ;;  %v7022_v46 = vld [vmem:[%s8929_s8 + $0x128] sm:$0xff]   ;;  %v7025_v54 = vld [vmem:[%s8929_s8 + $0x1f0] sm:$0xff]  }
 0x80d   :  { %v1407_v6 = vmax.f32 %v1250_v52, 0.0  ;;  %v1409_v7 = vmax.f32 %v1293_v53, 0.0  ;;  %6454 = vmatprep.subr.bf16.mxu0 %v7012_v44  ;;  %6476 = vmatprep.subr.bf16.mxu1 %v7013_v45  ;;  %v7023_v47 = vld [vmem:[%s8929_s8 + $0x1a8] sm:$0xff]  }
 0x80e   :  { %v1408_v17 = vmax.f32 %v1252_v59, 0.0  ;;  %v1410_v18 = vmax.f32 %v1295_v60, 0.0 }
 0x80f   :  { %v7896_v19 = vpack.c.bf16 %v1407_v6, %v1391_v4  ;;  %v7898_v42 = vpack.c.bf16 %v1409_v7, %v1393_v5  ;;  %v7026_v4 = vld [vmem:[%s8929_s8 + $0x130] sm:$0xff]   ;;  %v7028_v6 = vld [vmem:[%s8929_s8 + $0x178] sm:$0xff]  }
 0x810   :  { %v7900_v20 = vpack.c.bf16 %v1408_v17, %v1392_v15  ;;  %v7902_v21 = vpack.c.bf16 %v1410_v18, %v1394_v16  ;;  %6455 = vmatpush3.bf16.msra.mxu0 %v7014_v61  ;;  %6477 = vmatpush3.bf16.msra.mxu1 %v7015_v58  ;;  %v1331_v22 = vpop.f32.mrb[32].mxu0  ;;  %v1374_v23 = vpop.f32.mrb[32].mxu1  ;;  %v7027_v5 = vld [vmem:[%s8929_s8 + $0x1b0] sm:$0xff]   ;;  %v7029_v7 = vld [vmem:[%s8929_s8 + $0x1f8] sm:$0xff]   ;;  %v7032_v15 = vld [vmem:[%s8929_s8 + $0x240] sm:$0xff]  }
 0x811   :  { %v1332_v27 = vadd.f32 %v1331_v22, %v847_v51  ;;  %v1375_v28 = vadd.f32 %v1374_v23, %v855_v56  ;;  %v1333_v29 = vpop.f32.mrb[33].mxu0  ;;  %v1376_v30 = vpop.f32.mrb[33].mxu1  ;;  %6456 = vmatprep.subr.bf16.mxu0 %v7016_v10  ;;  %6478 = vmatprep.subr.bf16.mxu1 %v7017_v11  ;;  %v7030_v10 = vld [vmem:[%s8929_s8 + $0x138] sm:$0xff]   ;;  %v7033_v16 = vld [vmem:[%s8929_s8 + $0x2c0] sm:$0xff]   ;;  %v7036_v22 = vld [vmem:[%s8929_s8 + $0x248] sm:$0xff]  }
 0x812   :  { %v1334_v35 = vadd.f32 %v1333_v29, %v851_v57  ;;  %v1377_v36 = vadd.f32 %v1376_v30, %v859_v1  ;;  %v1335_v37 = vpop.f32.mrb[34].mxu0  ;;  %v1378_v38 = vpop.f32.mrb[34].mxu1  ;;  %v7031_v11 = vld [vmem:[%s8929_s8 + $0x1b8] sm:$0xff]   ;;  %v7034_v17 = vld [vmem:[%s8929_s8 + $0x200] sm:$0xff]   ;;  %v7037_v23 = vld [vmem:[%s8929_s8 + $0x2c8] sm:$0xff]  }
 0x813   :  { %v1336_v39 = vadd.f32 %v1335_v37, %v847_v51  ;;  %v1379_v40 = vadd.f32 %v1378_v38, %v855_v56  ;;  %v1337_v41 = vpop.f32.mrb[35].mxu0  ;;  %v1380_v43 = vpop.f32.mrb[35].mxu1  ;;  %v1395_v49 = vmax.f32 %v1332_v27, 0.0  ;;  %v1397_v50 = vmax.f32 %v1375_v28, 0.0  ;;  %v7024_v51 = vld [vmem:[%s8929_s8 + $0x170] sm:$0xff]   ;;  %v7035_v18 = vld [vmem:[%s8929_s8 + $0x280] sm:$0xff]  }
 0x814   :  { %v1338_v44 = vadd.f32 %v1337_v41, %v851_v57  ;;  %v1381_v45 = vadd.f32 %v1380_v43, %v859_v1  ;;  %6457 = vmatpush3.bf16.msra.mxu0 %v7018_v25  ;;  %6479 = vmatpush3.bf16.msra.mxu1 %v7019_v26  ;;  %v1396_v55 = vmax.f32 %v1334_v35, 0.0  ;;  %v1398_v56 = vmax.f32 %v1377_v36, 0.0  ;;  %v7038_v25 = vld [vmem:[%s8929_s8 + $0x208] sm:$0xff]   ;;  %v7044_v27 = vld [vmem:[%s8929_s8 + $0x258] sm:$0xff]   ;;  %v7050_v35 = vld [vmem:[%s8929_s8 + $0x220] sm:$0xff]  }
 0x815   :  { %v1411_v52 = vmax.f32 %v1336_v39, 0.0  ;;  %v1413_v53 = vmax.f32 %v1379_v40, 0.0  ;;  %6458 = vmatprep.subr.bf16.mxu0 %v7020_v33  ;;  %6480 = vmatprep.subr.bf16.mxu1 %v7021_v34  ;;  %v7039_v26 = vld [vmem:[%s8929_s8 + $0x288] sm:$0xff]   ;;  %v7045_v28 = vld [vmem:[%s8929_s8 + $0x2d8] sm:$0xff]   ;;  %v7048_v33 = vld [vmem:[%s8929_s8 + $0x260] sm:$0xff]  }
 0x816   :  { %v1412_v57 = vmax.f32 %v1338_v44, 0.0  ;;  %v1414_v59 = vmax.f32 %v1381_v45, 0.0  ;;  %v7046_v29 = vld [vmem:[%s8929_s8 + $0x218] sm:$0xff]   ;;  %v7049_v34 = vld [vmem:[%s8929_s8 + $0x2e0] sm:$0xff]   ;;  %v7052_v37 = vld [vmem:[%s8929_s8 + $0x268] sm:$0xff]  }
 0x817   :  { %v7928_v60 = vpack.c.bf16 %v1411_v52, %v1395_v49  ;;  %v7930_v61 = vpack.c.bf16 %v1413_v53, %v1397_v50  ;;  %v7047_v30 = vld [vmem:[%s8929_s8 + $0x298] sm:$0xff]   ;;  %v7051_v36 = vld [vmem:[%s8929_s8 + $0x2a0] sm:$0xff]   ;;  %v7053_v38 = vld [vmem:[%s8929_s8 + $0x2e8] sm:$0xff]  }
 0x818   :  { %v7932_v58 = vpack.c.bf16 %v1412_v57, %v1396_v55  ;;  %v7934_v1 = vpack.c.bf16 %v1414_v59, %v1398_v56  ;;  %6459 = vmatpush3.bf16.msra.mxu0 %v7022_v46  ;;  %6481 = vmatpush3.bf16.msra.mxu1 %v7023_v47  ;;  %v7054_v39 = vld [vmem:[%s8929_s8 + $0x228] sm:$0xff]   ;;  %v7056_v41 = vld [vmem:[%s8929_s8 + $0x270] sm:$0xff]   ;;  %v7060_v46 = vld [vmem:[%s8929_s8 + $0x278] sm:$0xff]  }
 0x819   :  { %6460 = vmatprep.subr.bf16.mxu0 %v7024_v51  ;;  %6482 = vmatprep.subr.bf16.mxu1 %v7025_v54  ;;  %v7055_v40 = vld [vmem:[%s8929_s8 + $0x2a8] sm:$0xff]   ;;  %v7057_v43 = vld [vmem:[%s8929_s8 + $0x2f0] sm:$0xff]   ;;  %v7061_v47 = vld [vmem:[%s8929_s8 + $0x2f8] sm:$0xff]  }
 0x81a   :  { %v7058_v44 = vld [vmem:[%s8929_s8 + $0x230] sm:$0xff]   ;;  %v7062_v49 = vld [vmem:[%s8929_s8 + $0x238] sm:$0xff]   ;;  %v7064_v52 = vld [vmem:[%s8929_s8 + $0x340] sm:$0xff]  }
 0x81b   :  { %v7059_v45 = vld [vmem:[%s8929_s8 + $0x2b0] sm:$0xff]   ;;  %v7063_v50 = vld [vmem:[%s8929_s8 + $0x2b8] sm:$0xff]   ;;  %v7065_v53 = vld [vmem:[%s8929_s8 + $0x3c0] sm:$0xff]  }
 0x81c   :  { %6461 = vmatpush3.bf16.msra.mxu0 %v7026_v4  ;;  %6483 = vmatpush3.bf16.msra.mxu1 %v7027_v5  ;;  %v7066_v51 = vld [vmem:[%s8929_s8 + $0x300] sm:$0xff]   ;;  %v7068_v55 = vld [vmem:[%s8929_s8 + $0x348] sm:$0xff]   ;;  %v7075_v4 = vld [vmem:[%s8929_s8 + $0x390] sm:$0xff]  }
 0x81d   :  { %6462 = vmatprep.subr.bf16.mxu0 %v7028_v6  ;;  %6484 = vmatprep.subr.bf16.mxu1 %v7029_v7  ;;  %v7067_v54 = vld [vmem:[%s8929_s8 + $0x380] sm:$0xff]   ;;  %v7069_v56 = vld [vmem:[%s8929_s8 + $0x3c8] sm:$0xff]   ;;  %v7077_v5 = vld [vmem:[%s8929_s8 + $0x3d8] sm:$0xff]  }
 0x81e   :  { %v7070_v57 = vld [vmem:[%s8929_s8 + $0x308] sm:$0xff]   ;;  %v7078_v6 = vld [vmem:[%s8929_s8 + $0x318] sm:$0xff]  }
 0x81f   :  { %v7071_v59 = vld [vmem:[%s8929_s8 + $0x388] sm:$0xff]   ;;  %v7079_v7 = vld [vmem:[%s8929_s8 + $0x398] sm:$0xff]  }
 0x820   :  { %6463 = vmatpush3.bf16.msra.mxu0 %v7030_v10  ;;  %6485 = vmatpush3.bf16.msra.mxu1 %v7031_v11  ;;  %v7080_v10 = vld [vmem:[%s8929_s8 + $0x360] sm:$0xff]  }
 0x821   :  { %6492 = vmatprep.subr.bf16.mxu0 %v7032_v15  ;;  %6514 = vmatprep.subr.bf16.mxu1 %v7033_v16  ;;  %v7081_v11 = vld [vmem:[%s8929_s8 + $0x3e0] sm:$0xff]  }
 0x822   :  { %v7082_v15 = vld [vmem:[%s8929_s8 + $0x320] sm:$0xff]  }
 0x823   :  { %2577 = vmatmul.mubr.bf16.vlgmr.msra.gmra.mrb[40].mxu0 %v7860_v31  ;;  %2618 = vmatmul.mubr.bf16.vlgmr.msra.gmra.mrb[40].mxu1 %v7862_v32  ;;  %v7040_v31 = vld [vmem:[%s8929_s8 + $0x250] sm:$0xff]   ;;  %v7083_v16 = vld [vmem:[%s8929_s8 + $0x3a0] sm:$0xff]  }
 0x824   :  { %6493 = vmatpush3.bf16.msra.mxu0 %v7034_v17  ;;  %2658 = vmatprep.mubr.bf16.mxu0 %v7900_v20  ;;  %v7041_v32 = vld [vmem:[%s8929_s8 + $0x2d0] sm:$0xff]   ;;  %v7084_v17 = vld [vmem:[%s8929_s8 + $0x368] sm:$0xff]  }
 0x825   :  { %6515 = vmatpush3.bf16.msra.mxu1 %v7035_v18  ;;  %2699 = vmatprep.mubr.bf16.mxu1 %v7902_v21  ;;  %v7042_v20 = vld [vmem:[%s8929_s8 + $0x210] sm:$0xff]   ;;  %v7085_v18 = vld [vmem:[%s8929_s8 + $0x3e8] sm:$0xff]  }
 0x826   :  { %6494 = vmatprep.subr.bf16.mxu0 %v7036_v22  ;;  %6516 = vmatprep.subr.bf16.mxu1 %v7037_v23  ;;  %v7043_v21 = vld [vmem:[%s8929_s8 + $0x290] sm:$0xff]   ;;  %v7086_v22 = vld [vmem:[%s8929_s8 + $0x328] sm:$0xff]  }
 0x827   :  { %v7087_v23 = vld [vmem:[%s8929_s8 + $0x3a8] sm:$0xff]  }
 0x828   :  { %6495 = vmatpush3.bf16.msra.mxu0 %v7038_v25  ;;  %v7088_v25 = vld [vmem:[%s8929_s8 + $0x370] sm:$0xff]  }
 0x829   :  { %6517 = vmatpush3.bf16.msra.mxu1 %v7039_v26  ;;  %6496 = vmatprep.subr.bf16.mxu0 %v7040_v31  ;;  %v7089_v26 = vld [vmem:[%s8929_s8 + $0x3f0] sm:$0xff]  }
 0x82a   :  { %6518 = vmatprep.subr.bf16.mxu1 %v7041_v32  ;;  %v7090_v31 = vld [vmem:[%s8929_s8 + $0x330] sm:$0xff]  }
 0x82b   :  { %v7091_v32 = vld [vmem:[%s8929_s8 + $0x3b0] sm:$0xff]  }
 0x82c   :  { %6497 = vmatpush3.bf16.msra.mxu0 %v7042_v20  ;;  %v7092_v20 = vld [vmem:[%s8929_s8 + $0x378] sm:$0xff]  }
 0x82d   :  { %6519 = vmatpush3.bf16.msra.mxu1 %v7043_v21  ;;  %6498 = vmatprep.subr.bf16.mxu0 %v7044_v27  ;;  %v7093_v21 = vld [vmem:[%s8929_s8 + $0x3f8] sm:$0xff]  }
 0x82e   :  { %6520 = vmatprep.subr.bf16.mxu1 %v7045_v28  ;;  %v7094_v27 = vld [vmem:[%s8929_s8 + $0x338] sm:$0xff]  }
 0x82f   :  { %v7095_v28 = vld [vmem:[%s8929_s8 + $0x3b8] sm:$0xff]  }
 0x830   :  { %6499 = vmatpush3.bf16.msra.mxu0 %v7046_v29 }
 0x831   :  { %6521 = vmatpush3.bf16.msra.mxu1 %v7047_v30  ;;  %6500 = vmatprep.subr.bf16.mxu0 %v7048_v33  ;;  %v5753_v33 = vld [vmem:[%s8933_s9] ss:$0 sm:$0xff] }
 0x832   :  { %6522 = vmatprep.subr.bf16.mxu1 %v7049_v34 }
 0x834   :  { %6501 = vmatpush3.bf16.msra.mxu0 %v7050_v35 }
 0x835   :  { %6523 = vmatpush3.bf16.msra.mxu1 %v7051_v36  ;;  %6502 = vmatprep.subr.bf16.mxu0 %v7052_v37 }
 0x836   :  { %6524 = vmatprep.subr.bf16.mxu1 %v7053_v38 }
 0x838   :  { %6503 = vmatpush3.bf16.msra.mxu0 %v7054_v39 }
 0x839   :  { %6525 = vmatpush3.bf16.msra.mxu1 %v7055_v40  ;;  %6504 = vmatprep.subr.bf16.mxu0 %v7056_v41 }
 0x83a   :  { %6526 = vmatprep.subr.bf16.mxu1 %v7057_v43 }
 0x83c   :  { %6505 = vmatpush3.bf16.msra.mxu0 %v7058_v44 }
 0x83d   :  { %6527 = vmatpush3.bf16.msra.mxu1 %v7059_v45  ;;  %6506 = vmatprep.subr.bf16.mxu0 %v7060_v46 }
 0x83e   :  { %6528 = vmatprep.subr.bf16.mxu1 %v7061_v47 }
 0x840   :  { %6507 = vmatpush3.bf16.msra.mxu0 %v7062_v49 }
 0x841   :  { %6529 = vmatpush3.bf16.msra.mxu1 %v7063_v50  ;;  %6536 = vmatprep.subr.bf16.mxu0 %v7064_v52 }
 0x842   :  { %6558 = vmatprep.subr.bf16.mxu1 %v7065_v53 }
 0x843   :  { %2659 = vmatmul.mubr.bf16.vlgmr.msra.gmra.mrb[44].mxu0 %v7896_v19  ;;  %v7072_v19 = vld [vmem:[%s8929_s8 + $0x350] sm:$0xff]  }
 0x844   :  { %2700 = vmatmul.mubr.bf16.vlgmr.msra.gmra.mrb[44].mxu1 %v7898_v42  ;;  %6537 = vmatpush3.bf16.msra.mxu0 %v7066_v51  ;;  %v7073_v42 = vld [vmem:[%s8929_s8 + $0x3d0] sm:$0xff]  }
 0x845   :  { %2740 = vmatprep.mubr.bf16.mxu0 %v7932_v58  ;;  %6559 = vmatpush3.bf16.msra.mxu1 %v7067_v54  ;;  %v7074_v58 = vld [vmem:[%s8929_s8 + $0x310] sm:$0xff]  }
 0x846   :  { %2781 = vmatprep.mubr.bf16.mxu1 %v7934_v1  ;;  %6538 = vmatprep.subr.bf16.mxu0 %v7068_v55  ;;  %v7076_v1 = vld [vmem:[%s8929_s8 + $0x358] sm:$0xff]  }
 0x847   :  { %6560 = vmatprep.subr.bf16.mxu1 %v7069_v56 }
 0x848   :  { %6539 = vmatpush3.bf16.msra.mxu0 %v7070_v57 }
 0x849   :  { %6561 = vmatpush3.bf16.msra.mxu1 %v7071_v59  ;;  %6540 = vmatprep.subr.bf16.mxu0 %v7072_v19 }
 0x84a   :  { %6562 = vmatprep.subr.bf16.mxu1 %v7073_v42 }
 0x84c   :  { %6541 = vmatpush3.bf16.msra.mxu0 %v7074_v58 }
 0x84d   :  { %6563 = vmatpush3.bf16.msra.mxu1 %v7075_v4  ;;  %6542 = vmatprep.subr.bf16.mxu0 %v7076_v1 }
 0x84e   :  { %6564 = vmatprep.subr.bf16.mxu1 %v7077_v5 }
 0x850   :  { %6543 = vmatpush3.bf16.msra.mxu0 %v7078_v6 }
 0x851   :  { %6565 = vmatpush3.bf16.msra.mxu1 %v7079_v7  ;;  %6544 = vmatprep.subr.bf16.mxu0 %v7080_v10 }
 0x852   :  { %6566 = vmatprep.subr.bf16.mxu1 %v7081_v11 }
 0x854   :  { %6545 = vmatpush3.bf16.msra.mxu0 %v7082_v15 }
 0x855   :  { %6567 = vmatpush3.bf16.msra.mxu1 %v7083_v16  ;;  %6546 = vmatprep.subr.bf16.mxu0 %v7084_v17 }
 0x856   :  { %6568 = vmatprep.subr.bf16.mxu1 %v7085_v18 }
 0x858   :  { %6547 = vmatpush3.bf16.msra.mxu0 %v7086_v22 }
 0x859   :  { %6569 = vmatpush3.bf16.msra.mxu1 %v7087_v23  ;;  %6548 = vmatprep.subr.bf16.mxu0 %v7088_v25 }
 0x85a   :  { %6570 = vmatprep.subr.bf16.mxu1 %v7089_v26 }
 0x85c   :  { %6549 = vmatpush3.bf16.msra.mxu0 %v7090_v31 }
 0x85d   :  { %6571 = vmatpush3.bf16.msra.mxu1 %v7091_v32  ;;  %6550 = vmatprep.subr.bf16.mxu0 %v7092_v20 }
 0x85e   :  { %6572 = vmatprep.subr.bf16.mxu1 %v7093_v21 }
 0x860   :  { %6551 = vmatpush3.bf16.msra.mxu0 %v7094_v27 }
 0x861   :  { %6573 = vmatpush3.bf16.msra.mxu1 %v7095_v28  ;;  %6845 = vmatprep.subr.bf16.mxu0 %v7312_v0 }
 0x862   :  { %6853 = vmatprep.subr.bf16.mxu1 %v7312_v0 }
 0x863   :  { %2741 = vmatmul.mubr.bf16.vlgmr.msra.gmra.mrb[48].mxu0 %v7928_v60 }
 0x864   :  { %2782 = vmatmul.mubr.bf16.vlgmr.msra.gmra.mrb[48].mxu1 %v7930_v61  ;;  %6849 = vmatprep.mubr.msk.bf16.mxu0 %vm7313_vm0, %v7312_v0 }
 0x865   :  { %6855 = vmatprep.mubr.msk.bf16.mxu1 %vm7313_vm0, %v7312_v0 }
 0x8d6   :  { %v6420_v29 = vpop.f32.mrb[36].mxu0  ;;  %v6442_v30 = vpop.f32.mrb[36].mxu1 }
 0x8d7   :  { %v6421_v34 = vpop.f32.mrb[37].mxu0  ;;  %v6443_v35 = vpop.f32.mrb[37].mxu1 }
 0x8d8   :  { %v6422_v36 = vadd.f32 %v6421_v34, %v6420_v29  ;;  %v6444_v37 = vadd.f32 %v6443_v35, %v6442_v30  ;;  %v6423_v38 = vpop.f32.mrb[38].mxu0  ;;  %v6445_v60 = vpop.f32.mrb[38].mxu1 }
 0x8d9   :  { %v6424_v39 = vpop.f32.mrb[39].mxu0  ;;  %v6446_v61 = vpop.f32.mrb[39].mxu1 }
 0x8da   :  { %v2497_v40 = vadd.f32 %v6422_v36, %v5753_v33  ;;  %v6425_v41 = vadd.f32 %v6424_v39, %v6423_v38  ;;  %v6447_v43 = vadd.f32 %v6446_v61, %v6445_v60 }
 0x8dc   :  { %v2538_v44 = vadd.f32 %v6444_v37, %v2497_v40  ;;  %v2500_v45 = vadd.f32 %v6425_v41, %v5753_v33 }
 0x8de   :  { %v2541_v46 = vadd.f32 %v6447_v43, %v2500_v45 }
 0x8f6   :  { %v6464_v47 = vpop.f32.mrb[40].mxu0  ;;  %v6486_v49 = vpop.f32.mrb[40].mxu1 }
 0x8f7   :  { %v6465_v50 = vpop.f32.mrb[41].mxu0  ;;  %v6487_v52 = vpop.f32.mrb[41].mxu1 }
 0x8f8   :  { %v6466_v53 = vadd.f32 %v6465_v50, %v6464_v47  ;;  %v6488_v51 = vadd.f32 %v6487_v52, %v6486_v49  ;;  %v6467_v54 = vpop.f32.mrb[42].mxu0  ;;  %v6489_v55 = vpop.f32.mrb[42].mxu1 }
 0x8f9   :  { %v6468_v56 = vpop.f32.mrb[43].mxu0  ;;  %v6490_v57 = vpop.f32.mrb[43].mxu1 }
 0x8fa   :  { %v2579_v59 = vadd.f32 %v6466_v53, %v2538_v44  ;;  %v6469_v19 = vadd.f32 %v6468_v56, %v6467_v54  ;;  %v6491_v42 = vadd.f32 %v6490_v57, %v6489_v55  ;;  %v7097_v57 = vld [vmem:[%s8950_s23 + $0x18] sm:$0xff]  }
 0x8fc   :  { %v2620_v58 = vadd.f32 %v6488_v51, %v2579_v59  ;;  %v2582_v4 = vadd.f32 %v6469_v19, %v2541_v46 }
 0x8fe   :  { %v2623_v1 = vadd.f32 %v6491_v42, %v2582_v4 }
 0x916   :  { %v6508_v5 = vpop.f32.mrb[44].mxu0 }
 0x917   :  { %v6530_v6 = vpop.f32.mrb[44].mxu1  ;;  %v6509_v7 = vpop.f32.mrb[45].mxu0 }
 0x918   :  { %v6510_v10 = vadd.f32 %v6509_v7, %v6508_v5  ;;  %v6531_v11 = vpop.f32.mrb[45].mxu1  ;;  %v6511_v15 = vpop.f32.mrb[46].mxu0 }
 0x919   :  { %v6532_v16 = vadd.f32 %v6531_v11, %v6530_v6  ;;  %v6533_v17 = vpop.f32.mrb[46].mxu1  ;;  %v6512_v18 = vpop.f32.mrb[47].mxu0  ;;  %v5882_v6 = vld [vmem:[%s8934_s12] ss:$0 sm:$0xff] }
 0x91a   :  { %v2661_v22 = vadd.f32 %v6510_v10, %v2620_v58  ;;  %v6513_v23 = vadd.f32 %v6512_v18, %v6511_v15  ;;  %v6534_v25 = vpop.f32.mrb[47].mxu1 }
 0x91b   :  { %v6535_v26 = vadd.f32 %v6534_v25, %v6533_v17  ;;  %v5889_v25 = vld [vmem:[%s8924_s3 + $0x1] ss:$0 sm:$0xff]  ;;  %s8951_s3 = smov 80  }
 0x91c   :  { %v2702_v31 = vadd.f32 %v6532_v16, %v2661_v22  ;;  %v2664_v32 = vadd.f32 %v6513_v23, %v2623_v1  ;;  %v5883_v16 = vld [vmem:[%s8935_s13] ss:$0 sm:$0xff] }
 0x91e   :  { %v2705_v20 = vadd.f32 %v6535_v26, %v2664_v32 }
 0x936   :  { %v6552_v21 = vpop.f32.mrb[48].mxu0 }
 0x937   :  { %v6574_v27 = vpop.f32.mrb[48].mxu1  ;;  %v6553_v28 = vpop.f32.mrb[49].mxu0 }
 0x938   :  { %v6554_v29 = vadd.f32 %v6553_v28, %v6552_v21  ;;  %v6575_v30 = vpop.f32.mrb[49].mxu1  ;;  %v6555_v33 = vpop.f32.mrb[50].mxu0 }
 0x939   :  { %v6576_v34 = vadd.f32 %v6575_v30, %v6574_v27  ;;  %v6577_v35 = vpop.f32.mrb[50].mxu1  ;;  %v6556_v36 = vpop.f32.mrb[51].mxu0 }
 0x93a   :  { %v2743_v37 = vadd.f32 %v6554_v29, %v2702_v31  ;;  %v6557_v38 = vadd.f32 %v6556_v36, %v6555_v33  ;;  %v6578_v60 = vpop.f32.mrb[51].mxu1 }
 0x93b   :  { %v6579_v39 = vadd.f32 %v6578_v60, %v6577_v35 }
 0x93c   :  { %v2784_v61 = vadd.f32 %v6576_v34, %v2743_v37  ;;  %v2746_v40 = vadd.f32 %v6557_v38, %v2705_v20 }
 0x93e   :  { %v2787_v41 = vadd.f32 %v6579_v39, %v2746_v40  ;;  %v2790_v43 = vadd.f32 %v2784_v61, %v7616_v48 }
 0x940   :  { %v2794_v44 = vsel %vm82_vm1, %v2790_v43, 0.0  ;;  %v2791_v45 = vadd.f32 %v2787_v41, %v7618_v13  ;;  %v7096_v13 = vld [vmem:[%s8950_s23 + $0x10] sm:$0xff]   ;;  %v7310_v41 = vld [vmem:[%s8925_s1] sm:$0xff] }
 0x941   :  { %2795 = vadd.xlane.f32.xlu1 %v2794_v44  ;;  %6846 = vmatpush3.bf16.msra.mxu0 %v7096_v13 }
 0x942   :  { %v2797_v46 = vsel %vm82_vm1, %v2791_v45, 0.0  ;;  %6847 = vmatprep.subr.bf16.mxu0 %v7312_v0 }
 0x943   :  { %2798 = vadd.xlane.f32.xlu0 %v2797_v46  ;;  %v7311_v46 = vld [vmem:[%s8925_s1 + $0x8] sm:$0xff]  ;;  %s8953_s1 = smov 56  }
 0x945   :  { %6848 = vmatpush3.bf16.msra.mxu0 %v7097_v57 }
 0x946   :  { %6859 = vmatprep.subr.bf16.mxu0 %v7312_v0 }
 0x9ce   :  { %v2796_v47 = vpop.xlane.xlu1 %2795 }
 0x9cf   :  { %v2800_v49 = vmul.f32 0.03125, %v2796_v47 }
 0x9d0   :  { %v2799_v50 = vpop.xlane.xlu0 %2798 }
 0x9d1   :  { %v2802_v52 = vsub.f32 %v2790_v43, %v2800_v49  ;;  %v2801_v53 = vmul.f32 0.03125, %v2799_v50 }
 0x9d3   :  { %v2803_v51 = vsub.f32 %v2791_v45, %v2801_v53  ;;  %v2804_v54 = vmul.f32 %v2802_v52, %v2802_v52 }
 0x9d5   :  { %v2806_v55 = vsel %vm82_vm1, %v2804_v54, 0.0  ;;  %v2805_v56 = vmul.f32 %v2803_v51, %v2803_v51 }
 0x9d6   :  { %2807 = vadd.xlane.f32.xlu1 %v2806_v55 }
 0x9d7   :  { %v2809_v48 = vsel %vm82_vm1, %v2805_v56, 0.0 }
 0x9d8   :  { %2810 = vadd.xlane.f32.xlu0 %v2809_v48 }
 0xa63   :  { %v2808_v59 = vpop.xlane.xlu1 %2807 }
 0xa64   :  { %v2812_v19 = vmul.f32 0.03125, %v2808_v59 }
 0xa65   :  { %v2811_v42 = vpop.xlane.xlu0 %2810 }
 0xa66   :  { %v2814_v58 = vadd.f32 1e-05, %v2812_v19  ;;  %v2813_v4 = vmul.f32 0.03125, %v2811_v42 }
 0xa68   :  { %7266 = vrsqrt.f32 %v2814_v58  ;;  %v2815_v1 = vadd.f32 1e-05, %v2813_v4 }
 0xa6a   :  { %7268 = vrsqrt.f32 %v2815_v1 }
 0xa72   :  { %v7267_v5 = vpop.eup %7266 }
 0xa73   :  { %v2818_v7 = vmul.f32 %v7267_v5, %v2802_v52 }
 0xa74   :  { %v7269_v10 = vpop.eup %7268 }
 0xa75   :  { %v2826_v11 = vmul.f32 %v5882_v6, %v2818_v7  ;;  %v2819_v15 = vmul.f32 %v7269_v10, %v2803_v51 }
 0xa77   :  { %v2827_v17 = vmul.f32 %v5882_v6, %v2819_v15  ;;  %v8185_v18 = vadd.f32 %v5883_v16, %v2826_v11 }
 0xa79   :  { %v8187_v22 = vadd.f32 %v5883_v16, %v2827_v17 }
 0xa7b   :  { %v2836_v23 = vpack.c.bf16 %v8187_v22, %v8185_v18 }
 0xa7d   :  { %6850 = vmatmul.mubr.msk.bf16.vlgmr.msra.gmra.mrb[52].mxu0 %vm82_vm1, %v2836_v23 }
 0xa7e   :  { %6861 = vmatprep.mubr.msk.bf16.mxu0 %vm7313_vm0, %v7312_v0 }
 0xb50   :  { %v2899_v26 = vpop.f32.mrb[52].mxu0 }
 0xb51   :  { %v6851_v31 = vpop.f32.mrb[53].mxu0  ;;  %v2900_v20 = vadd.f32 %v5889_v25, %v2899_v26 }
 0xb52   :  { %v2902_v32 = vpop.f32.mrb[54].mxu0 }
 0xb53   :  { %v2903_v21 = vadd.f32 %v5889_v25, %v2902_v32  ;;  %v6852_v27 = vpop.f32.mrb[55].mxu0 }
 0xb55   :  { %v8197_v28 = vpack.c.bf16 %v2903_v21, %v2900_v20 }
 0xb57   :  { %3029 = vrot.lane.b32.xlu0 %v8197_v28, %s7317_s19  ;;  %2908 = vrot.lane.b32.xlu1 %v8197_v28, %s7315_s17 }
 0xb5b   :  { %3148 = vrot.lane.b32.xlu0 %v8197_v28, %s7319_s21  ;;  %3027 = vrot.lane.b32.xlu1 %v8197_v28, %s7314_s0 }
 0xb5f   :  { %3269 = vrot.lane.b32.xlu0 %v8197_v28, %s7320_s22  ;;  %3150 = vrot.lane.b32.xlu1 %v8197_v28, %s8951_s3  ;;  %s8954_s22 = smov 64  }
 0xb63   :  { %3271 = vrot.lane.b32.xlu1 %v8197_v28, %s8952_s26 }
 0xbc9   :  { %v2909_v29 = vpop.permute.xlu1 %2908  ;;  %v3030_v33 = vpop.permute.xlu0 %3029 }
 0xbca   :  { %v2914_v30 = vsel %vm131_vm2, %v2909_v29, 0  ;;  %v3035_v35 = vsel %vm131_vm2, %v3030_v33, 0 }
 0xbcb   :  { %6854 = vmatpush3.bf16.xpose.msra.mxu1 %v2914_v30 }
 0xbcc   :  { %6865 = vmatprep.subr.bf16.mxu1 %v7312_v0 }
 0xbcd   :  { %v3028_v34 = vpop.permute.xlu1 %3027  ;;  %v3149_v60 = vpop.permute.xlu0 %3148 }
 0xbd1   :  { %v3151_v36 = vpop.permute.xlu1 %3150  ;;  %v3270_v61 = vpop.permute.xlu0 %3269 }
 0xbd2   :  { %6856 = vmatmul.mubr.msk.bf16.vlgmr.msra.gmra.mrb[52].mxu1 %vm131_vm2, %v8197_v28  ;;  %v3156_v37 = vsel %vm131_vm2, %v3151_v36, 0 }
 0xbd3   :  { %6866 = vmatpush3.bf16.xpose.msra.mxu1 %v3035_v35  ;;  %6867 = vmatprep.mubr.msk.bf16.mxu1 %vm7313_vm0, %v7312_v0 }
 0xbd4   :  { %6877 = vmatprep.subr.bf16.mxu1 %v7312_v0 }
 0xbd5   :  { %v3272_v38 = vpop.permute.xlu1 %3271 }
 0xbd6   :  { %v3277_v39 = vsel %vm131_vm2, %v3272_v38, 0 }
 0xbda   :  { %6868 = vmatmul.mubr.msk.bf16.vlgmr.msra.gmra.mrb[56].mxu1 %vm131_vm2, %v3028_v34 }
 0xbdb   :  { %6878 = vmatpush3.bf16.xpose.msra.mxu1 %v3156_v37  ;;  %6879 = vmatprep.mubr.msk.bf16.mxu1 %vm7313_vm0, %v7312_v0 }
 0xbdc   :  { %6889 = vmatprep.subr.bf16.mxu1 %v7312_v0 }
 0xbe2   :  { %6880 = vmatmul.mubr.msk.bf16.vlgmr.msra.gmra.mrb[60].mxu1 %vm131_vm2, %v3149_v60 }
 0xbe3   :  { %6890 = vmatpush3.bf16.xpose.msra.mxu1 %v3277_v39  ;;  %6891 = vmatprep.mubr.msk.bf16.mxu1 %vm7313_vm0, %v7312_v0 }
 0xbe4   :  { %6901 = vmatprep.subr.bf16.mxu1 %v7312_v0 }
 0xbea   :  { %6892 = vmatmul.mubr.msk.bf16.vlgmr.msra.gmra.mrb[64].mxu1 %vm131_vm2, %v3270_v61 }
 0xbeb   :  { %6905 = vmatprep.mubr.msk.bf16.mxu1 %vm7313_vm0, %v7312_v0 }
 0xca5   :  { %v2950_v40 = vpop.f32.mrb[52].mxu1 }
 0xca6   :  { %v2951_v43 = vadd.f32 %v7310_v41, %v2950_v40  ;;  %v6857_v44 = vpop.f32.mrb[53].mxu1 }
 0xca7   :  { %v2953_v45 = vpop.f32.mrb[54].mxu1 }
 0xca8   :  { %v2954_v47 = vadd.f32 %v7311_v46, %v2953_v45  ;;  %v6858_v49 = vpop.f32.mrb[55].mxu1  ;;  %v2957_v50 = vsel %vm179_vm3, %v2951_v43, -inf }
 0xca9   :  { %2958 = vmax.xlane.f32.xlu1 %v2957_v50 }
 0xcaa   :  { %v2960_v52 = vsel %vm179_vm3, %v2954_v47, -inf }
 0xcab   :  { %2961 = vmax.xlane.f32.xlu0 %v2960_v52 }
 0xcad   :  { %v3071_v53 = vpop.f32.mrb[56].mxu1 }
 0xcae   :  { %v3072_v51 = vadd.f32 %v7310_v41, %v3071_v53  ;;  %v6869_v54 = vpop.f32.mrb[57].mxu1 }
 0xcaf   :  { %v3074_v55 = vpop.f32.mrb[58].mxu1 }
 0xcb0   :  { %v3075_v56 = vadd.f32 %v7311_v46, %v3074_v55  ;;  %v6870_v48 = vpop.f32.mrb[59].mxu1  ;;  %v3078_v13 = vsel %vm179_vm3, %v3072_v51, -inf }
 0xcb1   :  { %3079 = vmax.xlane.f32.xlu0 %v3078_v13 }
 0xcb2   :  { %v3081_v57 = vsel %vm179_vm3, %v3075_v56, -inf }
 0xcb3   :  { %3082 = vmax.xlane.f32.xlu1 %v3081_v57 }
 0xcb5   :  { %v3192_v59 = vpop.f32.mrb[60].mxu1 }
 0xcb6   :  { %v3193_v19 = vadd.f32 %v7310_v41, %v3192_v59  ;;  %v6881_v42 = vpop.f32.mrb[61].mxu1 }
 0xcb7   :  { %v3195_v58 = vpop.f32.mrb[62].mxu1 }
 0xcb8   :  { %v3196_v4 = vadd.f32 %v7311_v46, %v3195_v58  ;;  %v6882_v1 = vpop.f32.mrb[63].mxu1  ;;  %v3199_v5 = vsel %vm179_vm3, %v3193_v19, -inf }
 0xcb9   :  { %3200 = vmax.xlane.f32.xlu0 %v3199_v5 }
 0xcba   :  { %v3202_v6 = vsel %vm179_vm3, %v3196_v4, -inf }
 0xcbb   :  { %3203 = vmax.xlane.f32.xlu1 %v3202_v6 }
 0xcbd   :  { %v3313_v7 = vpop.f32.mrb[64].mxu1 }
 0xcbe   :  { %v3314_v10 = vadd.f32 %v7310_v41, %v3313_v7  ;;  %v6893_v11 = vpop.f32.mrb[65].mxu1 }
 0xcbf   :  { %v3316_v15 = vpop.f32.mrb[66].mxu1 }
 0xcc0   :  { %v3317_v16 = vadd.f32 %v7311_v46, %v3316_v15  ;;  %v6894_v17 = vpop.f32.mrb[67].mxu1  ;;  %v3320_v23 = vsel %vm179_vm3, %v3314_v10, -inf }
 0xcc1   :  { %3321 = vmax.xlane.f32.xlu0 %v3320_v23 }
 0xcc2   :  { %v3323_v25 = vsel %vm179_vm3, %v3317_v16, -inf }
 0xcc3   :  { %3324 = vmax.xlane.f32.xlu1 %v3323_v25 }
 0xd36   :  { %v2959_v26 = vpop.xlane.xlu1 %2958 }
 0xd37   :  { %v2963_v31 = vsub.f32 %v2951_v43, %v2959_v26 }
 0xd38   :  { %v2962_v32 = vpop.xlane.xlu0 %2961 }
 0xd39   :  { %v2965_v20 = vmul.f32 1.442695, %v2963_v31  ;;  %v2964_v21 = vsub.f32 %v2954_v47, %v2962_v32 }
 0xd3b   :  { %7270 = vpow2.f32 %v2965_v20  ;;  %v2967_v27 = vmul.f32 1.442695, %v2964_v21 }
 0xd3d   :  { %7272 = vpow2.f32 %v2967_v27 }
 0xd3e   :  { %v3080_v29 = vpop.xlane.xlu0 %3079 }
 0xd3f   :  { %v3084_v30 = vsub.f32 %v3072_v51, %v3080_v29 }
 0xd40   :  { %v3083_v39 = vpop.xlane.xlu1 %3082 }
 0xd41   :  { %v3086_v33 = vmul.f32 1.442695, %v3084_v30  ;;  %v3085_v61 = vsub.f32 %v3075_v56, %v3083_v39 }
 0xd43   :  { %7274 = vpow2.f32 %v3086_v33  ;;  %v3088_v43 = vmul.f32 1.442695, %v3085_v61 }
 0xd45   :  { %v7271_v34 = vpop.eup %7270  ;;  %7276 = vpow2.f32 %v3088_v43 }
 0xd46   :  { %v2969_v35 = vsel %vm179_vm3, %v7271_v34, 0.0  ;;  %v3201_v41 = vpop.xlane.xlu0 %3200 }
 0xd47   :  { %v7273_v36 = vpop.eup %7272  ;;  %2970 = vadd.xlane.f32.xlu0 %v2969_v35  ;;  %v3205_v46 = vsub.f32 %v3193_v19, %v3201_v41 }
 0xd48   :  { %v2972_v37 = vsel %vm179_vm3, %v7273_v36, 0.0  ;;  %v3204_v40 = vpop.xlane.xlu1 %3203 }
 0xd49   :  { %2973 = vadd.xlane.f32.xlu1 %v2972_v37  ;;  %v3206_v44 = vsub.f32 %v3196_v4, %v3204_v40  ;;  %v3207_v52 = vmul.f32 1.442695, %v3205_v46 }
 0xd4b   :  { %v3209_v49 = vmul.f32 1.442695, %v3206_v44 }
 0xd4d   :  { %v8250_v38 = vpop.eup %7274  ;;  %7278 = vpow2.f32 %v3209_v49 }
 0xd4e   :  { %v3090_v60 = vsel %vm179_vm3, %v8250_v38, 0.0  ;;  %v3322_v47 = vpop.xlane.xlu0 %3321  ;;  %7280 = vpow2.f32 %v3207_v52 }
 0xd4f   :  { %3091 = vadd.xlane.f32.xlu0 %v3090_v60  ;;  %v3326_v53 = vsub.f32 %v3314_v10, %v3322_v47  ;;  %v7277_v55 = vpop.eup %7276 }
 0xd50   :  { %v3325_v45 = vpop.xlane.xlu1 %3324  ;;  %v3093_v56 = vsel %vm179_vm3, %v7277_v55, 0.0 }
 0xd51   :  { %v3327_v50 = vsub.f32 %v3317_v16, %v3325_v45  ;;  %v3328_v54 = vmul.f32 1.442695, %v3326_v53  ;;  %v7098_v53 = vld [vmem:[%s8926_s4 + $0x10] sm:$0xff]  }
 0xd52   :  { %6902 = vmatpush3.bf16.msra.mxu1 %v7098_v53 }
 0xd53   :  { %v3330_v51 = vmul.f32 1.442695, %v3327_v50  ;;  %6903 = vmatprep.subr.bf16.mxu1 %v7312_v0 }
 0xd55   :  { %7282 = vpow2.f32 %v3330_v51 }
 0xd56   :  { %7284 = vpow2.f32 %v3328_v54 }
 0xd57   :  { %v7279_v48 = vpop.eup %7278 }
 0xd58   :  { %v7281_v13 = vpop.eup %7280  ;;  %v3214_v57 = vsel %vm179_vm3, %v7279_v48, 0.0 }
 0xd59   :  { %v3211_v19 = vsel %vm179_vm3, %v7281_v13, 0.0 }
 0xd5a   :  { %3101 = vrot.lane.b32.xlu1 %v8197_v28, %s8953_s1 }
 0xd5f   :  { %v7283_v59 = vpop.eup %7282 }
 0xd60   :  { %v7285_v42 = vpop.eup %7284  ;;  %v3335_v58 = vsel %vm179_vm3, %v7283_v59, 0.0 }
 0xd61   :  { %v3332_v4 = vsel %vm179_vm3, %v7285_v42, 0.0 }
 0xd65   :  { %2980 = vrot.lane.b32.xlu0 %v8197_v28, %s8954_s22 }
 0xd7e   :  { %3094 = vadd.xlane.f32.xlu1 %v3093_v56 }
 0xd82   :  { %3215 = vadd.xlane.f32.xlu1 %v3214_v57 }
 0xd84   :  { %3212 = vadd.xlane.f32.xlu0 %v3211_v19 }
 0xd86   :  { %3336 = vadd.xlane.f32.xlu1 %v3335_v58 }
 0xd88   :  { %3333 = vadd.xlane.f32.xlu0 %v3332_v4 }
 0xd97   :  { %3222 = vrot.lane.b32.xlu1 %v8197_v28, %s8955_s28 }
 0xd9e   :  { %3343 = vrot.lane.b32.xlu0 %v8197_v28, %s8956_s18 }
 0xdd4   :  { %v2971_v1 = vpop.xlane.xlu0 %2970 }
 0xdd5   :  { %7286 = vrcp.f32 %v2971_v1 }
 0xdd6   :  { %v2974_v5 = vpop.xlane.xlu1 %2973 }
 0xdd7   :  { %7288 = vrcp.f32 %v2974_v5 }
 0xdda   :  { %v3102_v23 = vpop.permute.xlu1 %3101 }
 0xddc   :  { %v3092_v6 = vpop.xlane.xlu0 %3091 }
 0xddd   :  { %7290 = vrcp.f32 %v3092_v6 }
 0xddf   :  { %v7287_v7 = vpop.eup %7286 }
 0xde0   :  { %v2981_v10 = vpop.permute.xlu0 %2980  ;;  %v2977_v15 = vmul.f32 %v7287_v7, %v7271_v34 }
 0xde1   :  { %v7289_v11 = vpop.eup %7288  ;;  %6860 = vmatpush3.bf16.msra.mxu0 %v2981_v10 }
 0xde2   :  { %v2978_v16 = vmul.f32 %v7289_v11, %v7273_v36  ;;  %6871 = vmatprep.subr.bf16.mxu0 %v7312_v0 }
 0xde4   :  { %v2979_v17 = vpack.c.bf16 %v2978_v16, %v2977_v15 }
 0xde6   :  { %6862 = vmatmul.mubr.msk.bf16.vlgmr.msra.gmra.mrb[56].mxu0 %vm179_vm3, %v2979_v17 }
 0xde7   :  { %6872 = vmatpush3.bf16.msra.mxu0 %v3102_v23  ;;  %6873 = vmatprep.mubr.msk.bf16.mxu0 %vm7313_vm0, %v7312_v0  ;;  %v7291_v31 = vpop.eup %7290 }
 0xde8   :  { %6883 = vmatprep.subr.bf16.mxu0 %v7312_v0  ;;  %v3098_v27 = vmul.f32 %v7291_v31, %v8250_v38 }
 0xe0b   :  { %v3095_v28 = vpop.xlane.xlu1 %3094 }
 0xe0c   :  { %7292 = vrcp.f32 %v3095_v28 }
 0xe0f   :  { %v3216_v25 = vpop.xlane.xlu1 %3215 }
 0xe10   :  { %7294 = vrcp.f32 %v3216_v25 }
 0xe11   :  { %v3213_v26 = vpop.xlane.xlu0 %3212 }
 0xe12   :  { %7296 = vrcp.f32 %v3213_v26 }
 0xe13   :  { %v3337_v32 = vpop.xlane.xlu1 %3336 }
 0xe15   :  { %v3334_v20 = vpop.xlane.xlu0 %3333 }
 0xe16   :  { %v7293_v21 = vpop.eup %7292  ;;  %7298 = vrcp.f32 %v3334_v20 }
 0xe17   :  { %v3099_v29 = vmul.f32 %v7293_v21, %v7277_v55  ;;  %7300 = vrcp.f32 %v3337_v32  ;;  %v3223_v34 = vpop.permute.xlu1 %3222 }
 0xe19   :  { %v3100_v30 = vpack.c.bf16 %v3099_v29, %v3098_v27  ;;  %v3344_v38 = vpop.permute.xlu0 %3343  ;;  %v5906_v27 = vld [vmem:[%s8927_s5 + $0x1] ss:$0 sm:$0xff] }
 0xe1a   :  { %v7295_v33 = vpop.eup %7294 }
 0xe1b   :  { %6874 = vmatmul.mubr.msk.bf16.vlgmr.msra.gmra.mrb[60].mxu0 %vm179_vm3, %v3100_v30  ;;  %v3220_v37 = vmul.f32 %v7295_v33, %v7279_v48 }
 0xe1c   :  { %v7297_v35 = vpop.eup %7296  ;;  %6884 = vmatpush3.bf16.msra.mxu0 %v3223_v34  ;;  %6885 = vmatprep.mubr.msk.bf16.mxu0 %vm7313_vm0, %v7312_v0 }
 0xe1d   :  { %v3219_v36 = vmul.f32 %v7297_v35, %v7281_v13  ;;  %6895 = vmatprep.subr.bf16.mxu0 %v7312_v0  ;;  %v7099_v13 = vld [vmem:[%s8926_s4 + $0x18] sm:$0xff]  }
 0xe1e   :  { %6904 = vmatpush3.bf16.msra.mxu1 %v7099_v13  ;;  %v5938_v13 = vld [vmem:[%s8928_s6 + $0x1c0] sm:$0xff] }
 0xe1f   :  { %v3221_v60 = vpack.c.bf16 %v3220_v37, %v3219_v36 }
 0xe20   :  { %v7299_v39 = vpop.eup %7298 }
 0xe21   :  { %v7301_v61 = vpop.eup %7300  ;;  %v3340_v40 = vmul.f32 %v7299_v39, %v7285_v42 }
 0xe22   :  { %v3341_v41 = vmul.f32 %v7301_v61, %v7283_v59 }
 0xe23   :  { %6886 = vmatmul.mubr.msk.bf16.vlgmr.msra.gmra.mrb[64].mxu0 %vm179_vm3, %v3221_v60 }
 0xe24   :  { %6896 = vmatpush3.bf16.msra.mxu0 %v3344_v38  ;;  %6897 = vmatprep.mubr.msk.bf16.mxu0 %vm7313_vm0, %v7312_v0  ;;  %v3342_v43 = vpack.c.bf16 %v3341_v41, %v3340_v40 }
 0xe2b   :  { %6898 = vmatmul.mubr.msk.bf16.vlgmr.msra.gmra.mrb[68].mxu0 %vm179_vm3, %v3342_v43 }
 0xe2c   :  { %3852 = vmatprep.mubr.bf16.mxu0 %v7328_v24 }
 0xeb9   :  { %v3020_v44 = vpop.f32.mrb[56].mxu0 }
 0xeba   :  { %v6863_v45 = vpop.f32.mrb[57].mxu0 }
 0xebb   :  { %v3023_v46 = vpop.f32.mrb[58].mxu0 }
 0xebc   :  { %v6864_v47 = vpop.f32.mrb[59].mxu0 }
 0xeee   :  { %v3141_v49 = vpop.f32.mrb[60].mxu0 }
 0xeef   :  { %v6875_v50 = vpop.f32.mrb[61].mxu0 }
 0xef0   :  { %v3144_v52 = vpop.f32.mrb[62].mxu0  ;;  %v5922_v50 = vld [vmem:[%s8928_s6 + $0x140] sm:$0xff] }
 0xef1   :  { %v6949_v51 = vpack.i.bf16 %v3144_v52, %v3141_v49  ;;  %v6876_v54 = vpop.f32.mrb[63].mxu0  ;;  %v5915_v52 = vld [vmem:[%s8928_s6 + $0x108] sm:$0xff] }
 0xef3   :  { %6950 = vrot.lane.b32.xlu1 %v6949_v51, %s8957_s27  ;;  %v5923_v51 = vld [vmem:[%s8928_s6 + $0x148] sm:$0xff] }
 0xef6   :  { %v3262_v55 = vpop.f32.mrb[64].mxu0 }
 0xef7   :  { %v6887_v56 = vpop.f32.mrb[65].mxu0 }
 0xef8   :  { %v3265_v48 = vpop.f32.mrb[66].mxu0  ;;  %v5951_v56 = vcombine.high %v5915_v52, %v5923_v51 }
 0xef9   :  { %v6954_v57 = vpack.i.bf16 %v3265_v48, %v3262_v55  ;;  %v6888_v59 = vpop.f32.mrb[67].mxu0  ;;  %v5950_v55 = vcombine.low %v5915_v52, %v5923_v51  ;;  %v5930_v48 = vld [vmem:[%s8928_s6 + $0x180] sm:$0xff]  ;;  %v5943_v51 = vld [vmem:[%s8928_s6 + $0x1e8] sm:$0xff] }
 0xefa   :  { %3863 = vmatprep.subr.bf16.mxu1 %v5951_v56  ;;  %v5965_v59 = vcombine.high %v5930_v48, %v5938_v13  ;;  %v5942_v52 = vld [vmem:[%s8928_s6 + $0x1e0] sm:$0xff] }
 0xefb   :  { %6955 = vrot.lane.b32.xlu0 %v6954_v57, %s8958_s24  ;;  %v5931_v57 = vld [vmem:[%s8928_s6 + $0x188] sm:$0xff] }
 0xefe   :  { %v3383_v19 = vpop.f32.mrb[68].mxu0 }
 0xeff   :  { %v6899_v42 = vpop.f32.mrb[69].mxu0 }
 0xf00   :  { %v3386_v58 = vpop.f32.mrb[70].mxu0  ;;  %v5964_v42 = vcombine.low %v5930_v48, %v5938_v13  ;;  %v5920_v13 = vld [vmem:[%s8928_s6 + $0x130] sm:$0xff] }
 0xf01   :  { %v6959_v4 = vpack.i.bf16 %v3386_v58, %v3383_v19  ;;  %v6900_v1 = vpop.f32.mrb[71].mxu0  ;;  %v5939_v19 = vld [vmem:[%s8928_s6 + $0x1c8] sm:$0xff] }
 0xf02   :  { %v5966_v58 = vcombine.low %v5931_v57, %v5939_v19  ;;  %v5916_v1 = vld [vmem:[%s8928_s6 + $0x110] sm:$0xff] }
 0xf03   :  { %6960 = vrot.lane.b32.xlu1 %v6959_v4, %s8959_s25  ;;  %v5967_v4 = vcombine.high %v5931_v57, %v5939_v19  ;;  %v5928_v57 = vld [vmem:[%s8928_s6 + $0x170] sm:$0xff]  ;;  %v5929_v19 = vld [vmem:[%s8928_s6 + $0x178] sm:$0xff] }
 0xf65   :  { %v6951_v5 = vpop.permute.xlu1 %6950 }
 0xf66   :  { %v6953_v7 = vunpack.i.h.bf16 %v6951_v5  ;;  %v6952_v10 = vunpack.i.l.bf16 %v6951_v5  ;;  %v5924_v5 = vld [vmem:[%s8928_s6 + $0x150] sm:$0xff] }
 0xf68   :  { %v3415_v17 = vsel %vm131_vm2, %v3023_v46, %v6953_v7  ;;  %v3414_v23 = vsel %vm131_vm2, %v3020_v44, %v6952_v10  ;;  %v5952_v7 = vcombine.low %v5916_v1, %v5924_v5  ;;  %v5953_v10 = vcombine.high %v5916_v1, %v5924_v5  ;;  %v5936_v5 = vld [vmem:[%s8928_s6 + $0x1b0] sm:$0xff] }
 0xf6d   :  { %v6956_v6 = vpop.permute.xlu0 %6955 }
 0xf6e   :  { %v6958_v11 = vunpack.i.h.bf16 %v6956_v6  ;;  %v6957_v15 = vunpack.i.l.bf16 %v6956_v6  ;;  %v5917_v6 = vld [vmem:[%s8928_s6 + $0x118] sm:$0xff] }
 0xf70   :  { %v3417_v26 = vsel %vm179_vm3, %v3415_v17, %v6958_v11  ;;  %v3416_v31 = vsel %vm179_vm3, %v3414_v23, %v6957_v15  ;;  %v5925_v11 = vld [vmem:[%s8928_s6 + $0x158] sm:$0xff] }
 0xf71   :  { %v5954_v15 = vcombine.low %v5917_v6, %v5925_v11 }
 0xf75   :  { %v6961_v16 = vpop.permute.xlu1 %6960 }
 0xf76   :  { %v6963_v28 = vunpack.i.h.bf16 %v6961_v16  ;;  %v6962_v25 = vunpack.i.l.bf16 %v6961_v16  ;;  %v5955_v16 = vcombine.high %v5917_v6, %v5925_v11  ;;  %v5944_v6 = vld [vmem:[%s8928_s6 + $0x1f0] sm:$0xff]  ;;  %v5960_v11 = vcombine.low %v5920_v13, %v5928_v57 }
 0xf78   :  { %v3419_v32 = vsel %vm641_vm4, %v3417_v26, %v6963_v28  ;;  %v3418_v20 = vsel %vm641_vm4, %v3416_v31, %v6962_v25 }
 0xf79   :  { %v3420_v21 = vpack.c.bf16 %v3419_v32, %v3418_v20 }
 0xf7b   :  { %6906 = vmatmul.mubr.msk.bf16.vlgmr.msra.gmra.mrb[68].mxu1 %vm82_vm1, %v3420_v21  ;;  %v5912_v21 = vld [vmem:[%s8930_s10 + $0x1] ss:$0 sm:$0xff] }
 0xf7c   :  { %3895 = vmatprep.mubr.bf16.mxu1 %v7328_v24  ;;  %3864 = vmatpush1.bf16.msra.mxu1 %v5950_v55 }
 0xf7d   :  { %3865 = vmatprep.subr.bf16.mxu1 %v5967_v4  ;;  %v5961_v4 = vcombine.high %v5920_v13, %v5928_v57 }
 0xf80   :  { %3866 = vmatpush1.bf16.msra.mxu1 %v5966_v58 }
 0xf81   :  { %3949 = vmatprep.subr.bf16.mxu1 %v5955_v16  ;;  %v5977_v16 = vcombine.high %v5936_v5, %v5944_v6 }
0x104e   :  { %v3483_v29 = vpop.f32.mrb[68].mxu1 }
0x104f   :  { %v3484_v30 = vadd.f32 %v5906_v27, %v3483_v29  ;;  %v6907_v33 = vpop.f32.mrb[69].mxu1 }
0x1050   :  { %v3486_v34 = vpop.f32.mrb[70].mxu1  ;;  %v5913_v33 = vld [vmem:[%s8931_s11 + $0x1] ss:$0 sm:$0xff] }
0x1051   :  { %v3487_v35 = vadd.f32 %v5906_v27, %v3486_v34  ;;  %v6908_v36 = vpop.f32.mrb[71].mxu1  ;;  %v3490_v37 = vadd.f32 %v3484_v30, %v8185_v18 }
0x1052   :  { %v5940_v36 = vld [vmem:[%s8928_s6 + $0x1d0] sm:$0xff] }
0x1053   :  { %v3496_v60 = vsel %vm82_vm1, %v3490_v37, 0.0  ;;  %v3491_v39 = vadd.f32 %v3487_v35, %v8187_v22  ;;  %v5914_v22 = vld [vmem:[%s8928_s6 + $0x100] sm:$0xff]  ;;  %v5932_v35 = vld [vmem:[%s8928_s6 + $0x190] sm:$0xff] }
0x1054   :  { %3497 = vadd.xlane.f32.xlu0 %v3496_v60  ;;  %v5949_v53 = vcombine.high %v5914_v22, %v5922_v50  ;;  %v5948_v54 = vcombine.low %v5914_v22, %v5922_v50  ;;  %v5941_v60 = vld [vmem:[%s8928_s6 + $0x1d8] sm:$0xff]  ;;  %v5934_v50 = vld [vmem:[%s8928_s6 + $0x1a0] sm:$0xff] }
0x1055   :  { %v3499_v38 = vsel %vm82_vm1, %v3491_v39, 0.0  ;;  %v5973_v56 = vcombine.high %v5934_v50, %v5942_v52 }
0x1056   :  { %3500 = vadd.xlane.f32.xlu1 %v3499_v38  ;;  %3820 = vmatprep.subr.bf16.mxu0 %v5949_v53  ;;  %v5935_v53 = vld [vmem:[%s8928_s6 + $0x1a8] sm:$0xff] }
0x1057   :  { %3821 = vmatpush1.bf16.msra.mxu0 %v5948_v54  ;;  %v5975_v48 = vcombine.high %v5935_v53, %v5943_v51  ;;  %v5974_v58 = vcombine.low %v5935_v53, %v5943_v51  ;;  %v7129_v53 = vld [vmem:[%s8929_s8 + $0x4f8] sm:$0xff]  }
0x1058   :  { %3822 = vmatprep.subr.bf16.mxu0 %v5965_v59  ;;  %v5921_v59 = vld [vmem:[%s8928_s6 + $0x138] sm:$0xff] }
0x1059   :  { %v5963_v1 = vcombine.high %v5921_v59, %v5929_v19  ;;  %v7130_v51 = vld [vmem:[%s8929_s8 + $0x438] sm:$0xff]  }
0x105b   :  { %3823 = vmatpush1.bf16.msra.mxu0 %v5964_v42  ;;  %v5972_v42 = vcombine.low %v5934_v50, %v5942_v52  ;;  %v7127_v50 = vld [vmem:[%s8929_s8 + $0x4b0] sm:$0xff]   ;;  %v7128_v52 = vld [vmem:[%s8929_s8 + $0x478] sm:$0xff]  }
0x105c   :  { %3906 = vmatprep.subr.bf16.mxu0 %v5953_v10  ;;  %v5945_v10 = vld [vmem:[%s8928_s6 + $0x1f8] sm:$0xff] }
0x10e1   :  { %v3498_v61 = vpop.xlane.xlu0 %3497 }
0x10e2   :  { %v3502_v40 = vmul.f32 0.03125, %v3498_v61 }
0x10e3   :  { %v3501_v41 = vpop.xlane.xlu1 %3500 }
0x10e4   :  { %v3504_v43 = vsub.f32 %v3490_v37, %v3502_v40  ;;  %v3503_v44 = vmul.f32 0.03125, %v3501_v41  ;;  %v5933_v37 = vld [vmem:[%s8928_s6 + $0x198] sm:$0xff]  ;;  %v5969_v40 = vcombine.high %v5932_v35, %v5940_v36 }
0x10e5   :  { %v5971_v41 = vcombine.high %v5933_v37, %v5941_v60 }
0x10e6   :  { %v3505_v45 = vsub.f32 %v3491_v39, %v3503_v44  ;;  %v3506_v46 = vmul.f32 %v3504_v43, %v3504_v43  ;;  %v5926_v44 = vld [vmem:[%s8928_s6 + $0x160] sm:$0xff] }
0x10e8   :  { %v3508_v47 = vsel %vm82_vm1, %v3506_v46, 0.0  ;;  %v3507_v49 = vmul.f32 %v3505_v45, %v3505_v45  ;;  %v5927_v46 = vld [vmem:[%s8928_s6 + $0x168] sm:$0xff] }
0x10e9   :  { %3509 = vadd.xlane.f32.xlu0 %v3508_v47  ;;  %v5968_v47 = vcombine.low %v5932_v35, %v5940_v36  ;;  %v7112_v35 = vld [vmem:[%s8929_s8 + $0x458] sm:$0xff]  }
0x10ea   :  { %v3511_v18 = vsel %vm82_vm1, %v3507_v49, 0.0  ;;  %v5970_v49 = vcombine.low %v5933_v37, %v5941_v60  ;;  %v7113_v36 = vld [vmem:[%s8929_s8 + $0x4d8] sm:$0xff]  }
0x10eb   :  { %v7114_v37 = vld [vmem:[%s8929_s8 + $0x418] sm:$0xff]  }
0x10ec   :  { %v7115_v60 = vld [vmem:[%s8929_s8 + $0x498] sm:$0xff]  }
0x10ed   :  { %3512 = vadd.xlane.f32.xlu0 %v3511_v18 }
0x1176   :  { %v3510_v17 = vpop.xlane.xlu0 %3509 }
0x1177   :  { %v3514_v23 = vmul.f32 0.03125, %v3510_v17 }
0x1179   :  { %v3516_v28 = vadd.f32 1e-05, %v3514_v23  ;;  %v5976_v23 = vcombine.low %v5936_v5, %v5944_v6 }
0x117a   :  { %v3513_v25 = vpop.xlane.xlu0 %3512 }
0x117b   :  { %7302 = vrsqrt.f32 %v3516_v28  ;;  %v3515_v26 = vmul.f32 0.03125, %v3513_v25  ;;  %v7100_v25 = vld [vmem:[%s8929_s8 + $0x440] sm:$0xff]  }
0x117d   :  { %v3517_v31 = vadd.f32 1e-05, %v3515_v26  ;;  %v7101_v26 = vld [vmem:[%s8929_s8 + $0x4c0] sm:$0xff]  }
0x117f   :  { %7304 = vrsqrt.f32 %v3517_v31  ;;  %v7102_v31 = vld [vmem:[%s8929_s8 + $0x400] sm:$0xff]  }
0x1185   :  { %v7303_v32 = vpop.eup %7302 }
0x1186   :  { %v3520_v20 = vmul.f32 %v7303_v32, %v3504_v43  ;;  %v5918_v43 = vld [vmem:[%s8928_s6 + $0x120] sm:$0xff] }
0x1187   :  { %v5957_v18 = vcombine.high %v5918_v43, %v5926_v44  ;;  %v5956_v54 = vcombine.low %v5918_v43, %v5926_v44  ;;  %v7103_v32 = vld [vmem:[%s8929_s8 + $0x480] sm:$0xff]   ;;  %v7120_v44 = vld [vmem:[%s8929_s8 + $0x468] sm:$0xff]  }
0x1188   :  { %v3528_v29 = vmul.f32 %v5912_v21, %v3520_v20  ;;  %v7104_v20 = vld [vmem:[%s8929_s8 + $0x448] sm:$0xff]   ;;  %v7119_v43 = vld [vmem:[%s8929_s8 + $0x4a0] sm:$0xff]  }
0x1189   :  { %v7305_v27 = vpop.eup %7304 }
0x118a   :  { %v3521_v30 = vmul.f32 %v7305_v27, %v3505_v45  ;;  %v8363_v39 = vadd.f32 %v5913_v33, %v3528_v29  ;;  %v5919_v45 = vld [vmem:[%s8928_s6 + $0x128] sm:$0xff]  ;;  %v7108_v29 = vld [vmem:[%s8929_s8 + $0x450] sm:$0xff]  }
0x118b   :  { %v5959_v22 = vcombine.high %v5919_v45, %v5927_v46  ;;  %v5958_v55 = vcombine.low %v5919_v45, %v5927_v46  ;;  %v7107_v27 = vld [vmem:[%s8929_s8 + $0x488] sm:$0xff]  }
0x118c   :  { %v3529_v34 = vmul.f32 %v5912_v21, %v3521_v30  ;;  %v7106_v21 = vld [vmem:[%s8929_s8 + $0x408] sm:$0xff]   ;;  %v7109_v30 = vld [vmem:[%s8929_s8 + $0x4d0] sm:$0xff]  }
0x118d   :  { %v7121_v45 = vld [vmem:[%s8929_s8 + $0x4e8] sm:$0xff]  }
0x118e   :  { %v8365_v38 = vadd.f32 %v5913_v33, %v3529_v34  ;;  %v7110_v33 = vld [vmem:[%s8929_s8 + $0x410] sm:$0xff]   ;;  %v7122_v46 = vld [vmem:[%s8929_s8 + $0x428] sm:$0xff]  }
0x118f   :  { %v7111_v34 = vld [vmem:[%s8929_s8 + $0x490] sm:$0xff]  }
0x1190   :  { %v8369_v61 = vpack.c.bf16 %v8365_v38, %v8363_v39 }
0x1192   :  { %5980 = vmatmul.mubr.msk.bf16.vlgmr.msra.gmra.mrb[72].mxu0 %vm82_vm1, %v8369_v61  ;;  %5981 = vmatmul.mubr.msk.bf16.vlgmr.msra.gmra.mrb[72].mxu1 %vm82_vm1, %v8369_v61 }
0x1193   :  { %3907 = vmatpush1.bf16.msra.mxu0 %v5952_v7  ;;  %3950 = vmatpush1.bf16.msra.mxu1 %v5954_v15  ;;  %v5937_v7 = vld [vmem:[%s8928_s6 + $0x1b8] sm:$0xff]  ;;  %v5962_v15 = vcombine.low %v5921_v59, %v5929_v19 }
0x1194   :  { %3908 = vmatprep.subr.bf16.mxu0 %v5969_v40  ;;  %3951 = vmatprep.subr.bf16.mxu1 %v5971_v41  ;;  %v5979_v17 = vcombine.high %v5937_v7, %v5945_v10  ;;  %v5978_v28 = vcombine.low %v5937_v7, %v5945_v10  ;;  %v7117_v40 = vld [vmem:[%s8929_s8 + $0x4e0] sm:$0xff]  }
0x1195   :  { %3938 = vmatprep.mubr.bf16.mxu0 %v7328_v24  ;;  %3981 = vmatprep.mubr.bf16.mxu1 %v7328_v24  ;;  %v7118_v41 = vld [vmem:[%s8929_s8 + $0x420] sm:$0xff]  }
0x1197   :  { %3909 = vmatpush1.bf16.msra.mxu0 %v5968_v47  ;;  %3952 = vmatpush1.bf16.msra.mxu1 %v5970_v49  ;;  %v7123_v47 = vld [vmem:[%s8929_s8 + $0x4a8] sm:$0xff]   ;;  %v7124_v49 = vld [vmem:[%s8929_s8 + $0x470] sm:$0xff]  }
0x1198   :  { %3992 = vmatprep.subr.bf16.mxu0 %v5957_v18  ;;  %4035 = vmatprep.subr.bf16.mxu1 %v5959_v22  ;;  %v7125_v18 = vld [vmem:[%s8929_s8 + $0x4f0] sm:$0xff]  }
0x1199   :  { %v7126_v22 = vld [vmem:[%s8929_s8 + $0x430] sm:$0xff]  }
0x119a   :  { %5982 = vmatmul.mubr.msk.bf16.vlgmr.msra.gmra.mrb[76].mxu0 %vm82_vm1, %v8369_v61  ;;  %5983 = vmatmul.mubr.msk.bf16.vlgmr.msra.gmra.mrb[76].mxu1 %vm82_vm1, %v8369_v61 }
0x119b   :  { %3993 = vmatpush1.bf16.msra.mxu0 %v5956_v54  ;;  %4036 = vmatpush1.bf16.msra.mxu1 %v5958_v55  ;;  %v7131_v54 = vld [vmem:[%s8929_s8 + $0x4b8] sm:$0xff]   ;;  %v7132_v55 = vld [vmem:[%s8929_s8 + $0x540] sm:$0xff]  }
0x119c   :  { %3994 = vmatprep.subr.bf16.mxu0 %v5973_v56  ;;  %4037 = vmatprep.subr.bf16.mxu1 %v5975_v48  ;;  %v7133_v56 = vld [vmem:[%s8929_s8 + $0x5c0] sm:$0xff]   ;;  %v5946_v48 = vld [vmem:[%s8932_s7 + $0x10] sm:$0xff] }
0x119d   :  { %4024 = vmatprep.mubr.bf16.mxu0 %v7328_v24  ;;  %4067 = vmatprep.mubr.bf16.mxu1 %v7328_v24  ;;  %v3580_v13 = vrot.slane %v5946_v48, %v7796_v62  ;;  %v3588_v57 = vrot.slane %v5946_v48, %v7798_v63  ;;  %v3584_v59 = vrot.slane %v5946_v48, %v7803_v2 }
0x119e   :  { %v3592_v19 = vrot.slane %v5946_v48, %v7805_v3 }
0x119f   :  { %3995 = vmatpush1.bf16.msra.mxu0 %v5972_v42  ;;  %4038 = vmatpush1.bf16.msra.mxu1 %v5974_v58 }
0x11a0   :  { %4078 = vmatprep.subr.bf16.mxu0 %v5961_v4  ;;  %4121 = vmatprep.subr.bf16.mxu1 %v5963_v1 }
0x11a2   :  { %5984 = vmatmul.mubr.msk.bf16.vlgmr.msra.gmra.mrb[80].mxu0 %vm82_vm1, %v8369_v61  ;;  %5985 = vmatmul.mubr.msk.bf16.vlgmr.msra.gmra.mrb[80].mxu1 %vm82_vm1, %v8369_v61 }
0x11a3   :  { %4079 = vmatpush1.bf16.msra.mxu0 %v5960_v11  ;;  %4122 = vmatpush1.bf16.msra.mxu1 %v5962_v15 }
0x11a4   :  { %4080 = vmatprep.subr.bf16.mxu0 %v5977_v16  ;;  %4123 = vmatprep.subr.bf16.mxu1 %v5979_v17 }
0x11a5   :  { %4110 = vmatprep.mubr.bf16.mxu0 %v7328_v24  ;;  %4153 = vmatprep.mubr.bf16.mxu1 %v7328_v24  ;;  %v7105_v24 = vld [vmem:[%s8929_s8 + $0x4c8] sm:$0xff]  }
0x11a7   :  { %4081 = vmatpush1.bf16.msra.mxu0 %v5976_v23  ;;  %4124 = vmatpush1.bf16.msra.mxu1 %v5978_v28 }
0x11a8   :  { %6602 = vmatprep.subr.bf16.mxu0 %v7100_v25  ;;  %6624 = vmatprep.subr.bf16.mxu1 %v7101_v26  ;;  %v3596_v25 = vrot.slane %v5946_v48, %v7811_v8  ;;  %v3604_v26 = vrot.slane %v5946_v48, %v7813_v9 }
0x11aa   :  { %5986 = vmatmul.mubr.msk.bf16.vlgmr.msra.gmra.mrb[84].mxu0 %vm82_vm1, %v8369_v61  ;;  %5987 = vmatmul.mubr.msk.bf16.vlgmr.msra.gmra.mrb[84].mxu1 %vm82_vm1, %v8369_v61  ;;  %v7116_v61 = vld [vmem:[%s8929_s8 + $0x460] sm:$0xff]  }
0x11ab   :  { %6603 = vmatpush3.bf16.msra.mxu0 %v7102_v31  ;;  %6625 = vmatpush3.bf16.msra.mxu1 %v7103_v32 }
0x11ac   :  { %6604 = vmatprep.subr.bf16.mxu0 %v7104_v20  ;;  %6626 = vmatprep.subr.bf16.mxu1 %v7105_v24  ;;  %v3600_v20 = vrot.slane %v5946_v48, %v7815_v12  ;;  %v3608_v24 = vrot.slane %v5946_v48, %v7817_v14 }
0x11af   :  { %6605 = vmatpush3.bf16.msra.mxu0 %v7106_v21  ;;  %6627 = vmatpush3.bf16.msra.mxu1 %v7107_v27 }
0x11b0   :  { %6606 = vmatprep.subr.bf16.mxu0 %v7108_v29  ;;  %6628 = vmatprep.subr.bf16.mxu1 %v7109_v30 }
0x11b3   :  { %6607 = vmatpush3.bf16.msra.mxu0 %v7110_v33  ;;  %6629 = vmatpush3.bf16.msra.mxu1 %v7111_v34 }
0x11b4   :  { %6608 = vmatprep.subr.bf16.mxu0 %v7112_v35  ;;  %6630 = vmatprep.subr.bf16.mxu1 %v7113_v36 }
0x11b7   :  { %6609 = vmatpush3.bf16.msra.mxu0 %v7114_v37  ;;  %6631 = vmatpush3.bf16.msra.mxu1 %v7115_v60  ;;  %v8557_v37 = vld [vmem:[%s8932_s7 + $0x18] sm:$0xff] }
0x11b8   :  { %6610 = vmatprep.subr.bf16.mxu0 %v7116_v61  ;;  %6632 = vmatprep.subr.bf16.mxu1 %v7117_v40  ;;  %v3620_v48 = vrot.slane %v8557_v37, %v7798_v63  ;;  %v7139_v63 = vld [vmem:[%s8929_s8 + $0x588] sm:$0xff]  }
0x11bb   :  { %6611 = vmatpush3.bf16.msra.mxu0 %v7118_v41  ;;  %6633 = vmatpush3.bf16.msra.mxu1 %v7119_v43 }
0x11bc   :  { %6612 = vmatprep.subr.bf16.mxu0 %v7120_v44  ;;  %6634 = vmatprep.subr.bf16.mxu1 %v7121_v45  ;;  %v7134_v45 = vld [vmem:[%s8929_s8 + $0x500] sm:$0xff]  }
0x11bf   :  { %6613 = vmatpush3.bf16.msra.mxu0 %v7122_v46  ;;  %6635 = vmatpush3.bf16.msra.mxu1 %v7123_v47  ;;  %v7135_v46 = vld [vmem:[%s8929_s8 + $0x580] sm:$0xff]  }
0x11c0   :  { %6614 = vmatprep.subr.bf16.mxu0 %v7124_v49  ;;  %6636 = vmatprep.subr.bf16.mxu1 %v7125_v18 }
0x11c3   :  { %6615 = vmatpush3.bf16.msra.mxu0 %v7126_v22  ;;  %6637 = vmatpush3.bf16.msra.mxu1 %v7127_v50  ;;  %v7136_v50 = vld [vmem:[%s8929_s8 + $0x548] sm:$0xff]  }
0x11c4   :  { %6616 = vmatprep.subr.bf16.mxu0 %v7128_v52  ;;  %6638 = vmatprep.subr.bf16.mxu1 %v7129_v53  ;;  %v7137_v52 = vld [vmem:[%s8929_s8 + $0x5c8] sm:$0xff]   ;;  %v3612_v53 = vrot.slane %v8557_v37, %v7796_v62 }
0x11c7   :  { %6617 = vmatpush3.bf16.msra.mxu0 %v7130_v51  ;;  %6639 = vmatpush3.bf16.msra.mxu1 %v7131_v54 }
0x11c8   :  { %6646 = vmatprep.subr.bf16.mxu0 %v7132_v55  ;;  %6668 = vmatprep.subr.bf16.mxu1 %v7133_v56 }
0x1265   :  { %v3854_v42 = vpop.f32.mrb[72].mxu0  ;;  %v3897_v58 = vpop.f32.mrb[72].mxu1 }
0x1266   :  { %v3855_v4 = vadd.f32 %v3854_v42, %v3580_v13  ;;  %v3898_v1 = vadd.f32 %v3897_v58, %v3588_v57  ;;  %v3856_v5 = vpop.f32.mrb[73].mxu0  ;;  %v3899_v6 = vpop.f32.mrb[73].mxu1  ;;  %v3616_v42 = vrot.slane %v8557_v37, %v7803_v2  ;;  %v7140_v2 = vld [vmem:[%s8929_s8 + $0x550] sm:$0xff]  }
0x1267   :  { %v3857_v7 = vadd.f32 %v3856_v5, %v3584_v59  ;;  %v3900_v10 = vadd.f32 %v3899_v6, %v3592_v19  ;;  %v3858_v11 = vpop.f32.mrb[74].mxu0  ;;  %v3901_v15 = vpop.f32.mrb[74].mxu1 }
0x1268   :  { %v3859_v16 = vadd.f32 %v3858_v11, %v3580_v13  ;;  %v3902_v17 = vadd.f32 %v3901_v15, %v3588_v57  ;;  %v3860_v23 = vpop.f32.mrb[75].mxu0  ;;  %v3903_v28 = vpop.f32.mrb[75].mxu1  ;;  %v4164_v21 = vmax.f32 %v3855_v4, 0.0  ;;  %v4166_v27 = vmax.f32 %v3898_v1, 0.0  ;;  %v7138_v4 = vld [vmem:[%s8929_s8 + $0x508] sm:$0xff]   ;;  %v7141_v11 = vld [vmem:[%s8929_s8 + $0x5d0] sm:$0xff]  }
0x1269   :  { %v3861_v31 = vadd.f32 %v3860_v23, %v3584_v59  ;;  %v3904_v32 = vadd.f32 %v3903_v28, %v3592_v19  ;;  %v4165_v33 = vmax.f32 %v3857_v7, 0.0  ;;  %v4167_v34 = vmax.f32 %v3900_v10, 0.0 }
0x126a   :  { %v4180_v29 = vmax.f32 %v3859_v16, 0.0  ;;  %v4182_v30 = vmax.f32 %v3902_v17, 0.0  ;;  %v3624_v1 = vrot.slane %v8557_v37, %v7805_v3 }
0x126b   :  { %v4181_v35 = vmax.f32 %v3861_v31, 0.0  ;;  %v4183_v36 = vmax.f32 %v3904_v32, 0.0 }
0x126c   :  { %v4196_v60 = vpack.c.bf16 %v4180_v29, %v4164_v21  ;;  %v4198_v61 = vpack.c.bf16 %v4182_v30, %v4166_v27 }
0x126d   :  { %v4197_v40 = vpack.c.bf16 %v4181_v35, %v4165_v33  ;;  %v4199_v41 = vpack.c.bf16 %v4183_v36, %v4167_v34  ;;  %v3940_v43 = vpop.f32.mrb[76].mxu0  ;;  %v3983_v44 = vpop.f32.mrb[76].mxu1  ;;  %v7144_v33 = vld [vmem:[%s8929_s8 + $0x558] sm:$0xff]  }
0x126e   :  { %v3941_v47 = vadd.f32 %v3940_v43, %v3596_v25  ;;  %v3984_v49 = vadd.f32 %v3983_v44, %v3604_v26  ;;  %v3942_v18 = vpop.f32.mrb[77].mxu0  ;;  %v3985_v22 = vpop.f32.mrb[77].mxu1  ;;  %v7145_v34 = vld [vmem:[%s8929_s8 + $0x5d8] sm:$0xff]  }
0x126f   :  { %v3943_v51 = vadd.f32 %v3942_v18, %v3600_v20  ;;  %v3986_v54 = vadd.f32 %v3985_v22, %v3608_v24  ;;  %v3944_v55 = vpop.f32.mrb[78].mxu0  ;;  %v3987_v56 = vpop.f32.mrb[78].mxu1  ;;  %5277 = vmatprep.mubr.bf16.mxu0 %v4197_v40  ;;  %5318 = vmatprep.mubr.bf16.mxu1 %v4199_v41  ;;  %v3628_v40 = vrot.slane %v8557_v37, %v7811_v8  ;;  %v7146_v22 = vld [vmem:[%s8929_s8 + $0x518] sm:$0xff]  }
0x1270   :  { %v3945_v13 = vadd.f32 %v3944_v55, %v3596_v25  ;;  %v3988_v57 = vadd.f32 %v3987_v56, %v3604_v26  ;;  %v3946_v59 = vpop.f32.mrb[79].mxu0  ;;  %v3989_v19 = vpop.f32.mrb[79].mxu1  ;;  %5278 = vmatmul.mubr.bf16.vlgmr.msra.gmra.mrb[88].mxu0 %v4196_v60  ;;  %5319 = vmatmul.mubr.bf16.vlgmr.msra.gmra.mrb[88].mxu1 %v4198_v61  ;;  %v4168_v5 = vmax.f32 %v3941_v47, 0.0  ;;  %v4170_v6 = vmax.f32 %v3984_v49, 0.0  ;;  %v7147_v8 = vld [vmem:[%s8929_s8 + $0x598] sm:$0xff]  }
0x1271   :  { %v3947_v58 = vadd.f32 %v3946_v59, %v3600_v20  ;;  %v3990_v62 = vadd.f32 %v3989_v19, %v3608_v24  ;;  %6647 = vmatpush3.bf16.msra.mxu0 %v7134_v45  ;;  %6669 = vmatpush3.bf16.msra.mxu1 %v7135_v46  ;;  %v4169_v15 = vmax.f32 %v3943_v51, 0.0  ;;  %v4171_v16 = vmax.f32 %v3986_v54, 0.0  ;;  %v7142_v20 = vld [vmem:[%s8929_s8 + $0x510] sm:$0xff]   ;;  %v7149_v54 = vld [vmem:[%s8929_s8 + $0x5e0] sm:$0xff]  }
0x1272   :  { %v4184_v7 = vmax.f32 %v3945_v13, 0.0  ;;  %v4186_v10 = vmax.f32 %v3988_v57, 0.0  ;;  %6648 = vmatprep.subr.bf16.mxu0 %v7136_v50  ;;  %6670 = vmatprep.subr.bf16.mxu1 %v7137_v52  ;;  %v7143_v24 = vld [vmem:[%s8929_s8 + $0x590] sm:$0xff]   ;;  %v3636_v46 = vrot.slane %v8557_v37, %v7813_v9  ;;  %v3632_v47 = vrot.slane %v8557_v37, %v7815_v12  ;;  %v7148_v12 = vld [vmem:[%s8929_s8 + $0x560] sm:$0xff]  }
0x1273   :  { %v4185_v17 = vmax.f32 %v3947_v58, 0.0  ;;  %v4187_v23 = vmax.f32 %v3990_v62, 0.0  ;;  %v3640_v50 = vrot.slane %v8557_v37, %v7817_v14  ;;  %v7150_v58 = vld [vmem:[%s8929_s8 + $0x520] sm:$0xff]  }
0x1274   :  { %v8591_v28 = vpack.c.bf16 %v4184_v7, %v4168_v5  ;;  %v8593_v3 = vpack.c.bf16 %v4186_v10, %v4170_v6  ;;  %v7151_v62 = vld [vmem:[%s8929_s8 + $0x5a0] sm:$0xff]   ;;  %v7152_v6 = vld [vmem:[%s8929_s8 + $0x568] sm:$0xff]  }
0x1275   :  { %v4201_v25 = vpack.c.bf16 %v4185_v17, %v4169_v15  ;;  %v4203_v26 = vpack.c.bf16 %v4187_v23, %v4171_v16  ;;  %6649 = vmatpush3.bf16.msra.mxu0 %v7138_v4  ;;  %6671 = vmatpush3.bf16.msra.mxu1 %v7139_v63  ;;  %v4026_v31 = vpop.f32.mrb[80].mxu0  ;;  %v4069_v32 = vpop.f32.mrb[80].mxu1  ;;  %v7153_v7 = vld [vmem:[%s8929_s8 + $0x5e8] sm:$0xff]  }
0x1276   :  { %v4027_v21 = vadd.f32 %v4026_v31, %v3612_v53  ;;  %v4070_v27 = vadd.f32 %v4069_v32, %v3620_v48  ;;  %v4028_v29 = vpop.f32.mrb[81].mxu0  ;;  %v4071_v30 = vpop.f32.mrb[81].mxu1  ;;  %6650 = vmatprep.subr.bf16.mxu0 %v7140_v2  ;;  %6672 = vmatprep.subr.bf16.mxu1 %v7141_v11  ;;  %v7154_v32 = vld [vmem:[%s8929_s8 + $0x528] sm:$0xff]  }
0x1277   :  { %v4029_v35 = vadd.f32 %v4028_v29, %v3616_v42  ;;  %v4072_v36 = vadd.f32 %v4071_v30, %v3624_v1  ;;  %v4030_v60 = vpop.f32.mrb[82].mxu0  ;;  %v4073_v61 = vpop.f32.mrb[82].mxu1  ;;  %5359 = vmatprep.mubr.bf16.mxu0 %v4201_v25  ;;  %5400 = vmatprep.mubr.bf16.mxu1 %v4203_v26  ;;  %v7156_v30 = vld [vmem:[%s8929_s8 + $0x570] sm:$0xff]  }
0x1278   :  { %v4031_v41 = vadd.f32 %v4030_v60, %v3612_v53  ;;  %v4074_v43 = vadd.f32 %v4073_v61, %v3620_v48  ;;  %v4032_v44 = vpop.f32.mrb[83].mxu0  ;;  %v4075_v45 = vpop.f32.mrb[83].mxu1  ;;  %v4172_v52 = vmax.f32 %v4027_v21, 0.0  ;;  %v4174_v9 = vmax.f32 %v4070_v27, 0.0 }
0x1279   :  { %v4033_v49 = vadd.f32 %v4032_v44, %v3616_v42  ;;  %v4076_v18 = vadd.f32 %v4075_v45, %v3624_v1  ;;  %6651 = vmatpush3.bf16.msra.mxu0 %v7142_v20  ;;  %6673 = vmatpush3.bf16.msra.mxu1 %v7143_v24  ;;  %v4173_v55 = vmax.f32 %v4029_v35, 0.0  ;;  %v4175_v56 = vmax.f32 %v4072_v36, 0.0  ;;  %v7155_v20 = vld [vmem:[%s8929_s8 + $0x5a8] sm:$0xff]   ;;  %v7158_v44 = vld [vmem:[%s8929_s8 + $0x530] sm:$0xff]  }
0x127a   :  { %v4188_v53 = vmax.f32 %v4031_v41, 0.0  ;;  %v4190_v51 = vmax.f32 %v4074_v43, 0.0  ;;  %6652 = vmatprep.subr.bf16.mxu0 %v7144_v33  ;;  %6674 = vmatprep.subr.bf16.mxu1 %v7145_v34  ;;  %v7157_v33 = vld [vmem:[%s8929_s8 + $0x5f0] sm:$0xff]  }
0x127b   :  { %v4189_v48 = vmax.f32 %v4033_v49, 0.0  ;;  %v4191_v13 = vmax.f32 %v4076_v18, 0.0  ;;  %v7159_v45 = vld [vmem:[%s8929_s8 + $0x5b0] sm:$0xff]   ;;  %v7162_v49 = vld [vmem:[%s8929_s8 + $0x538] sm:$0xff]  }
0x127c   :  { %v8627_v57 = vpack.c.bf16 %v4188_v53, %v4172_v52  ;;  %v8629_v14 = vpack.c.bf16 %v4190_v51, %v4174_v9  ;;  %v7163_v18 = vld [vmem:[%s8929_s8 + $0x5b8] sm:$0xff]   ;;  %v7167_v52 = vld [vmem:[%s8929_s8 + $0x680] sm:$0xff]   ;;  %v7168_v9 = vld [vmem:[%s8929_s8 + $0x648] sm:$0xff]  }
0x127d   :  { %v8631_v37 = vpack.c.bf16 %v4189_v48, %v4173_v55  ;;  %v8633_v59 = vpack.c.bf16 %v4191_v13, %v4175_v56  ;;  %6653 = vmatpush3.bf16.msra.mxu0 %v7146_v22  ;;  %6675 = vmatpush3.bf16.msra.mxu1 %v7147_v8  ;;  %v4112_v19 = vpop.f32.mrb[84].mxu0  ;;  %v4155_v42 = vpop.f32.mrb[84].mxu1  ;;  %v7164_v22 = vld [vmem:[%s8929_s8 + $0x640] sm:$0xff]   ;;  %v7169_v53 = vld [vmem:[%s8929_s8 + $0x6c8] sm:$0xff]   ;;  %v7175_v55 = vld [vmem:[%s8929_s8 + $0x690] sm:$0xff]  }
0x127e   :  { %v4113_v4 = vadd.f32 %v4112_v19, %v3628_v40  ;;  %v4156_v63 = vadd.f32 %v4155_v42, %v3636_v46  ;;  %v4114_v1 = vpop.f32.mrb[85].mxu0  ;;  %v4157_v5 = vpop.f32.mrb[85].mxu1  ;;  %6654 = vmatprep.subr.bf16.mxu0 %v7148_v12  ;;  %6676 = vmatprep.subr.bf16.mxu1 %v7149_v54  ;;  %v7165_v8 = vld [vmem:[%s8929_s8 + $0x6c0] sm:$0xff]   ;;  %v7170_v51 = vld [vmem:[%s8929_s8 + $0x608] sm:$0xff]   ;;  %v7174_v54 = vld [vmem:[%s8929_s8 + $0x610] sm:$0xff]  }
0x127f   :  { %v4115_v10 = vadd.f32 %v4114_v1, %v3632_v47  ;;  %v4158_v2 = vadd.f32 %v4157_v5, %v3640_v50  ;;  %v4116_v11 = vpop.f32.mrb[86].mxu0  ;;  %v4159_v15 = vpop.f32.mrb[86].mxu1  ;;  %v7171_v12 = vld [vmem:[%s8929_s8 + $0x688] sm:$0xff]   ;;  %v7176_v56 = vld [vmem:[%s8929_s8 + $0x658] sm:$0xff]   ;;  %v7181_v19 = vld [vmem:[%s8929_s8 + $0x6e0] sm:$0xff]  }
0x1280   :  { %v4117_v16 = vadd.f32 %v4116_v11, %v3628_v40  ;;  %v4160_v17 = vadd.f32 %v4159_v15, %v3636_v46  ;;  %v4118_v23 = vpop.f32.mrb[87].mxu0  ;;  %v4161_v25 = vpop.f32.mrb[87].mxu1  ;;  %v4176_v24 = vmax.f32 %v4113_v4, 0.0  ;;  %v4178_v21 = vmax.f32 %v4156_v63, 0.0  ;;  %v7160_v46 = vld [vmem:[%s8929_s8 + $0x578] sm:$0xff]   ;;  %v7182_v42 = vld [vmem:[%s8929_s8 + $0x620] sm:$0xff]  }
0x1281   :  { %v4119_v26 = vadd.f32 %v4118_v23, %v3632_v47  ;;  %v4162_v31 = vadd.f32 %v4161_v25, %v3640_v50  ;;  %6655 = vmatpush3.bf16.msra.mxu0 %v7150_v58  ;;  %6677 = vmatpush3.bf16.msra.mxu1 %v7151_v62  ;;  %v4177_v34 = vmax.f32 %v4115_v10, 0.0  ;;  %v4179_v35 = vmax.f32 %v4158_v2, 0.0  ;;  %v7161_v47 = vld [vmem:[%s8929_s8 + $0x5f8] sm:$0xff]   ;;  %v7166_v50 = vld [vmem:[%s8929_s8 + $0x600] sm:$0xff]   ;;  %v7184_v62 = vld [vmem:[%s8929_s8 + $0x668] sm:$0xff]  }
0x1282   :  { %v4192_v27 = vmax.f32 %v4117_v16, 0.0  ;;  %v4194_v29 = vmax.f32 %v4160_v17, 0.0  ;;  %6656 = vmatprep.subr.bf16.mxu0 %v7152_v6  ;;  %6678 = vmatprep.subr.bf16.mxu1 %v7153_v7  ;;  %v7177_v48 = vld [vmem:[%s8929_s8 + $0x6d8] sm:$0xff]   ;;  %v7183_v58 = vld [vmem:[%s8929_s8 + $0x6a0] sm:$0xff]   ;;  %v7185_v4 = vld [vmem:[%s8929_s8 + $0x6e8] sm:$0xff]  }
0x1283   :  { %v4193_v36 = vmax.f32 %v4119_v26, 0.0  ;;  %v4195_v60 = vmax.f32 %v4162_v31, 0.0  ;;  %v7178_v13 = vld [vmem:[%s8929_s8 + $0x618] sm:$0xff]   ;;  %v7186_v63 = vld [vmem:[%s8929_s8 + $0x628] sm:$0xff]   ;;  %v7188_v5 = vld [vmem:[%s8929_s8 + $0x670] sm:$0xff]  }
0x1284   :  { %v8659_v61 = vpack.c.bf16 %v4192_v27, %v4176_v24  ;;  %v8661_v40 = vpack.c.bf16 %v4194_v29, %v4178_v21  ;;  %v7187_v1 = vld [vmem:[%s8929_s8 + $0x6a8] sm:$0xff]   ;;  %v7189_v6 = vld [vmem:[%s8929_s8 + $0x6f0] sm:$0xff]   ;;  %v7192_v2 = vld [vmem:[%s8929_s8 + $0x678] sm:$0xff]  }
0x1285   :  { %v8663_v41 = vpack.c.bf16 %v4193_v36, %v4177_v34  ;;  %v8665_v43 = vpack.c.bf16 %v4195_v60, %v4179_v35  ;;  %6657 = vmatpush3.bf16.msra.mxu0 %v7154_v32  ;;  %6679 = vmatpush3.bf16.msra.mxu1 %v7155_v20  ;;  %v7190_v7 = vld [vmem:[%s8929_s8 + $0x630] sm:$0xff]   ;;  %v7193_v11 = vld [vmem:[%s8929_s8 + $0x6f8] sm:$0xff]   ;;  %v7196_v17 = vld [vmem:[%s8929_s8 + $0x740] sm:$0xff]  }
0x1286   :  { %6658 = vmatprep.subr.bf16.mxu0 %v7156_v30  ;;  %6680 = vmatprep.subr.bf16.mxu1 %v7157_v33  ;;  %v7191_v10 = vld [vmem:[%s8929_s8 + $0x6b0] sm:$0xff]   ;;  %v7194_v15 = vld [vmem:[%s8929_s8 + $0x638] sm:$0xff]   ;;  %v7197_v23 = vld [vmem:[%s8929_s8 + $0x7c0] sm:$0xff]  }
0x1287   :  { %v7195_v16 = vld [vmem:[%s8929_s8 + $0x6b8] sm:$0xff]   ;;  %v7198_v25 = vld [vmem:[%s8929_s8 + $0x700] sm:$0xff]   ;;  %v7200_v31 = vld [vmem:[%s8929_s8 + $0x748] sm:$0xff]  }
0x1288   :  { %v7199_v26 = vld [vmem:[%s8929_s8 + $0x780] sm:$0xff]   ;;  %v7201_v32 = vld [vmem:[%s8929_s8 + $0x7c8] sm:$0xff]   ;;  %v7206_v21 = vld [vmem:[%s8929_s8 + $0x710] sm:$0xff]  }
0x1289   :  { %6659 = vmatpush3.bf16.msra.mxu0 %v7158_v44  ;;  %6681 = vmatpush3.bf16.msra.mxu1 %v7159_v45  ;;  %v7202_v20 = vld [vmem:[%s8929_s8 + $0x708] sm:$0xff]   ;;  %v7207_v27 = vld [vmem:[%s8929_s8 + $0x790] sm:$0xff]   ;;  %v7208_v29 = vld [vmem:[%s8929_s8 + $0x758] sm:$0xff]  }
0x128a   :  { %6660 = vmatprep.subr.bf16.mxu0 %v7160_v46  ;;  %6682 = vmatprep.subr.bf16.mxu1 %v7161_v47  ;;  %v7203_v24 = vld [vmem:[%s8929_s8 + $0x788] sm:$0xff]   ;;  %v7209_v30 = vld [vmem:[%s8929_s8 + $0x7d8] sm:$0xff]   ;;  %v7212_v35 = vld [vmem:[%s8929_s8 + $0x760] sm:$0xff]  }
0x128b   :  { %v7210_v33 = vld [vmem:[%s8929_s8 + $0x718] sm:$0xff]   ;;  %v7213_v36 = vld [vmem:[%s8929_s8 + $0x7e0] sm:$0xff]   ;;  %v7217_v44 = vld [vmem:[%s8929_s8 + $0x7e8] sm:$0xff]  }
0x128c   :  { %v7211_v34 = vld [vmem:[%s8929_s8 + $0x798] sm:$0xff]   ;;  %v7214_v60 = vld [vmem:[%s8929_s8 + $0x720] sm:$0xff]   ;;  %v7218_v45 = vld [vmem:[%s8929_s8 + $0x728] sm:$0xff]  }
0x128d   :  { %6661 = vmatpush3.bf16.msra.mxu0 %v7162_v49  ;;  %6683 = vmatpush3.bf16.msra.mxu1 %v7163_v18  ;;  %v7219_v46 = vld [vmem:[%s8929_s8 + $0x7a8] sm:$0xff]   ;;  %v7220_v47 = vld [vmem:[%s8929_s8 + $0x770] sm:$0xff]  }
0x128e   :  { %6690 = vmatprep.subr.bf16.mxu0 %v7164_v22  ;;  %6712 = vmatprep.subr.bf16.mxu1 %v7165_v8  ;;  %v7221_v49 = vld [vmem:[%s8929_s8 + $0x7f0] sm:$0xff]   ;;  %v7224_v8 = vld [vmem:[%s8929_s8 + $0x778] sm:$0xff]  }
0x128f   :  { %v7222_v18 = vld [vmem:[%s8929_s8 + $0x730] sm:$0xff]  }
0x1290   :  { %5360 = vmatmul.mubr.bf16.vlgmr.msra.gmra.mrb[92].mxu0 %v8591_v28  ;;  %5401 = vmatmul.mubr.bf16.vlgmr.msra.gmra.mrb[92].mxu1 %v8593_v3  ;;  %v7172_v28 = vld [vmem:[%s8929_s8 + $0x650] sm:$0xff]  }
0x1291   :  { %6691 = vmatpush3.bf16.msra.mxu0 %v7166_v50  ;;  %5441 = vmatprep.mubr.bf16.mxu0 %v8631_v37  ;;  %v7173_v3 = vld [vmem:[%s8929_s8 + $0x6d0] sm:$0xff]   ;;  %v7179_v37 = vld [vmem:[%s8929_s8 + $0x698] sm:$0xff]  }
0x1292   :  { %6713 = vmatpush3.bf16.msra.mxu1 %v7167_v52  ;;  %5482 = vmatprep.mubr.bf16.mxu1 %v8633_v59  ;;  %v7180_v59 = vld [vmem:[%s8929_s8 + $0x660] sm:$0xff]   ;;  %v7223_v22 = vld [vmem:[%s8929_s8 + $0x7b0] sm:$0xff]   ;;  %v7225_v50 = vld [vmem:[%s8929_s8 + $0x7f8] sm:$0xff]  }
0x1293   :  { %6692 = vmatprep.subr.bf16.mxu0 %v7168_v9  ;;  %6714 = vmatprep.subr.bf16.mxu1 %v7169_v53  ;;  %v7226_v52 = vld [vmem:[%s8929_s8 + $0x738] sm:$0xff]  }
0x1294   :  { %v7227_v9 = vld [vmem:[%s8929_s8 + $0x7b8] sm:$0xff]  }
0x1295   :  { %6693 = vmatpush3.bf16.msra.mxu0 %v7170_v51 }
0x1296   :  { %6715 = vmatpush3.bf16.msra.mxu1 %v7171_v12  ;;  %6694 = vmatprep.subr.bf16.mxu0 %v7172_v28  ;;  %v6245_v12 = vld [vmem:[%s8933_s9 + $0x1] ss:$0 sm:$0xff] }
0x1297   :  { %6716 = vmatprep.subr.bf16.mxu1 %v7173_v3 }
0x1299   :  { %6695 = vmatpush3.bf16.msra.mxu0 %v7174_v54 }
0x129a   :  { %6717 = vmatpush3.bf16.msra.mxu1 %v7175_v55  ;;  %6696 = vmatprep.subr.bf16.mxu0 %v7176_v56 }
0x129b   :  { %6718 = vmatprep.subr.bf16.mxu1 %v7177_v48 }
0x129d   :  { %6697 = vmatpush3.bf16.msra.mxu0 %v7178_v13 }
0x129e   :  { %6719 = vmatpush3.bf16.msra.mxu1 %v7179_v37  ;;  %6698 = vmatprep.subr.bf16.mxu0 %v7180_v59 }
0x129f   :  { %6720 = vmatprep.subr.bf16.mxu1 %v7181_v19 }
0x12a1   :  { %6699 = vmatpush3.bf16.msra.mxu0 %v7182_v42 }
0x12a2   :  { %6721 = vmatpush3.bf16.msra.mxu1 %v7183_v58  ;;  %6700 = vmatprep.subr.bf16.mxu0 %v7184_v62 }
0x12a3   :  { %6722 = vmatprep.subr.bf16.mxu1 %v7185_v4 }
0x12a5   :  { %6701 = vmatpush3.bf16.msra.mxu0 %v7186_v63 }
0x12a6   :  { %6723 = vmatpush3.bf16.msra.mxu1 %v7187_v1  ;;  %6702 = vmatprep.subr.bf16.mxu0 %v7188_v5 }
0x12a7   :  { %6724 = vmatprep.subr.bf16.mxu1 %v7189_v6 }
0x12a9   :  { %6703 = vmatpush3.bf16.msra.mxu0 %v7190_v7 }
0x12aa   :  { %6725 = vmatpush3.bf16.msra.mxu1 %v7191_v10  ;;  %6704 = vmatprep.subr.bf16.mxu0 %v7192_v2 }
0x12ab   :  { %6726 = vmatprep.subr.bf16.mxu1 %v7193_v11 }
0x12ad   :  { %6705 = vmatpush3.bf16.msra.mxu0 %v7194_v15 }
0x12ae   :  { %6727 = vmatpush3.bf16.msra.mxu1 %v7195_v16  ;;  %6734 = vmatprep.subr.bf16.mxu0 %v7196_v17 }
0x12af   :  { %6756 = vmatprep.subr.bf16.mxu1 %v7197_v23 }
0x12b0   :  { %5442 = vmatmul.mubr.bf16.vlgmr.msra.gmra.mrb[96].mxu0 %v8627_v57  ;;  %v7204_v57 = vld [vmem:[%s8929_s8 + $0x750] sm:$0xff]  }
0x12b1   :  { %5483 = vmatmul.mubr.bf16.vlgmr.msra.gmra.mrb[96].mxu1 %v8629_v14  ;;  %6735 = vmatpush3.bf16.msra.mxu0 %v7198_v25  ;;  %v7205_v14 = vld [vmem:[%s8929_s8 + $0x7d0] sm:$0xff]  }
0x12b2   :  { %5523 = vmatprep.mubr.bf16.mxu0 %v8663_v41  ;;  %6757 = vmatpush3.bf16.msra.mxu1 %v7199_v26  ;;  %v7215_v41 = vld [vmem:[%s8929_s8 + $0x7a0] sm:$0xff]  }
0x12b3   :  { %5564 = vmatprep.mubr.bf16.mxu1 %v8665_v43  ;;  %6736 = vmatprep.subr.bf16.mxu0 %v7200_v31  ;;  %v7216_v43 = vld [vmem:[%s8929_s8 + $0x768] sm:$0xff]  }
0x12b4   :  { %6758 = vmatprep.subr.bf16.mxu1 %v7201_v32 }
0x12b5   :  { %6737 = vmatpush3.bf16.msra.mxu0 %v7202_v20 }
0x12b6   :  { %6759 = vmatpush3.bf16.msra.mxu1 %v7203_v24  ;;  %6738 = vmatprep.subr.bf16.mxu0 %v7204_v57 }
0x12b7   :  { %6760 = vmatprep.subr.bf16.mxu1 %v7205_v14 }
0x12b9   :  { %6739 = vmatpush3.bf16.msra.mxu0 %v7206_v21 }
0x12ba   :  { %6761 = vmatpush3.bf16.msra.mxu1 %v7207_v27  ;;  %6740 = vmatprep.subr.bf16.mxu0 %v7208_v29 }
0x12bb   :  { %6762 = vmatprep.subr.bf16.mxu1 %v7209_v30 }
0x12bd   :  { %6741 = vmatpush3.bf16.msra.mxu0 %v7210_v33 }
0x12be   :  { %6763 = vmatpush3.bf16.msra.mxu1 %v7211_v34  ;;  %6742 = vmatprep.subr.bf16.mxu0 %v7212_v35 }
0x12bf   :  { %6764 = vmatprep.subr.bf16.mxu1 %v7213_v36 }
0x12c1   :  { %6743 = vmatpush3.bf16.msra.mxu0 %v7214_v60 }
0x12c2   :  { %6765 = vmatpush3.bf16.msra.mxu1 %v7215_v41  ;;  %6744 = vmatprep.subr.bf16.mxu0 %v7216_v43 }
0x12c3   :  { %6766 = vmatprep.subr.bf16.mxu1 %v7217_v44 }
0x12c5   :  { %6745 = vmatpush3.bf16.msra.mxu0 %v7218_v45 }
0x12c6   :  { %6767 = vmatpush3.bf16.msra.mxu1 %v7219_v46  ;;  %6746 = vmatprep.subr.bf16.mxu0 %v7220_v47 }
0x12c7   :  { %6768 = vmatprep.subr.bf16.mxu1 %v7221_v49 }
0x12c9   :  { %6747 = vmatpush3.bf16.msra.mxu0 %v7222_v18 }
0x12ca   :  { %6769 = vmatpush3.bf16.msra.mxu1 %v7223_v22  ;;  %6748 = vmatprep.subr.bf16.mxu0 %v7224_v8 }
0x12cb   :  { %6770 = vmatprep.subr.bf16.mxu1 %v7225_v50 }
0x12cd   :  { %6749 = vmatpush3.bf16.msra.mxu0 %v7226_v52 }
0x12ce   :  { %6771 = vmatpush3.bf16.msra.mxu1 %v7227_v9  ;;  %6909 = vmatprep.subr.bf16.mxu0 %v7312_v0 }
0x12d0   :  { %5524 = vmatmul.mubr.bf16.vlgmr.msra.gmra.mrb[100].mxu0 %v8659_v61 }
0x12d1   :  { %5565 = vmatmul.mubr.bf16.vlgmr.msra.gmra.mrb[100].mxu1 %v8661_v40  ;;  %6913 = vmatprep.mubr.msk.bf16.mxu0 %vm7313_vm0, %v7312_v0 }
0x1343   :  { %v6618_v53 = vpop.f32.mrb[88].mxu0  ;;  %v6640_v51 = vpop.f32.mrb[88].mxu1 }
0x1344   :  { %v6619_v28 = vpop.f32.mrb[89].mxu0  ;;  %v6641_v3 = vpop.f32.mrb[89].mxu1 }
0x1345   :  { %v6620_v54 = vadd.f32 %v6619_v28, %v6618_v53  ;;  %v6642_v55 = vadd.f32 %v6641_v3, %v6640_v51  ;;  %v6621_v56 = vpop.f32.mrb[90].mxu0  ;;  %v6643_v48 = vpop.f32.mrb[90].mxu1 }
0x1346   :  { %v6622_v13 = vpop.f32.mrb[91].mxu0  ;;  %v6644_v37 = vpop.f32.mrb[91].mxu1 }
0x1347   :  { %v5280_v61 = vadd.f32 %v6620_v54, %v6245_v12  ;;  %v6623_v59 = vadd.f32 %v6622_v13, %v6621_v56  ;;  %v6645_v40 = vadd.f32 %v6644_v37, %v6643_v48 }
0x1349   :  { %v5321_v19 = vadd.f32 %v6642_v55, %v5280_v61  ;;  %v5283_v42 = vadd.f32 %v6623_v59, %v6245_v12 }
0x134b   :  { %v5324_v58 = vadd.f32 %v6645_v40, %v5283_v42 }
0x1363   :  { %v6662_v62 = vpop.f32.mrb[92].mxu0  ;;  %v6684_v4 = vpop.f32.mrb[92].mxu1 }
0x1364   :  { %v6663_v63 = vpop.f32.mrb[93].mxu0  ;;  %v6685_v1 = vpop.f32.mrb[93].mxu1 }
0x1365   :  { %v6664_v5 = vadd.f32 %v6663_v63, %v6662_v62  ;;  %v6686_v6 = vadd.f32 %v6685_v1, %v6684_v4  ;;  %v6665_v7 = vpop.f32.mrb[94].mxu0  ;;  %v6687_v10 = vpop.f32.mrb[94].mxu1  ;;  %v7229_v62 = vld [vmem:[%s8936_s14 + $0x8] sm:$0xff]  }
0x1366   :  { %v6666_v2 = vpop.f32.mrb[95].mxu0  ;;  %v6688_v11 = vpop.f32.mrb[95].mxu1 }
0x1367   :  { %v5362_v15 = vadd.f32 %v6664_v5, %v5321_v19  ;;  %v6667_v16 = vadd.f32 %v6666_v2, %v6665_v7  ;;  %v6689_v17 = vadd.f32 %v6688_v11, %v6687_v10  ;;  %v6376_v2 = vld [vmem:[%s8934_s12 + $0x1] ss:$0 sm:$0xff] }
0x1369   :  { %v5403_v23 = vadd.f32 %v6686_v6, %v5362_v15  ;;  %v5365_v25 = vadd.f32 %v6667_v16, %v5324_v58 }
0x136b   :  { %v5406_v26 = vadd.f32 %v6689_v17, %v5365_v25 }
0x1383   :  { %v6706_v31 = vpop.f32.mrb[96].mxu0 }
0x1384   :  { %v6728_v32 = vpop.f32.mrb[96].mxu1  ;;  %v6707_v20 = vpop.f32.mrb[97].mxu0 }
0x1385   :  { %v6708_v24 = vadd.f32 %v6707_v20, %v6706_v31  ;;  %v6729_v57 = vpop.f32.mrb[97].mxu1  ;;  %v6709_v14 = vpop.f32.mrb[98].mxu0 }
0x1386   :  { %v6730_v21 = vadd.f32 %v6729_v57, %v6728_v32  ;;  %v6731_v27 = vpop.f32.mrb[98].mxu1  ;;  %v6710_v29 = vpop.f32.mrb[99].mxu0  ;;  %v6378_v32 = vld [vmem:[%s8937_s15] ss:$0 sm:$0xff] }
0x1387   :  { %v5444_v30 = vadd.f32 %v6708_v24, %v5403_v23  ;;  %v6711_v33 = vadd.f32 %v6710_v29, %v6709_v14  ;;  %v6732_v34 = vpop.f32.mrb[99].mxu1 }
0x1388   :  { %v6733_v35 = vadd.f32 %v6732_v34, %v6731_v27 }
0x1389   :  { %v5485_v36 = vadd.f32 %v6730_v21, %v5444_v30  ;;  %v5447_v60 = vadd.f32 %v6711_v33, %v5406_v26 }
0x138b   :  { %v5488_v41 = vadd.f32 %v6733_v35, %v5447_v60 }
0x13a3   :  { %v6750_v43 = vpop.f32.mrb[100].mxu0 }
0x13a4   :  { %v6772_v44 = vpop.f32.mrb[100].mxu1  ;;  %v6751_v45 = vpop.f32.mrb[101].mxu0 }
0x13a5   :  { %v6752_v46 = vadd.f32 %v6751_v45, %v6750_v43  ;;  %v6773_v47 = vpop.f32.mrb[101].mxu1  ;;  %v6753_v49 = vpop.f32.mrb[102].mxu0 }
0x13a6   :  { %v6774_v18 = vadd.f32 %v6773_v47, %v6772_v44  ;;  %v6775_v22 = vpop.f32.mrb[102].mxu1  ;;  %v6754_v8 = vpop.f32.mrb[103].mxu0 }
0x13a7   :  { %v5526_v50 = vadd.f32 %v6752_v46, %v5485_v36  ;;  %v6755_v52 = vadd.f32 %v6754_v8, %v6753_v49  ;;  %v6776_v9 = vpop.f32.mrb[103].mxu1 }
0x13a8   :  { %v6777_v53 = vadd.f32 %v6776_v9, %v6775_v22 }
0x13a9   :  { %v5567_v51 = vadd.f32 %v6774_v18, %v5526_v50  ;;  %v5529_v12 = vadd.f32 %v6755_v52, %v5488_v41 }
0x13ab   :  { %v5570_v28 = vadd.f32 %v6777_v53, %v5529_v12  ;;  %v5573_v3 = vadd.f32 %v5567_v51, %v8363_v39 }
0x13ad   :  { %v5579_v54 = vsel %vm82_vm1, %v5573_v3, 0.0  ;;  %v5574_v55 = vadd.f32 %v5570_v28, %v8365_v38  ;;  %v7228_v38 = vld [vmem:[%s8936_s14] sm:$0xff]  }
0x13ae   :  { %5580 = vadd.xlane.f32.xlu1 %v5579_v54  ;;  %6910 = vmatpush3.bf16.msra.mxu0 %v7228_v38 }
0x13af   :  { %v5582_v56 = vsel %vm82_vm1, %v5574_v55, 0.0  ;;  %6911 = vmatprep.subr.bf16.mxu0 %v7312_v0  ;;  %v6377_v0 = vld [vmem:[%s8935_s13 + $0x1] ss:$0 sm:$0xff] }
0x13b0   :  { %5583 = vadd.xlane.f32.xlu0 %v5582_v56 }
0x13b2   :  { %6912 = vmatpush3.bf16.msra.mxu0 %v7229_v62 }
0x143b   :  { %v5581_v48 = vpop.xlane.xlu1 %5580 }
0x143c   :  { %v5585_v13 = vmul.f32 0.03125, %v5581_v48 }
0x143d   :  { %v5584_v37 = vpop.xlane.xlu0 %5583 }
0x143e   :  { %v5587_v61 = vsub.f32 %v5573_v3, %v5585_v13  ;;  %v5586_v59 = vmul.f32 0.03125, %v5584_v37 }
0x1440   :  { %v5588_v40 = vsub.f32 %v5574_v55, %v5586_v59  ;;  %v5589_v19 = vmul.f32 %v5587_v61, %v5587_v61 }
0x1442   :  { %v5591_v42 = vsel %vm82_vm1, %v5589_v19, 0.0  ;;  %v5590_v58 = vmul.f32 %v5588_v40, %v5588_v40 }
0x1443   :  { %5592 = vadd.xlane.f32.xlu1 %v5591_v42 }
0x1444   :  { %v5594_v39 = vsel %vm82_vm1, %v5590_v58, 0.0 }
0x1445   :  { %5595 = vadd.xlane.f32.xlu0 %v5594_v39 }
0x14d0   :  { %v5593_v4 = vpop.xlane.xlu1 %5592 }
0x14d1   :  { %v5597_v63 = vmul.f32 0.03125, %v5593_v4 }
0x14d2   :  { %v5596_v1 = vpop.xlane.xlu0 %5595 }
0x14d3   :  { %v5599_v5 = vadd.f32 1e-05, %v5597_v63  ;;  %v5598_v6 = vmul.f32 0.03125, %v5596_v1 }
0x14d5   :  { %7306 = vrsqrt.f32 %v5599_v5  ;;  %v5600_v7 = vadd.f32 1e-05, %v5598_v6 }
0x14d7   :  { %7308 = vrsqrt.f32 %v5600_v7 }
0x14df   :  { %v7307_v10 = vpop.eup %7306 }
0x14e0   :  { %v5603_v11 = vmul.f32 %v7307_v10, %v5587_v61 }
0x14e1   :  { %v7309_v15 = vpop.eup %7308 }
0x14e2   :  { %v5611_v16 = vmul.f32 %v6376_v2, %v5603_v11  ;;  %v5604_v17 = vmul.f32 %v7309_v15, %v5588_v40 }
0x14e4   :  { %v5612_v23 = vmul.f32 %v6376_v2, %v5604_v17  ;;  %v5619_v25 = vadd.f32 %v6377_v0, %v5611_v16 }
0x14e6   :  { %v5620_v26 = vadd.f32 %v6377_v0, %v5612_v23 }
0x14e8   :  { %v5621_v31 = vpack.c.bf16 %v5620_v26, %v5619_v25 }
0x14ea   :  { %6914 = vmatmul.mubr.msk.bf16.vlgmr.msra.gmra.mrb[104].mxu0 %vm82_vm1, %v5621_v31 }
0x15bd   :  { %v5682_v20 = vpop.f32.mrb[104].mxu0 }
0x15be   :  { %v5683_v24 = vadd.f32 %v6378_v32, %v5682_v20  ;;  %v6915_v57 = vpop.f32.mrb[105].mxu0 }
0x15bf   :  { %v5685_v14 = vpop.f32.mrb[106].mxu0 }
0x15c0   :  { %5689 = vst [vmem:[%s8938_s16] sm:$0xff] %v5683_v24  ;;  %v5686_v21 = vadd.f32 %v6378_v32, %v5685_v14  ;;  %v6916_v27 = vpop.f32.mrb[107].mxu0 }
0x15c2   :  { %5690 = vst [vmem:[%s8938_s16 + $0x8] sm:$0xff] %v5686_v21 }

</bundles_post_ra>
